<compile_context>
chip_gen: v6e
topology: v6e:2x2x1
jax: 0.10.0
libtpu: 0.0.40
codegen_flags: <defaults>
</compile_context>

<pallas_src>
import functools
import math

import jax
import jax.numpy as jnp
from jax.experimental import pallas as pl
from jax.experimental.pallas import tpu as pltpu


CFG = dict(
    batch=2,
    bert_seq=8, bert_hidden=32, bert_heads=4, bert_ffn=64, bert_vocab=96,
    max_input_length=8, t5_hidden=32, t5_heads=4, t5_ffn=64, t5_vocab=64,
    t5_vocab_pad=128,   # logits lane-padded to 128 -> full-width LM-head matmul, unmasked store
    dec_seq=8,
)

_VMEM = pl.BlockSpec(memory_space=pltpu.MemorySpace.VMEM)
_SMEM = pl.BlockSpec(memory_space=pltpu.MemorySpace.SMEM)

# Rows of the packed (13, hidden) gamma/beta/bias table (one DMA instead of 13).
(_LN_EMB_G, _LN_EMB_B, _B_ATTN_O, _LN1_G, _LN1_B, _B_FF2, _LN2_G, _LN2_B,
 _B_POOL, _T5_LN_SA, _T5_LN_CA, _T5_LN_FF, _T5_LN_FINAL) = range(13)


# -----------------------------------------------------------------------------
# In-kernel helpers (traced inside the fused kernel; everything stays in VMEM)
# -----------------------------------------------------------------------------
def _mm(a_bf16, w_bf16):
    """MXU matmul: bf16 operands, f32 accumulation (callers hoist the bf16 casts)."""
    return jnp.dot(a_bf16, w_bf16, preferred_element_type=jnp.float32)


def _layernorm(x, g, b, eps=1e-12):
    mu = jnp.mean(x, axis=-1, keepdims=True)
    var = jnp.mean((x - mu) ** 2, axis=-1, keepdims=True)
    return (x - mu) * jax.lax.rsqrt(var + eps) * g + b


def _rmsnorm(x, g, eps=1e-6):
    return x * jax.lax.rsqrt(jnp.mean(x * x, axis=-1, keepdims=True) + eps) * g


def _fdiv(x_i32, d):
    """floor(x / d) for small non-negative ints via f32 (exact here; avoids relying
    on an integer-divide lowering)."""
    return jnp.floor(x_i32.astype(jnp.float32) * (1.0 / d))


def _attention(q_heads, k_heads, v_heads, bias, scale):
    """All-heads attention as ONE pair of head-batched (leading batch dim) einsums.

    q/k/v_heads: per-head (Nq|Nk, dH) bf16 projections, stacked head-major so the
    einsum batch dim is the LEADING axis (the batched-matmul form Mosaic lowers).
    bias: (Nq, Nk) additive f32 mask (same-batch block-diagonal x causal x padding),
    broadcast once across heads.  Softmax math stays f32; the divide goes to the EUP.
    Returns (nH, Nq, dH) f32.
    """
    q3 = jnp.stack(q_heads)
    k3 = jnp.stack(k_heads)
    v3 = jnp.stack(v_heads)
    s = jnp.einsum("hqd,hkd->hqk", q3, k3, preferred_element_type=jnp.float32)
    if scale != 1.0:
        s = s * scale
    s = s + bias
    s = s - jnp.max(s, axis=-1, keepdims=True)
    p = jnp.exp(s)
    p = p * pl.reciprocal(jnp.sum(p, axis=-1, keepdims=True), approx=True)
    return jnp.einsum("hqk,hkd->hqd", p.astype(jnp.bfloat16), v3,
                      preferred_element_type=jnp.float32)


# -----------------------------------------------------------------------------
# Single fused kernel: BERT layer + pooler + bridge + T5 decoder + LM head + loss
# -----------------------------------------------------------------------------
def _encoder_decoder_kernel(
    # token ids / masks
    enc_ids_ref, enc_mask_ref, dec_ids_ref, dec_mask_ref,
    # BERT encoder layer + pooler
    tok_emb_ref, pos_emb_ref, vec_ref,
    bert_attn_w_ref, bert_attn_b_ref, bert_wo_ref,
    bert_wff1_ref, bert_bff1_ref, bert_wff2_ref, bert_wpool_ref,
    # bridge nn.Linear
    bridge_w_ref, bridge_b_ref,
    # T5 decoder block + tied LM head
    t5_emb_ref, t5_attn_w_ref, t5_attn_wo_ref, t5_wi_ref, t5_wout_ref,
    # outputs
    loss_ref, logits_ref,
    *, B, S, Sd, L, nHb, dHb, nHt, dHt, bert_vocab, t5_vocab):
  f32, bf16 = jnp.float32, jnp.bfloat16
  Hb, Ht = nHb * dHb, nHt * dHt
  NB, ND, NE = B * S, B * Sd, B * L

  def vrow(i):                                   # (1, H) row of the packed vector table
    return vec_ref[i:i + 1, :]

  # ============================ BERT encoder layer =============================
  # token embedding as one-hot x table on the MXU (replaces the XLA gather)
  onehot = (jax.lax.broadcasted_iota(jnp.int32, (NB, bert_vocab), 1)
            == enc_ids_ref[...]).astype(bf16)                          # ids: (NB, 1)
  x = jnp.dot(onehot, tok_emb_ref[...], preferred_element_type=f32)    # (NB, Hb)
  x = (x.reshape(B, S, Hb) + pos_emb_ref[...]).reshape(NB, Hb)
  x = _layernorm(x, vrow(_LN_EMB_G), vrow(_LN_EMB_B))

  # additive attention bias built ONCE from int masks + iota:
  # same-batch block-diagonal over the flattened (b, s) axis AND key padding
  rq = jax.lax.broadcasted_iota(jnp.int32, (NB, NB), 0)
  ck = jax.lax.broadcasted_iota(jnp.int32, (NB, NB), 1)
  keep = (_fdiv(rq, S) == _fdiv(ck, S)) & (enc_mask_ref[...] > 0)
  bert_bias = jnp.where(keep, 0.0, -1e9)

  xb = x.astype(bf16)
  q_h = [(_mm(xb, bert_attn_w_ref[i]) + bert_attn_b_ref[i]).astype(bf16)
         for i in range(nHb)]
  k_h = [(_mm(xb, bert_attn_w_ref[nHb + i]) + bert_attn_b_ref[nHb + i]).astype(bf16)
         for i in range(nHb)]
  v_h = [(_mm(xb, bert_attn_w_ref[2 * nHb + i]) + bert_attn_b_ref[2 * nHb + i]).astype(bf16)
         for i in range(nHb)]
  ctx = _attention(q_h, k_h, v_h, bert_bias, 1.0 / math.sqrt(dHb))
  attn = vrow(_B_ATTN_O)                         # output-proj bias
  for i in range(nHb):                           # concat-free: sum_h ctx_h @ Wo_h == concat @ Wo
    attn = attn + _mm(ctx[i].astype(bf16), bert_wo_ref[i])
  x = _layernorm(x + attn, vrow(_LN1_G), vrow(_LN1_B))

  ff = jax.nn.gelu(_mm(x.astype(bf16), bert_wff1_ref[...]) + bert_bff1_ref[...],
                   approximate=True)             # TODO(synk): BERT uses exact erf GELU
  x = _layernorm(x + _mm(ff.astype(bf16), bert_wff2_ref[...]) + vrow(_B_FF2),
                 vrow(_LN2_G), vrow(_LN2_B))

  # pooler (CLS token) + bridge nn.Linear(bert_hidden, L * t5_hidden)
  cls = x.reshape(B, S, Hb)[:, 0, :]                                   # (B, Hb)
  pooled = jnp.tanh(_mm(cls.astype(bf16), bert_wpool_ref[...]) + vrow(_B_POOL))
  t5_in = _mm(pooled.astype(bf16), bridge_w_ref[...]) + bridge_b_ref[...]   # (B, L*Ht)

  # torch `.view(B, L, Ht)`: flatten to encoder rows in (l-major, b-minor) order so the
  # unavoidable layout change is expressed as proven lane slices + sublane concat;
  # the cross-attention mask below encodes this row ordering.
  enc = jnp.concatenate([t5_in[:, l * Ht:(l + 1) * Ht] for l in range(L)], axis=0)
  enc_b = enc.astype(bf16)                                             # (NE, Ht)

  # ============================ T5 decoder block ===============================
  emb = t5_emb_ref[...]                                                # (Vpad, Ht) tied table
  onehot_d = (jax.lax.broadcasted_iota(jnp.int32, (ND, emb.shape[0]), 1)
              == dec_ids_ref[0]).astype(bf16)
  y = jnp.dot(onehot_d, emb, preferred_element_type=f32)               # (ND, Ht)

  rq = jax.lax.broadcasted_iota(jnp.int32, (ND, ND), 0)
  ck = jax.lax.broadcasted_iota(jnp.int32, (ND, ND), 1)
  keep = ((_fdiv(rq, Sd) == _fdiv(ck, Sd)) & (rq >= ck)
          & (dec_mask_ref[...] > 0))
  self_bias = jnp.where(keep, 0.0, -1e9)

  # --- self-attention (T5: no 1/sqrt(d) scaling, no biases) ---
  hn = _rmsnorm(y, vrow(_T5_LN_SA)).astype(bf16)
  q_h = [_mm(hn, t5_attn_w_ref[i]).astype(bf16) for i in range(nHt)]
  k_h = [_mm(hn, t5_attn_w_ref[nHt + i]).astype(bf16) for i in range(nHt)]
  v_h = [_mm(hn, t5_attn_w_ref[2 * nHt + i]).astype(bf16) for i in range(nHt)]
  ctx = _attention(q_h, k_h, v_h, self_bias, 1.0)
  sa = 0.0
  for i in range(nHt):
    sa = sa + _mm(ctx[i].astype(bf16), t5_attn_wo_ref[i])
  y = y + sa

  # --- cross-attention over the bridged encoder rows (no encoder mask in the torch call) ---
  rqc = jax.lax.broadcasted_iota(jnp.int32, (ND, NE), 0)
  ckc = jax.lax.broadcasted_iota(jnp.int32, (ND, NE), 1)
  ckb = ckc.astype(f32) - B * _fdiv(ckc, B)              # key batch id (enc rows are l-major)
  cross_bias = jnp.where(_fdiv(rqc, Sd) == ckb, 0.0, -1e9)

  hn = _rmsnorm(y, vrow(_T5_LN_CA)).astype(bf16)
  q_h = [_mm(hn, t5_attn_w_ref[3 * nHt + i]).astype(bf16) for i in range(nHt)]
  k_h = [_mm(enc_b, t5_attn_w_ref[4 * nHt + i]).astype(bf16) for i in range(nHt)]
  v_h = [_mm(enc_b, t5_attn_w_ref[5 * nHt + i]).astype(bf16) for i in range(nHt)]
  ctx = _attention(q_h, k_h, v_h, cross_bias, 1.0)
  ca = 0.0
  for i in range(nHt):
    ca = ca + _mm(ctx[i].astype(bf16), t5_attn_wo_ref[nHt + i])
  y = y + ca

  # --- relu feed-forward (T5: no biases) ---
  hn = _rmsnorm(y, vrow(_T5_LN_FF)).astype(bf16)
  ff = jnp.maximum(_mm(hn, t5_wi_ref[...]), 0.0)
  y = y + _mm(ff.astype(bf16), t5_wout_ref[...])

  # --- final RMSNorm, tied-embedding rescale, LM head on the UNtransposed table ---
  yo = (_rmsnorm(y, vrow(_T5_LN_FINAL)) * (Ht ** -0.5)).astype(bf16)
  logits = jax.lax.dot_general(yo, emb, dimension_numbers=(((1,), (1,)), ((), ())),
                               preferred_element_type=f32)             # (ND, Vpad=128)
  logits_ref[...] = logits

  # --- masked cross-entropy vs integer labels (ignore_index = -100) ---
  labels = dec_ids_ref[1]                                              # (ND, 1) int32
  vocab_ids = jax.lax.broadcasted_iota(jnp.int32, logits.shape, 1)
  lm = jnp.where(vocab_ids < t5_vocab, logits, -1e30)   # exclude padded vocab from the LSE
  mx = jnp.max(lm, axis=-1, keepdims=True)
  lse = jnp.log(jnp.sum(jnp.exp(lm - mx), axis=-1, keepdims=True)) + mx
  tgt = jnp.sum(jnp.where(vocab_ids == labels, logits, 0.0), axis=-1, keepdims=True)
  valid = (labels != -100).astype(f32)
  num = jnp.sum((lse - tgt) * valid, axis=0, keepdims=True)            # (1, 1)
  den = jnp.maximum(jnp.sum(valid, axis=0, keepdims=True), 1.0)
  loss_ref[0, 0] = (num / den)[0, 0]                                   # scalar -> SMEM


# -----------------------------------------------------------------------------
# Parameters + top-level forward
# -----------------------------------------------------------------------------
def init_params(key, cfg):
    Hb, Ht = cfg["bert_hidden"], cfg["t5_hidden"]
    Fb, Ft = cfg["bert_ffn"], cfg["t5_ffn"]
    S, L = cfg["bert_seq"], cfg["max_input_length"]
    Vb, V, Vpad = cfg["bert_vocab"], cfg["t5_vocab"], cfg["t5_vocab_pad"]
    nHb, dHb = cfg["bert_heads"], Hb // cfg["bert_heads"]
    nHt, dHt = cfg["t5_heads"], Ht // cfg["t5_heads"]
    assert Hb == Ht, "packed gamma/bias table assumes equal widths at these toy shapes"
    keys = iter(jax.random.split(key, 24))

    def w(shape, scale=0.02):
        # matmul weights live in bf16 (MXU operand dtype); accumulation stays f32 in-kernel
        return (scale * jax.random.normal(next(keys), shape, jnp.float32)).astype(jnp.bfloat16)

    def fw(shape, scale=0.02):
        return scale * jax.random.normal(next(keys), shape, jnp.float32)

    # one (13, H) table holds every width-H gamma/beta/bias: gamma rows = 1, rest = 0
    gamma_rows = jnp.array([_LN_EMB_G, _LN1_G, _LN2_G, _T5_LN_SA, _T5_LN_CA,
                            _T5_LN_FF, _T5_LN_FINAL])
    vec32 = jnp.zeros((13, Hb), jnp.float32).at[gamma_rows].set(1.0)

    # tied T5 embedding / LM head, vocab lane-padded to 128 with zero rows
    t5_emb = jnp.zeros((Vpad, Ht), jnp.bfloat16).at[:V].set(w((V, Ht)))

    return {
        "tok_emb": w((Vb, Hb)),
        "pos_emb": fw((S, Hb)),
        "vec32": vec32,
        # per-head [Wq | Wk | Wv] blocks, leading-axis indexed in-kernel (no lane slicing)
        "bert_attn_w": w((3 * nHb, Hb, dHb)),
        "bert_attn_b": jnp.zeros((3 * nHb, 1, dHb), jnp.float32),
        "bert_wo": w((nHb, dHb, Hb)),          # row blocks of the attention output Dense
        "bert_wff1": w((Hb, Fb)),
        "bert_bff1": jnp.zeros((1, Fb), jnp.float32),
        "bert_wff2": w((Fb, Hb)),
        "bert_wpool": w((Hb, Hb)),
        "bridge_w": w((Hb, L * Ht)),           # nn.Linear(bert_hidden, L * t5_hidden)
        "bridge_b": jnp.zeros((1, L * Ht), jnp.float32),
        "t5_emb": t5_emb,
        # [self Wq|Wk|Wv | cross Wq|Wk|Wv] per-head blocks
        "t5_attn_w": w((6 * nHt, Ht, dHt)),
        "t5_attn_wo": w((2 * nHt, dHt, Ht)),   # [self Wo | cross Wo] row blocks
        "t5_wi": w((Ht, Ft)),
        "t5_wout": w((Ft, Ht)),
    }


def encoder_decoder_forward(params, input_ids, input_mask,
                            decoder_input_ids, decoder_attention_mask, cfg=CFG):
    B, S, Sd = cfg["batch"], cfg["bert_seq"], cfg["dec_seq"]
    L, Ht, Hb = cfg["max_input_length"], cfg["t5_hidden"], cfg["bert_hidden"]
    V, Vpad = cfg["t5_vocab"], cfg["t5_vocab_pad"]

    # T5 semantics: the tensor passed as `labels` is shifted right to form the decoder
    # inputs (decoder_start_token == pad == 0); -100 labels become pad for the lookup.
    labels = decoder_input_ids.astype(jnp.int32)
    shifted = jnp.concatenate([jnp.zeros((B, 1), jnp.int32), labels[:, :-1]], axis=1)
    shifted = jnp.where(shifted == -100, 0, shifted)

    enc_ids = input_ids.astype(jnp.int32).reshape(B * S, 1)
    enc_mask = input_mask.astype(jnp.int32).reshape(1, B * S)
    dec_pack = jnp.stack([shifted.reshape(B * Sd),
                          labels.reshape(B * Sd)]).reshape(2, B * Sd, 1)
    dec_mask = decoder_attention_mask.astype(jnp.int32).reshape(1, B * Sd)

    kernel = functools.partial(
        _encoder_decoder_kernel,
        B=B, S=S, Sd=Sd, L=L,
        nHb=cfg["bert_heads"], dHb=Hb // cfg["bert_heads"],
        nHt=cfg["t5_heads"], dHt=Ht // cfg["t5_heads"],
        bert_vocab=cfg["bert_vocab"], t5_vocab=V)

    args = (
        enc_ids, enc_mask, dec_pack, dec_mask,
        params["tok_emb"], params["pos_emb"], params["vec32"],
        params["bert_attn_w"], params["bert_attn_b"], params["bert_wo"],
        params["bert_wff1"], params["bert_bff1"], params["bert_wff2"], params["bert_wpool"],
        params["bridge_w"], params["bridge_b"],
        params["t5_emb"], params["t5_attn_w"], params["t5_attn_wo"],
        params["t5_wi"], params["t5_wout"],
    )
    loss, logits_pad = pl.pallas_call(
        kernel,
        out_shape=(jax.ShapeDtypeStruct((1, 1), jnp.float32),
                   jax.ShapeDtypeStruct((B * Sd, Vpad), jnp.float32)),
        in_specs=[_VMEM] * len(args),
        out_specs=(_SMEM, _VMEM),
    )(*args)

    logits = logits_pad[:, :V].reshape(B, Sd, V)
    return {"loss": loss[0, 0], "logits": logits}


# -----------------------------------------------------------------------------
if __name__ == "__main__":
    key = jax.random.PRNGKey(0)
    k_params, k_in, k_dec = jax.random.split(key, 3)

    params = init_params(k_params, CFG)

    B = CFG["batch"]
    input_ids = jax.random.randint(k_in, (B, CFG["bert_seq"]), 0, CFG["bert_vocab"], jnp.int32)
    input_mask = jnp.concatenate(
        [jnp.ones((B, CFG["bert_seq"] - 2), jnp.int32), jnp.zeros((B, 2), jnp.int32)], axis=1)
    decoder_input_ids = jax.random.randint(
        k_dec, (B, CFG["dec_seq"]), 0, CFG["t5_vocab"], jnp.int32)
    decoder_attention_mask = jnp.ones((B, CFG["dec_seq"]), jnp.int32)

    fwd = jax.jit(functools.partial(encoder_decoder_forward, cfg=CFG))
    out = fwd(params, input_ids, input_mask, decoder_input_ids, decoder_attention_mask)
    jax.block_until_ready(out)

    assert out["logits"].shape == (B, CFG["dec_seq"], CFG["t5_vocab"])
    assert bool(jnp.isfinite(out["loss"])) and bool(jnp.all(jnp.isfinite(out["logits"])))
    print("KERNEL_OK")
</pallas_src>

<mosaic_0001>
module attributes {stable_mosaic.version = 11 : i64} {
  func.func @_encoder_decoder_kernel(%arg0: memref<16x1xi32, #tpu.memory_space<vmem>>, %arg1: memref<1x16xi32, #tpu.memory_space<vmem>>, %arg2: memref<2x16x1xi32, #tpu.memory_space<vmem>>, %arg3: memref<1x16xi32, #tpu.memory_space<vmem>>, %arg4: memref<96x32xbf16, #tpu.memory_space<vmem>>, %arg5: memref<8x32xf32, #tpu.memory_space<vmem>>, %arg6: memref<13x32xf32, #tpu.memory_space<vmem>>, %arg7: memref<12x32x8xbf16, #tpu.memory_space<vmem>>, %arg8: memref<12x1x8xf32, #tpu.memory_space<vmem>>, %arg9: memref<4x8x32xbf16, #tpu.memory_space<vmem>>, %arg10: memref<32x64xbf16, #tpu.memory_space<vmem>>, %arg11: memref<1x64xf32, #tpu.memory_space<vmem>>, %arg12: memref<64x32xbf16, #tpu.memory_space<vmem>>, %arg13: memref<32x32xbf16, #tpu.memory_space<vmem>>, %arg14: memref<32x256xbf16, #tpu.memory_space<vmem>>, %arg15: memref<1x256xf32, #tpu.memory_space<vmem>>, %arg16: memref<128x32xbf16, #tpu.memory_space<vmem>>, %arg17: memref<24x32x8xbf16, #tpu.memory_space<vmem>>, %arg18: memref<8x8x32xbf16, #tpu.memory_space<vmem>>, %arg19: memref<32x64xbf16, #tpu.memory_space<vmem>>, %arg20: memref<64x32xbf16, #tpu.memory_space<vmem>>, %arg21: memref<1x1xf32, #tpu.memory_space<smem>>, %arg22: memref<16x128xf32, #tpu.memory_space<vmem>>) attributes {dimension_semantics = [], scalar_prefetch = 0 : i64, scratch_operands = 0 : i64, tpu.core_type = #tpu.core_type<tc>} {
    %0 = tpu.iota {dimensions = array<i32: 1>} : vector<16x96xi32>
    %c0 = arith.constant 0 : index
    %c0_0 = arith.constant 0 : index
    %1 = vector.load %arg0[%c0, %c0_0] : memref<16x1xi32, #tpu.memory_space<vmem>>, vector<16x1xi32>
    %2 = vector.broadcast %1 : vector<16x1xi32> to vector<16x96xi32>
    %3 = arith.cmpi eq, %0, %2 : vector<16x96xi32>
    %4 = arith.extui %3 : vector<16x96xi1> to vector<16x96xi32>
    %5 = arith.sitofp %4 : vector<16x96xi32> to vector<16x96xf32>
    %6 = arith.truncf %5 : vector<16x96xf32> to vector<16x96xbf16>
    %c0_1 = arith.constant 0 : index
    %c0_2 = arith.constant 0 : index
    %7 = vector.load %arg4[%c0_1, %c0_2] : memref<96x32xbf16, #tpu.memory_space<vmem>>, vector<96x32xbf16>
    %cst = arith.constant dense<0.000000e+00> : vector<16x32xf32>
    %8 = tpu.matmul %6, %7, %cst {dimension_numbers = #tpu.dot_dimension_numbers<[1], [0], [0], [1], [0, 0, 1, 1], [], []>} : vector<16x96xbf16>, vector<96x32xbf16>, vector<16x32xf32> -> vector<16x32xf32>
    %9 = vector.shape_cast %8 : vector<16x32xf32> to vector<2x8x32xf32>
    %c0_3 = arith.constant 0 : index
    %c0_4 = arith.constant 0 : index
    %10 = vector.load %arg5[%c0_3, %c0_4] : memref<8x32xf32, #tpu.memory_space<vmem>>, vector<8x32xf32>
    %11 = vector.shape_cast %10 : vector<8x32xf32> to vector<1x8x32xf32>
    %12 = vector.broadcast %11 : vector<1x8x32xf32> to vector<2x8x32xf32>
    %13 = arith.addf %9, %12 : vector<2x8x32xf32>
    %14 = vector.shape_cast %13 : vector<2x8x32xf32> to vector<16x32xf32>
    %c0_5 = arith.constant 0 : index
    %c0_6 = arith.constant 0 : index
    %15 = vector.load %arg6[%c0_5, %c0_6] : memref<13x32xf32, #tpu.memory_space<vmem>>, vector<1x32xf32>
    %c1 = arith.constant 1 : index
    %c0_7 = arith.constant 0 : index
    %16 = vector.load %arg6[%c1, %c0_7] : memref<13x32xf32, #tpu.memory_space<vmem>>, vector<1x32xf32>
    %cst_8 = arith.constant dense<0.000000e+00> : vector<16xf32>
    %17 = vector.multi_reduction <add>, %14, %cst_8 [1] : vector<16x32xf32> to vector<16xf32>
    %18 = vector.shape_cast %17 : vector<16xf32> to vector<16x1xf32>
    %cst_9 = arith.constant 3.200000e+01 : f32
    %19 = vector.broadcast %cst_9 : f32 to vector<16x1xf32>
    %20 = arith.divf %18, %19 : vector<16x1xf32>
    %21 = vector.broadcast %20 : vector<16x1xf32> to vector<16x32xf32>
    %22 = arith.subf %14, %21 : vector<16x32xf32>
    %23 = arith.mulf %22, %22 : vector<16x32xf32>
    %cst_10 = arith.constant dense<0.000000e+00> : vector<16xf32>
    %24 = vector.multi_reduction <add>, %23, %cst_10 [1] : vector<16x32xf32> to vector<16xf32>
    %25 = vector.shape_cast %24 : vector<16xf32> to vector<16x1xf32>
    %cst_11 = arith.constant 3.200000e+01 : f32
    %26 = vector.broadcast %cst_11 : f32 to vector<16x1xf32>
    %27 = arith.divf %25, %26 : vector<16x1xf32>
    %28 = vector.broadcast %20 : vector<16x1xf32> to vector<16x32xf32>
    %29 = arith.subf %14, %28 : vector<16x32xf32>
    %cst_12 = arith.constant 9.99999996E-13 : f32
    %30 = vector.broadcast %cst_12 : f32 to vector<16x1xf32>
    %31 = arith.addf %27, %30 : vector<16x1xf32>
    %32 = math.rsqrt %31 : vector<16x1xf32>
    %33 = vector.broadcast %32 : vector<16x1xf32> to vector<16x32xf32>
    %34 = arith.mulf %29, %33 : vector<16x32xf32>
    %35 = vector.broadcast %15 : vector<1x32xf32> to vector<16x32xf32>
    %36 = arith.mulf %34, %35 : vector<16x32xf32>
    %37 = vector.broadcast %16 : vector<1x32xf32> to vector<16x32xf32>
    %38 = arith.addf %36, %37 : vector<16x32xf32>
    %39 = tpu.iota {dimensions = array<i32: 0>} : vector<16x16xi32>
    %40 = tpu.iota {dimensions = array<i32: 1>} : vector<16x16xi32>
    %41 = arith.sitofp %39 : vector<16x16xi32> to vector<16x16xf32>
    %cst_13 = arith.constant 1.250000e-01 : f32
    %42 = vector.broadcast %cst_13 : f32 to vector<16x16xf32>
    %43 = arith.mulf %41, %42 : vector<16x16xf32>
    %44 = math.floor %43 : vector<16x16xf32>
    %45 = arith.sitofp %40 : vector<16x16xi32> to vector<16x16xf32>
    %cst_14 = arith.constant 1.250000e-01 : f32
    %46 = vector.broadcast %cst_14 : f32 to vector<16x16xf32>
    %47 = arith.mulf %45, %46 : vector<16x16xf32>
    %48 = math.floor %47 : vector<16x16xf32>
    %49 = arith.cmpf oeq, %44, %48 : vector<16x16xf32>
    %c0_15 = arith.constant 0 : index
    %c0_16 = arith.constant 0 : index
    %50 = vector.load %arg1[%c0_15, %c0_16] : memref<1x16xi32, #tpu.memory_space<vmem>>, vector<1x16xi32>
    %c0_i32 = arith.constant 0 : i32
    %51 = vector.broadcast %c0_i32 : i32 to vector<1x16xi32>
    %52 = arith.cmpi sgt, %50, %51 : vector<1x16xi32>
    %53 = vector.broadcast %52 : vector<1x16xi1> to vector<16x16xi1>
    %54 = arith.andi %49, %53 : vector<16x16xi1>
    %cst_17 = arith.constant 0.000000e+00 : f32
    %cst_18 = arith.constant -1.000000e+09 : f32
    %55 = vector.broadcast %cst_17 : f32 to vector<16x16xf32>
    %56 = vector.broadcast %cst_18 : f32 to vector<16x16xf32>
    %57 = arith.select %54, %55, %56 : vector<16x16xi1>, vector<16x16xf32>
    %58 = arith.truncf %38 : vector<16x32xf32> to vector<16x32xbf16>
    %c0_19 = arith.constant 0 : index
    %c0_20 = arith.constant 0 : index
    %c0_21 = arith.constant 0 : index
    %59 = vector.load %arg7[%c0_19, %c0_20, %c0_21] : memref<12x32x8xbf16, #tpu.memory_space<vmem>>, vector<1x32x8xbf16>
    %60 = vector.shape_cast %59 : vector<1x32x8xbf16> to vector<32x8xbf16>
    %cst_22 = arith.constant dense<0.000000e+00> : vector<16x8xf32>
    %61 = tpu.matmul %58, %60, %cst_22 {dimension_numbers = #tpu.dot_dimension_numbers<[1], [0], [0], [1], [0, 0, 1, 1], [], []>} : vector<16x32xbf16>, vector<32x8xbf16>, vector<16x8xf32> -> vector<16x8xf32>
    %c0_23 = arith.constant 0 : index
    %c0_24 = arith.constant 0 : index
    %c0_25 = arith.constant 0 : index
    %62 = vector.load %arg8[%c0_23, %c0_24, %c0_25] : memref<12x1x8xf32, #tpu.memory_space<vmem>>, vector<1x1x8xf32>
    %63 = vector.shape_cast %62 : vector<1x1x8xf32> to vector<1x8xf32>
    %64 = vector.broadcast %63 : vector<1x8xf32> to vector<16x8xf32>
    %65 = arith.addf %61, %64 : vector<16x8xf32>
    %66 = arith.truncf %65 : vector<16x8xf32> to vector<16x8xbf16>
    %c1_26 = arith.constant 1 : index
    %c0_27 = arith.constant 0 : index
    %c0_28 = arith.constant 0 : index
    %67 = vector.load %arg7[%c1_26, %c0_27, %c0_28] : memref<12x32x8xbf16, #tpu.memory_space<vmem>>, vector<1x32x8xbf16>
    %68 = vector.shape_cast %67 : vector<1x32x8xbf16> to vector<32x8xbf16>
    %cst_29 = arith.constant dense<0.000000e+00> : vector<16x8xf32>
    %69 = tpu.matmul %58, %68, %cst_29 {dimension_numbers = #tpu.dot_dimension_numbers<[1], [0], [0], [1], [0, 0, 1, 1], [], []>} : vector<16x32xbf16>, vector<32x8xbf16>, vector<16x8xf32> -> vector<16x8xf32>
    %c1_30 = arith.constant 1 : index
    %c0_31 = arith.constant 0 : index
    %c0_32 = arith.constant 0 : index
    %70 = vector.load %arg8[%c1_30, %c0_31, %c0_32] : memref<12x1x8xf32, #tpu.memory_space<vmem>>, vector<1x1x8xf32>
    %71 = vector.shape_cast %70 : vector<1x1x8xf32> to vector<1x8xf32>
    %72 = vector.broadcast %71 : vector<1x8xf32> to vector<16x8xf32>
    %73 = arith.addf %69, %72 : vector<16x8xf32>
    %74 = arith.truncf %73 : vector<16x8xf32> to vector<16x8xbf16>
    %c2 = arith.constant 2 : index
    %c0_33 = arith.constant 0 : index
    %c0_34 = arith.constant 0 : index
    %75 = vector.load %arg7[%c2, %c0_33, %c0_34] : memref<12x32x8xbf16, #tpu.memory_space<vmem>>, vector<1x32x8xbf16>
    %76 = vector.shape_cast %75 : vector<1x32x8xbf16> to vector<32x8xbf16>
    %cst_35 = arith.constant dense<0.000000e+00> : vector<16x8xf32>
    %77 = tpu.matmul %58, %76, %cst_35 {dimension_numbers = #tpu.dot_dimension_numbers<[1], [0], [0], [1], [0, 0, 1, 1], [], []>} : vector<16x32xbf16>, vector<32x8xbf16>, vector<16x8xf32> -> vector<16x8xf32>
    %c2_36 = arith.constant 2 : index
    %c0_37 = arith.constant 0 : index
    %c0_38 = arith.constant 0 : index
    %78 = vector.load %arg8[%c2_36, %c0_37, %c0_38] : memref<12x1x8xf32, #tpu.memory_space<vmem>>, vector<1x1x8xf32>
    %79 = vector.shape_cast %78 : vector<1x1x8xf32> to vector<1x8xf32>
    %80 = vector.broadcast %79 : vector<1x8xf32> to vector<16x8xf32>
    %81 = arith.addf %77, %80 : vector<16x8xf32>
    %82 = arith.truncf %81 : vector<16x8xf32> to vector<16x8xbf16>
    %c3 = arith.constant 3 : index
    %c0_39 = arith.constant 0 : index
    %c0_40 = arith.constant 0 : index
    %83 = vector.load %arg7[%c3, %c0_39, %c0_40] : memref<12x32x8xbf16, #tpu.memory_space<vmem>>, vector<1x32x8xbf16>
    %84 = vector.shape_cast %83 : vector<1x32x8xbf16> to vector<32x8xbf16>
    %cst_41 = arith.constant dense<0.000000e+00> : vector<16x8xf32>
    %85 = tpu.matmul %58, %84, %cst_41 {dimension_numbers = #tpu.dot_dimension_numbers<[1], [0], [0], [1], [0, 0, 1, 1], [], []>} : vector<16x32xbf16>, vector<32x8xbf16>, vector<16x8xf32> -> vector<16x8xf32>
    %c3_42 = arith.constant 3 : index
    %c0_43 = arith.constant 0 : index
    %c0_44 = arith.constant 0 : index
    %86 = vector.load %arg8[%c3_42, %c0_43, %c0_44] : memref<12x1x8xf32, #tpu.memory_space<vmem>>, vector<1x1x8xf32>
    %87 = vector.shape_cast %86 : vector<1x1x8xf32> to vector<1x8xf32>
    %88 = vector.broadcast %87 : vector<1x8xf32> to vector<16x8xf32>
    %89 = arith.addf %85, %88 : vector<16x8xf32>
    %90 = arith.truncf %89 : vector<16x8xf32> to vector<16x8xbf16>
    %c4 = arith.constant 4 : index
    %c0_45 = arith.constant 0 : index
    %c0_46 = arith.constant 0 : index
    %91 = vector.load %arg7[%c4, %c0_45, %c0_46] : memref<12x32x8xbf16, #tpu.memory_space<vmem>>, vector<1x32x8xbf16>
    %92 = vector.shape_cast %91 : vector<1x32x8xbf16> to vector<32x8xbf16>
    %cst_47 = arith.constant dense<0.000000e+00> : vector<16x8xf32>
    %93 = tpu.matmul %58, %92, %cst_47 {dimension_numbers = #tpu.dot_dimension_numbers<[1], [0], [0], [1], [0, 0, 1, 1], [], []>} : vector<16x32xbf16>, vector<32x8xbf16>, vector<16x8xf32> -> vector<16x8xf32>
    %c4_48 = arith.constant 4 : index
    %c0_49 = arith.constant 0 : index
    %c0_50 = arith.constant 0 : index
    %94 = vector.load %arg8[%c4_48, %c0_49, %c0_50] : memref<12x1x8xf32, #tpu.memory_space<vmem>>, vector<1x1x8xf32>
    %95 = vector.shape_cast %94 : vector<1x1x8xf32> to vector<1x8xf32>
    %96 = vector.broadcast %95 : vector<1x8xf32> to vector<16x8xf32>
    %97 = arith.addf %93, %96 : vector<16x8xf32>
    %98 = arith.truncf %97 : vector<16x8xf32> to vector<16x8xbf16>
    %c5 = arith.constant 5 : index
    %c0_51 = arith.constant 0 : index
    %c0_52 = arith.constant 0 : index
    %99 = vector.load %arg7[%c5, %c0_51, %c0_52] : memref<12x32x8xbf16, #tpu.memory_space<vmem>>, vector<1x32x8xbf16>
    %100 = vector.shape_cast %99 : vector<1x32x8xbf16> to vector<32x8xbf16>
    %cst_53 = arith.constant dense<0.000000e+00> : vector<16x8xf32>
    %101 = tpu.matmul %58, %100, %cst_53 {dimension_numbers = #tpu.dot_dimension_numbers<[1], [0], [0], [1], [0, 0, 1, 1], [], []>} : vector<16x32xbf16>, vector<32x8xbf16>, vector<16x8xf32> -> vector<16x8xf32>
    %c5_54 = arith.constant 5 : index
    %c0_55 = arith.constant 0 : index
    %c0_56 = arith.constant 0 : index
    %102 = vector.load %arg8[%c5_54, %c0_55, %c0_56] : memref<12x1x8xf32, #tpu.memory_space<vmem>>, vector<1x1x8xf32>
    %103 = vector.shape_cast %102 : vector<1x1x8xf32> to vector<1x8xf32>
    %104 = vector.broadcast %103 : vector<1x8xf32> to vector<16x8xf32>
    %105 = arith.addf %101, %104 : vector<16x8xf32>
    %106 = arith.truncf %105 : vector<16x8xf32> to vector<16x8xbf16>
    %c6 = arith.constant 6 : index
    %c0_57 = arith.constant 0 : index
    %c0_58 = arith.constant 0 : index
    %107 = vector.load %arg7[%c6, %c0_57, %c0_58] : memref<12x32x8xbf16, #tpu.memory_space<vmem>>, vector<1x32x8xbf16>
    %108 = vector.shape_cast %107 : vector<1x32x8xbf16> to vector<32x8xbf16>
    %cst_59 = arith.constant dense<0.000000e+00> : vector<16x8xf32>
    %109 = tpu.matmul %58, %108, %cst_59 {dimension_numbers = #tpu.dot_dimension_numbers<[1], [0], [0], [1], [0, 0, 1, 1], [], []>} : vector<16x32xbf16>, vector<32x8xbf16>, vector<16x8xf32> -> vector<16x8xf32>
    %c6_60 = arith.constant 6 : index
    %c0_61 = arith.constant 0 : index
    %c0_62 = arith.constant 0 : index
    %110 = vector.load %arg8[%c6_60, %c0_61, %c0_62] : memref<12x1x8xf32, #tpu.memory_space<vmem>>, vector<1x1x8xf32>
    %111 = vector.shape_cast %110 : vector<1x1x8xf32> to vector<1x8xf32>
    %112 = vector.broadcast %111 : vector<1x8xf32> to vector<16x8xf32>
    %113 = arith.addf %109, %112 : vector<16x8xf32>
    %114 = arith.truncf %113 : vector<16x8xf32> to vector<16x8xbf16>
    %c7 = arith.constant 7 : index
    %c0_63 = arith.constant 0 : index
    %c0_64 = arith.constant 0 : index
    %115 = vector.load %arg7[%c7, %c0_63, %c0_64] : memref<12x32x8xbf16, #tpu.memory_space<vmem>>, vector<1x32x8xbf16>
    %116 = vector.shape_cast %115 : vector<1x32x8xbf16> to vector<32x8xbf16>
    %cst_65 = arith.constant dense<0.000000e+00> : vector<16x8xf32>
    %117 = tpu.matmul %58, %116, %cst_65 {dimension_numbers = #tpu.dot_dimension_numbers<[1], [0], [0], [1], [0, 0, 1, 1], [], []>} : vector<16x32xbf16>, vector<32x8xbf16>, vector<16x8xf32> -> vector<16x8xf32>
    %c7_66 = arith.constant 7 : index
    %c0_67 = arith.constant 0 : index
    %c0_68 = arith.constant 0 : index
    %118 = vector.load %arg8[%c7_66, %c0_67, %c0_68] : memref<12x1x8xf32, #tpu.memory_space<vmem>>, vector<1x1x8xf32>
    %119 = vector.shape_cast %118 : vector<1x1x8xf32> to vector<1x8xf32>
    %120 = vector.broadcast %119 : vector<1x8xf32> to vector<16x8xf32>
    %121 = arith.addf %117, %120 : vector<16x8xf32>
    %122 = arith.truncf %121 : vector<16x8xf32> to vector<16x8xbf16>
    %c8 = arith.constant 8 : index
    %c0_69 = arith.constant 0 : index
    %c0_70 = arith.constant 0 : index
    %123 = vector.load %arg7[%c8, %c0_69, %c0_70] : memref<12x32x8xbf16, #tpu.memory_space<vmem>>, vector<1x32x8xbf16>
    %124 = vector.shape_cast %123 : vector<1x32x8xbf16> to vector<32x8xbf16>
    %cst_71 = arith.constant dense<0.000000e+00> : vector<16x8xf32>
    %125 = tpu.matmul %58, %124, %cst_71 {dimension_numbers = #tpu.dot_dimension_numbers<[1], [0], [0], [1], [0, 0, 1, 1], [], []>} : vector<16x32xbf16>, vector<32x8xbf16>, vector<16x8xf32> -> vector<16x8xf32>
    %c8_72 = arith.constant 8 : index
    %c0_73 = arith.constant 0 : index
    %c0_74 = arith.constant 0 : index
    %126 = vector.load %arg8[%c8_72, %c0_73, %c0_74] : memref<12x1x8xf32, #tpu.memory_space<vmem>>, vector<1x1x8xf32>
    %127 = vector.shape_cast %126 : vector<1x1x8xf32> to vector<1x8xf32>
    %128 = vector.broadcast %127 : vector<1x8xf32> to vector<16x8xf32>
    %129 = arith.addf %125, %128 : vector<16x8xf32>
    %130 = arith.truncf %129 : vector<16x8xf32> to vector<16x8xbf16>
    %c9 = arith.constant 9 : index
    %c0_75 = arith.constant 0 : index
    %c0_76 = arith.constant 0 : index
    %131 = vector.load %arg7[%c9, %c0_75, %c0_76] : memref<12x32x8xbf16, #tpu.memory_space<vmem>>, vector<1x32x8xbf16>
    %132 = vector.shape_cast %131 : vector<1x32x8xbf16> to vector<32x8xbf16>
    %cst_77 = arith.constant dense<0.000000e+00> : vector<16x8xf32>
    %133 = tpu.matmul %58, %132, %cst_77 {dimension_numbers = #tpu.dot_dimension_numbers<[1], [0], [0], [1], [0, 0, 1, 1], [], []>} : vector<16x32xbf16>, vector<32x8xbf16>, vector<16x8xf32> -> vector<16x8xf32>
    %c9_78 = arith.constant 9 : index
    %c0_79 = arith.constant 0 : index
    %c0_80 = arith.constant 0 : index
    %134 = vector.load %arg8[%c9_78, %c0_79, %c0_80] : memref<12x1x8xf32, #tpu.memory_space<vmem>>, vector<1x1x8xf32>
    %135 = vector.shape_cast %134 : vector<1x1x8xf32> to vector<1x8xf32>
    %136 = vector.broadcast %135 : vector<1x8xf32> to vector<16x8xf32>
    %137 = arith.addf %133, %136 : vector<16x8xf32>
    %138 = arith.truncf %137 : vector<16x8xf32> to vector<16x8xbf16>
    %c10 = arith.constant 10 : index
    %c0_81 = arith.constant 0 : index
    %c0_82 = arith.constant 0 : index
    %139 = vector.load %arg7[%c10, %c0_81, %c0_82] : memref<12x32x8xbf16, #tpu.memory_space<vmem>>, vector<1x32x8xbf16>
    %140 = vector.shape_cast %139 : vector<1x32x8xbf16> to vector<32x8xbf16>
    %cst_83 = arith.constant dense<0.000000e+00> : vector<16x8xf32>
    %141 = tpu.matmul %58, %140, %cst_83 {dimension_numbers = #tpu.dot_dimension_numbers<[1], [0], [0], [1], [0, 0, 1, 1], [], []>} : vector<16x32xbf16>, vector<32x8xbf16>, vector<16x8xf32> -> vector<16x8xf32>
    %c10_84 = arith.constant 10 : index
    %c0_85 = arith.constant 0 : index
    %c0_86 = arith.constant 0 : index
    %142 = vector.load %arg8[%c10_84, %c0_85, %c0_86] : memref<12x1x8xf32, #tpu.memory_space<vmem>>, vector<1x1x8xf32>
    %143 = vector.shape_cast %142 : vector<1x1x8xf32> to vector<1x8xf32>
    %144 = vector.broadcast %143 : vector<1x8xf32> to vector<16x8xf32>
    %145 = arith.addf %141, %144 : vector<16x8xf32>
    %146 = arith.truncf %145 : vector<16x8xf32> to vector<16x8xbf16>
    %c11 = arith.constant 11 : index
    %c0_87 = arith.constant 0 : index
    %c0_88 = arith.constant 0 : index
    %147 = vector.load %arg7[%c11, %c0_87, %c0_88] : memref<12x32x8xbf16, #tpu.memory_space<vmem>>, vector<1x32x8xbf16>
    %148 = vector.shape_cast %147 : vector<1x32x8xbf16> to vector<32x8xbf16>
    %cst_89 = arith.constant dense<0.000000e+00> : vector<16x8xf32>
    %149 = tpu.matmul %58, %148, %cst_89 {dimension_numbers = #tpu.dot_dimension_numbers<[1], [0], [0], [1], [0, 0, 1, 1], [], []>} : vector<16x32xbf16>, vector<32x8xbf16>, vector<16x8xf32> -> vector<16x8xf32>
    %c11_90 = arith.constant 11 : index
    %c0_91 = arith.constant 0 : index
    %c0_92 = arith.constant 0 : index
    %150 = vector.load %arg8[%c11_90, %c0_91, %c0_92] : memref<12x1x8xf32, #tpu.memory_space<vmem>>, vector<1x1x8xf32>
    %151 = vector.shape_cast %150 : vector<1x1x8xf32> to vector<1x8xf32>
    %152 = vector.broadcast %151 : vector<1x8xf32> to vector<16x8xf32>
    %153 = arith.addf %149, %152 : vector<16x8xf32>
    %154 = arith.truncf %153 : vector<16x8xf32> to vector<16x8xbf16>
    %155 = vector.shape_cast %66 : vector<16x8xbf16> to vector<1x16x8xbf16>
    %156 = vector.shape_cast %74 : vector<16x8xbf16> to vector<1x16x8xbf16>
    %157 = vector.shape_cast %82 : vector<16x8xbf16> to vector<1x16x8xbf16>
    %158 = vector.shape_cast %90 : vector<16x8xbf16> to vector<1x16x8xbf16>
    %159 = tpu.concatenate %155, %156, %157, %158 in 0 : vector<1x16x8xbf16>, vector<1x16x8xbf16>, vector<1x16x8xbf16>, vector<1x16x8xbf16> -> vector<4x16x8xbf16>
    %160 = vector.shape_cast %98 : vector<16x8xbf16> to vector<1x16x8xbf16>
    %161 = vector.shape_cast %106 : vector<16x8xbf16> to vector<1x16x8xbf16>
    %162 = vector.shape_cast %114 : vector<16x8xbf16> to vector<1x16x8xbf16>
    %163 = vector.shape_cast %122 : vector<16x8xbf16> to vector<1x16x8xbf16>
    %164 = tpu.concatenate %160, %161, %162, %163 in 0 : vector<1x16x8xbf16>, vector<1x16x8xbf16>, vector<1x16x8xbf16>, vector<1x16x8xbf16> -> vector<4x16x8xbf16>
    %165 = vector.shape_cast %130 : vector<16x8xbf16> to vector<1x16x8xbf16>
    %166 = vector.shape_cast %138 : vector<16x8xbf16> to vector<1x16x8xbf16>
    %167 = vector.shape_cast %146 : vector<16x8xbf16> to vector<1x16x8xbf16>
    %168 = vector.shape_cast %154 : vector<16x8xbf16> to vector<1x16x8xbf16>
    %169 = tpu.concatenate %165, %166, %167, %168 in 0 : vector<1x16x8xbf16>, vector<1x16x8xbf16>, vector<1x16x8xbf16>, vector<1x16x8xbf16> -> vector<4x16x8xbf16>
    "tpu.trace_start"() <{level = 10 : i32, message = "hqd,hkd->hqk"}> : () -> ()
    %cst_93 = arith.constant dense<0.000000e+00> : vector<4x16x16xf32>
    %170 = tpu.matmul %159, %164, %cst_93 {dimension_numbers = #tpu.dot_dimension_numbers<[2], [2], [1], [1], [0, 0, 0, 1, 1, 1], [0], [0]>} : vector<4x16x8xbf16>, vector<4x16x8xbf16>, vector<4x16x16xf32> -> vector<4x16x16xf32>
    "tpu.trace_stop"() : () -> ()
    %cst_94 = arith.constant 0.353553385 : f32
    %171 = vector.broadcast %cst_94 : f32 to vector<4x16x16xf32>
    %172 = arith.mulf %170, %171 : vector<4x16x16xf32>
    %173 = vector.shape_cast %57 : vector<16x16xf32> to vector<1x16x16xf32>
    %174 = vector.broadcast %173 : vector<1x16x16xf32> to vector<4x16x16xf32>
    %175 = arith.addf %172, %174 : vector<4x16x16xf32>
    %cst_95 = arith.constant dense<0xFF800000> : vector<4x16xf32>
    %176 = vector.multi_reduction <maximumf>, %175, %cst_95 [2] : vector<4x16x16xf32> to vector<4x16xf32>
    %177 = vector.shape_cast %176 : vector<4x16xf32> to vector<4x16x1xf32>
    %178 = vector.broadcast %177 : vector<4x16x1xf32> to vector<4x16x16xf32>
    %179 = arith.subf %175, %178 : vector<4x16x16xf32>
    %180 = math.exp %179 : vector<4x16x16xf32>
    %cst_96 = arith.constant dense<0.000000e+00> : vector<4x16xf32>
    %181 = vector.multi_reduction <add>, %180, %cst_96 [2] : vector<4x16x16xf32> to vector<4x16xf32>
    %182 = vector.shape_cast %181 : vector<4x16xf32> to vector<4x16x1xf32>
    %183 = tpu.reciprocal %182 {approx = true} : vector<4x16x1xf32> -> vector<4x16x1xf32>
    %184 = vector.broadcast %183 : vector<4x16x1xf32> to vector<4x16x16xf32>
    %185 = arith.mulf %180, %184 : vector<4x16x16xf32>
    %186 = arith.truncf %185 : vector<4x16x16xf32> to vector<4x16x16xbf16>
    "tpu.trace_start"() <{level = 10 : i32, message = "hqk,hkd->hqd"}> : () -> ()
    %cst_97 = arith.constant dense<0.000000e+00> : vector<4x16x8xf32>
    %187 = tpu.matmul %186, %169, %cst_97 {dimension_numbers = #tpu.dot_dimension_numbers<[2], [1], [1], [2], [0, 0, 0, 1, 1, 2], [0], [0]>} : vector<4x16x16xbf16>, vector<4x16x8xbf16>, vector<4x16x8xf32> -> vector<4x16x8xf32>
    "tpu.trace_stop"() : () -> ()
    %c2_98 = arith.constant 2 : index
    %c0_99 = arith.constant 0 : index
    %188 = vector.load %arg6[%c2_98, %c0_99] : memref<13x32xf32, #tpu.memory_space<vmem>>, vector<1x32xf32>
    %189 = vector.extract_strided_slice %187 {offsets = [0, 0, 0], sizes = [1, 16, 8], strides = [1, 1, 1]} : vector<4x16x8xf32> to vector<1x16x8xf32>
    %190 = vector.shape_cast %189 : vector<1x16x8xf32> to vector<16x8xf32>
    %191 = arith.truncf %190 : vector<16x8xf32> to vector<16x8xbf16>
    %c0_100 = arith.constant 0 : index
    %c0_101 = arith.constant 0 : index
    %c0_102 = arith.constant 0 : index
    %192 = vector.load %arg9[%c0_100, %c0_101, %c0_102] : memref<4x8x32xbf16, #tpu.memory_space<vmem>>, vector<1x8x32xbf16>
    %193 = vector.shape_cast %192 : vector<1x8x32xbf16> to vector<8x32xbf16>
    %cst_103 = arith.constant dense<0.000000e+00> : vector<16x32xf32>
    %194 = tpu.matmul %191, %193, %cst_103 {dimension_numbers = #tpu.dot_dimension_numbers<[1], [0], [0], [1], [0, 0, 1, 1], [], []>} : vector<16x8xbf16>, vector<8x32xbf16>, vector<16x32xf32> -> vector<16x32xf32>
    %195 = vector.broadcast %188 : vector<1x32xf32> to vector<16x32xf32>
    %196 = arith.addf %195, %194 : vector<16x32xf32>
    %197 = vector.extract_strided_slice %187 {offsets = [1, 0, 0], sizes = [1, 16, 8], strides = [1, 1, 1]} : vector<4x16x8xf32> to vector<1x16x8xf32>
    %198 = vector.shape_cast %197 : vector<1x16x8xf32> to vector<16x8xf32>
    %199 = arith.truncf %198 : vector<16x8xf32> to vector<16x8xbf16>
    %c1_104 = arith.constant 1 : index
    %c0_105 = arith.constant 0 : index
    %c0_106 = arith.constant 0 : index
    %200 = vector.load %arg9[%c1_104, %c0_105, %c0_106] : memref<4x8x32xbf16, #tpu.memory_space<vmem>>, vector<1x8x32xbf16>
    %201 = vector.shape_cast %200 : vector<1x8x32xbf16> to vector<8x32xbf16>
    %cst_107 = arith.constant dense<0.000000e+00> : vector<16x32xf32>
    %202 = tpu.matmul %199, %201, %cst_107 {dimension_numbers = #tpu.dot_dimension_numbers<[1], [0], [0], [1], [0, 0, 1, 1], [], []>} : vector<16x8xbf16>, vector<8x32xbf16>, vector<16x32xf32> -> vector<16x32xf32>
    %203 = arith.addf %196, %202 : vector<16x32xf32>
    %204 = vector.extract_strided_slice %187 {offsets = [2, 0, 0], sizes = [1, 16, 8], strides = [1, 1, 1]} : vector<4x16x8xf32> to vector<1x16x8xf32>
    %205 = vector.shape_cast %204 : vector<1x16x8xf32> to vector<16x8xf32>
    %206 = arith.truncf %205 : vector<16x8xf32> to vector<16x8xbf16>
    %c2_108 = arith.constant 2 : index
    %c0_109 = arith.constant 0 : index
    %c0_110 = arith.constant 0 : index
    %207 = vector.load %arg9[%c2_108, %c0_109, %c0_110] : memref<4x8x32xbf16, #tpu.memory_space<vmem>>, vector<1x8x32xbf16>
    %208 = vector.shape_cast %207 : vector<1x8x32xbf16> to vector<8x32xbf16>
    %cst_111 = arith.constant dense<0.000000e+00> : vector<16x32xf32>
    %209 = tpu.matmul %206, %208, %cst_111 {dimension_numbers = #tpu.dot_dimension_numbers<[1], [0], [0], [1], [0, 0, 1, 1], [], []>} : vector<16x8xbf16>, vector<8x32xbf16>, vector<16x32xf32> -> vector<16x32xf32>
    %210 = arith.addf %203, %209 : vector<16x32xf32>
    %211 = vector.extract_strided_slice %187 {offsets = [3, 0, 0], sizes = [1, 16, 8], strides = [1, 1, 1]} : vector<4x16x8xf32> to vector<1x16x8xf32>
    %212 = vector.shape_cast %211 : vector<1x16x8xf32> to vector<16x8xf32>
    %213 = arith.truncf %212 : vector<16x8xf32> to vector<16x8xbf16>
    %c3_112 = arith.constant 3 : index
    %c0_113 = arith.constant 0 : index
    %c0_114 = arith.constant 0 : index
    %214 = vector.load %arg9[%c3_112, %c0_113, %c0_114] : memref<4x8x32xbf16, #tpu.memory_space<vmem>>, vector<1x8x32xbf16>
    %215 = vector.shape_cast %214 : vector<1x8x32xbf16> to vector<8x32xbf16>
    %cst_115 = arith.constant dense<0.000000e+00> : vector<16x32xf32>
    %216 = tpu.matmul %213, %215, %cst_115 {dimension_numbers = #tpu.dot_dimension_numbers<[1], [0], [0], [1], [0, 0, 1, 1], [], []>} : vector<16x8xbf16>, vector<8x32xbf16>, vector<16x32xf32> -> vector<16x32xf32>
    %217 = arith.addf %210, %216 : vector<16x32xf32>
    %218 = arith.addf %38, %217 : vector<16x32xf32>
    %c3_116 = arith.constant 3 : index
    %c0_117 = arith.constant 0 : index
    %219 = vector.load %arg6[%c3_116, %c0_117] : memref<13x32xf32, #tpu.memory_space<vmem>>, vector<1x32xf32>
    %c4_118 = arith.constant 4 : index
    %c0_119 = arith.constant 0 : index
    %220 = vector.load %arg6[%c4_118, %c0_119] : memref<13x32xf32, #tpu.memory_space<vmem>>, vector<1x32xf32>
    %cst_120 = arith.constant dense<0.000000e+00> : vector<16xf32>
    %221 = vector.multi_reduction <add>, %218, %cst_120 [1] : vector<16x32xf32> to vector<16xf32>
    %222 = vector.shape_cast %221 : vector<16xf32> to vector<16x1xf32>
    %cst_121 = arith.constant 3.200000e+01 : f32
    %223 = vector.broadcast %cst_121 : f32 to vector<16x1xf32>
    %224 = arith.divf %222, %223 : vector<16x1xf32>
    %225 = vector.broadcast %224 : vector<16x1xf32> to vector<16x32xf32>
    %226 = arith.subf %218, %225 : vector<16x32xf32>
    %227 = arith.mulf %226, %226 : vector<16x32xf32>
    %cst_122 = arith.constant dense<0.000000e+00> : vector<16xf32>
    %228 = vector.multi_reduction <add>, %227, %cst_122 [1] : vector<16x32xf32> to vector<16xf32>
    %229 = vector.shape_cast %228 : vector<16xf32> to vector<16x1xf32>
    %cst_123 = arith.constant 3.200000e+01 : f32
    %230 = vector.broadcast %cst_123 : f32 to vector<16x1xf32>
    %231 = arith.divf %229, %230 : vector<16x1xf32>
    %232 = vector.broadcast %224 : vector<16x1xf32> to vector<16x32xf32>
    %233 = arith.subf %218, %232 : vector<16x32xf32>
    %cst_124 = arith.constant 9.99999996E-13 : f32
    %234 = vector.broadcast %cst_124 : f32 to vector<16x1xf32>
    %235 = arith.addf %231, %234 : vector<16x1xf32>
    %236 = math.rsqrt %235 : vector<16x1xf32>
    %237 = vector.broadcast %236 : vector<16x1xf32> to vector<16x32xf32>
    %238 = arith.mulf %233, %237 : vector<16x32xf32>
    %239 = vector.broadcast %219 : vector<1x32xf32> to vector<16x32xf32>
    %240 = arith.mulf %238, %239 : vector<16x32xf32>
    %241 = vector.broadcast %220 : vector<1x32xf32> to vector<16x32xf32>
    %242 = arith.addf %240, %241 : vector<16x32xf32>
    %243 = arith.truncf %242 : vector<16x32xf32> to vector<16x32xbf16>
    %c0_125 = arith.constant 0 : index
    %c0_126 = arith.constant 0 : index
    %244 = vector.load %arg10[%c0_125, %c0_126] : memref<32x64xbf16, #tpu.memory_space<vmem>>, vector<32x64xbf16>
    %cst_127 = arith.constant dense<0.000000e+00> : vector<16x64xf32>
    %245 = tpu.matmul %243, %244, %cst_127 {dimension_numbers = #tpu.dot_dimension_numbers<[1], [0], [0], [1], [0, 0, 1, 1], [], []>} : vector<16x32xbf16>, vector<32x64xbf16>, vector<16x64xf32> -> vector<16x64xf32>
    %c0_128 = arith.constant 0 : index
    %c0_129 = arith.constant 0 : index
    %246 = vector.load %arg11[%c0_128, %c0_129] : memref<1x64xf32, #tpu.memory_space<vmem>>, vector<1x64xf32>
    %247 = vector.broadcast %246 : vector<1x64xf32> to vector<16x64xf32>
    %248 = arith.addf %245, %247 : vector<16x64xf32>
    %249 = arith.mulf %248, %248 : vector<16x64xf32>
    %250 = arith.mulf %248, %249 : vector<16x64xf32>
    %cst_130 = arith.constant 4.471500e-02 : f32
    %251 = vector.broadcast %cst_130 : f32 to vector<16x64xf32>
    %252 = arith.mulf %251, %250 : vector<16x64xf32>
    %253 = arith.addf %248, %252 : vector<16x64xf32>
    %cst_131 = arith.constant 0.797884583 : f32
    %254 = vector.broadcast %cst_131 : f32 to vector<16x64xf32>
    %255 = arith.mulf %254, %253 : vector<16x64xf32>
    %256 = math.tanh %255 : vector<16x64xf32>
    %cst_132 = arith.constant 1.000000e+00 : f32
    %257 = vector.broadcast %cst_132 : f32 to vector<16x64xf32>
    %258 = arith.addf %257, %256 : vector<16x64xf32>
    %cst_133 = arith.constant 5.000000e-01 : f32
    %259 = vector.broadcast %cst_133 : f32 to vector<16x64xf32>
    %260 = arith.mulf %259, %258 : vector<16x64xf32>
    %261 = arith.mulf %248, %260 : vector<16x64xf32>
    %262 = arith.truncf %261 : vector<16x64xf32> to vector<16x64xbf16>
    %c0_134 = arith.constant 0 : index
    %c0_135 = arith.constant 0 : index
    %263 = vector.load %arg12[%c0_134, %c0_135] : memref<64x32xbf16, #tpu.memory_space<vmem>>, vector<64x32xbf16>
    %cst_136 = arith.constant dense<0.000000e+00> : vector<16x32xf32>
    %264 = tpu.matmul %262, %263, %cst_136 {dimension_numbers = #tpu.dot_dimension_numbers<[1], [0], [0], [1], [0, 0, 1, 1], [], []>} : vector<16x64xbf16>, vector<64x32xbf16>, vector<16x32xf32> -> vector<16x32xf32>
    %265 = arith.addf %242, %264 : vector<16x32xf32>
    %c5_137 = arith.constant 5 : index
    %c0_138 = arith.constant 0 : index
    %266 = vector.load %arg6[%c5_137, %c0_138] : memref<13x32xf32, #tpu.memory_space<vmem>>, vector<1x32xf32>
    %267 = vector.broadcast %266 : vector<1x32xf32> to vector<16x32xf32>
    %268 = arith.addf %265, %267 : vector<16x32xf32>
    %c6_139 = arith.constant 6 : index
    %c0_140 = arith.constant 0 : index
    %269 = vector.load %arg6[%c6_139, %c0_140] : memref<13x32xf32, #tpu.memory_space<vmem>>, vector<1x32xf32>
    %c7_141 = arith.constant 7 : index
    %c0_142 = arith.constant 0 : index
    %270 = vector.load %arg6[%c7_141, %c0_142] : memref<13x32xf32, #tpu.memory_space<vmem>>, vector<1x32xf32>
    %cst_143 = arith.constant dense<0.000000e+00> : vector<16xf32>
    %271 = vector.multi_reduction <add>, %268, %cst_143 [1] : vector<16x32xf32> to vector<16xf32>
    %272 = vector.shape_cast %271 : vector<16xf32> to vector<16x1xf32>
    %cst_144 = arith.constant 3.200000e+01 : f32
    %273 = vector.broadcast %cst_144 : f32 to vector<16x1xf32>
    %274 = arith.divf %272, %273 : vector<16x1xf32>
    %275 = vector.broadcast %274 : vector<16x1xf32> to vector<16x32xf32>
    %276 = arith.subf %268, %275 : vector<16x32xf32>
    %277 = arith.mulf %276, %276 : vector<16x32xf32>
    %cst_145 = arith.constant dense<0.000000e+00> : vector<16xf32>
    %278 = vector.multi_reduction <add>, %277, %cst_145 [1] : vector<16x32xf32> to vector<16xf32>
    %279 = vector.shape_cast %278 : vector<16xf32> to vector<16x1xf32>
    %cst_146 = arith.constant 3.200000e+01 : f32
    %280 = vector.broadcast %cst_146 : f32 to vector<16x1xf32>
    %281 = arith.divf %279, %280 : vector<16x1xf32>
    %282 = vector.broadcast %274 : vector<16x1xf32> to vector<16x32xf32>
    %283 = arith.subf %268, %282 : vector<16x32xf32>
    %cst_147 = arith.constant 9.99999996E-13 : f32
    %284 = vector.broadcast %cst_147 : f32 to vector<16x1xf32>
    %285 = arith.addf %281, %284 : vector<16x1xf32>
    %286 = math.rsqrt %285 : vector<16x1xf32>
    %287 = vector.broadcast %286 : vector<16x1xf32> to vector<16x32xf32>
    %288 = arith.mulf %283, %287 : vector<16x32xf32>
    %289 = vector.broadcast %269 : vector<1x32xf32> to vector<16x32xf32>
    %290 = arith.mulf %288, %289 : vector<16x32xf32>
    %291 = vector.broadcast %270 : vector<1x32xf32> to vector<16x32xf32>
    %292 = arith.addf %290, %291 : vector<16x32xf32>
    %293 = vector.shape_cast %292 : vector<16x32xf32> to vector<2x8x32xf32>
    %294 = vector.extract_strided_slice %293 {offsets = [0, 0, 0], sizes = [2, 1, 32], strides = [1, 1, 1]} : vector<2x8x32xf32> to vector<2x1x32xf32>
    %295 = vector.shape_cast %294 : vector<2x1x32xf32> to vector<2x32xf32>
    %296 = arith.truncf %295 : vector<2x32xf32> to vector<2x32xbf16>
    %c0_148 = arith.constant 0 : index
    %c0_149 = arith.constant 0 : index
    %297 = vector.load %arg13[%c0_148, %c0_149] : memref<32x32xbf16, #tpu.memory_space<vmem>>, vector<32x32xbf16>
    %cst_150 = arith.constant dense<0.000000e+00> : vector<2x32xf32>
    %298 = tpu.matmul %296, %297, %cst_150 {dimension_numbers = #tpu.dot_dimension_numbers<[1], [0], [0], [1], [0, 0, 1, 1], [], []>} : vector<2x32xbf16>, vector<32x32xbf16>, vector<2x32xf32> -> vector<2x32xf32>
    %c8_151 = arith.constant 8 : index
    %c0_152 = arith.constant 0 : index
    %299 = vector.load %arg6[%c8_151, %c0_152] : memref<13x32xf32, #tpu.memory_space<vmem>>, vector<1x32xf32>
    %300 = vector.broadcast %299 : vector<1x32xf32> to vector<2x32xf32>
    %301 = arith.addf %298, %300 : vector<2x32xf32>
    %302 = math.tanh %301 : vector<2x32xf32>
    %303 = arith.truncf %302 : vector<2x32xf32> to vector<2x32xbf16>
    %c0_153 = arith.constant 0 : index
    %c0_154 = arith.constant 0 : index
    %304 = vector.load %arg14[%c0_153, %c0_154] : memref<32x256xbf16, #tpu.memory_space<vmem>>, vector<32x256xbf16>
    %cst_155 = arith.constant dense<0.000000e+00> : vector<2x256xf32>
    %305 = tpu.matmul %303, %304, %cst_155 {dimension_numbers = #tpu.dot_dimension_numbers<[1], [0], [0], [1], [0, 0, 1, 1], [], []>} : vector<2x32xbf16>, vector<32x256xbf16>, vector<2x256xf32> -> vector<2x256xf32>
    %c0_156 = arith.constant 0 : index
    %c0_157 = arith.constant 0 : index
    %306 = vector.load %arg15[%c0_156, %c0_157] : memref<1x256xf32, #tpu.memory_space<vmem>>, vector<1x256xf32>
    %307 = vector.broadcast %306 : vector<1x256xf32> to vector<2x256xf32>
    %308 = arith.addf %305, %307 : vector<2x256xf32>
    %309 = vector.extract_strided_slice %308 {offsets = [0, 0], sizes = [2, 32], strides = [1, 1]} : vector<2x256xf32> to vector<2x32xf32>
    %310 = vector.extract_strided_slice %308 {offsets = [0, 32], sizes = [2, 32], strides = [1, 1]} : vector<2x256xf32> to vector<2x32xf32>
    %311 = vector.extract_strided_slice %308 {offsets = [0, 64], sizes = [2, 32], strides = [1, 1]} : vector<2x256xf32> to vector<2x32xf32>
    %312 = vector.extract_strided_slice %308 {offsets = [0, 96], sizes = [2, 32], strides = [1, 1]} : vector<2x256xf32> to vector<2x32xf32>
    %313 = vector.extract_strided_slice %308 {offsets = [0, 128], sizes = [2, 32], strides = [1, 1]} : vector<2x256xf32> to vector<2x32xf32>
    %314 = vector.extract_strided_slice %308 {offsets = [0, 160], sizes = [2, 32], strides = [1, 1]} : vector<2x256xf32> to vector<2x32xf32>
    %315 = vector.extract_strided_slice %308 {offsets = [0, 192], sizes = [2, 32], strides = [1, 1]} : vector<2x256xf32> to vector<2x32xf32>
    %316 = vector.extract_strided_slice %308 {offsets = [0, 224], sizes = [2, 32], strides = [1, 1]} : vector<2x256xf32> to vector<2x32xf32>
    %317 = tpu.concatenate %309, %310, %311, %312, %313, %314, %315, %316 in 0 : vector<2x32xf32>, vector<2x32xf32>, vector<2x32xf32>, vector<2x32xf32>, vector<2x32xf32>, vector<2x32xf32>, vector<2x32xf32>, vector<2x32xf32> -> vector<16x32xf32>
    %318 = arith.truncf %317 : vector<16x32xf32> to vector<16x32xbf16>
    %c0_158 = arith.constant 0 : index
    %c0_159 = arith.constant 0 : index
    %319 = vector.load %arg16[%c0_158, %c0_159] : memref<128x32xbf16, #tpu.memory_space<vmem>>, vector<128x32xbf16>
    %320 = tpu.iota {dimensions = array<i32: 1>} : vector<16x128xi32>
    %c0_160 = arith.constant 0 : index
    %c0_161 = arith.constant 0 : index
    %c0_162 = arith.constant 0 : index
    %321 = vector.load %arg2[%c0_160, %c0_161, %c0_162] : memref<2x16x1xi32, #tpu.memory_space<vmem>>, vector<1x16x1xi32>
    %322 = vector.shape_cast %321 : vector<1x16x1xi32> to vector<16x1xi32>
    %323 = vector.broadcast %322 : vector<16x1xi32> to vector<16x128xi32>
    %324 = arith.cmpi eq, %320, %323 : vector<16x128xi32>
    %325 = arith.extui %324 : vector<16x128xi1> to vector<16x128xi32>
    %326 = arith.sitofp %325 : vector<16x128xi32> to vector<16x128xf32>
    %327 = arith.truncf %326 : vector<16x128xf32> to vector<16x128xbf16>
    %cst_163 = arith.constant dense<0.000000e+00> : vector<16x32xf32>
    %328 = tpu.matmul %327, %319, %cst_163 {dimension_numbers = #tpu.dot_dimension_numbers<[1], [0], [0], [1], [0, 0, 1, 1], [], []>} : vector<16x128xbf16>, vector<128x32xbf16>, vector<16x32xf32> -> vector<16x32xf32>
    %329 = tpu.iota {dimensions = array<i32: 0>} : vector<16x16xi32>
    %330 = tpu.iota {dimensions = array<i32: 1>} : vector<16x16xi32>
    %331 = arith.sitofp %329 : vector<16x16xi32> to vector<16x16xf32>
    %cst_164 = arith.constant 1.250000e-01 : f32
    %332 = vector.broadcast %cst_164 : f32 to vector<16x16xf32>
    %333 = arith.mulf %331, %332 : vector<16x16xf32>
    %334 = math.floor %333 : vector<16x16xf32>
    %335 = arith.sitofp %330 : vector<16x16xi32> to vector<16x16xf32>
    %cst_165 = arith.constant 1.250000e-01 : f32
    %336 = vector.broadcast %cst_165 : f32 to vector<16x16xf32>
    %337 = arith.mulf %335, %336 : vector<16x16xf32>
    %338 = math.floor %337 : vector<16x16xf32>
    %339 = arith.cmpf oeq, %334, %338 : vector<16x16xf32>
    %340 = arith.cmpi sge, %329, %330 : vector<16x16xi32>
    %341 = arith.andi %339, %340 : vector<16x16xi1>
    %c0_166 = arith.constant 0 : index
    %c0_167 = arith.constant 0 : index
    %342 = vector.load %arg3[%c0_166, %c0_167] : memref<1x16xi32, #tpu.memory_space<vmem>>, vector<1x16xi32>
    %c0_i32_168 = arith.constant 0 : i32
    %343 = vector.broadcast %c0_i32_168 : i32 to vector<1x16xi32>
    %344 = arith.cmpi sgt, %342, %343 : vector<1x16xi32>
    %345 = vector.broadcast %344 : vector<1x16xi1> to vector<16x16xi1>
    %346 = arith.andi %341, %345 : vector<16x16xi1>
    %cst_169 = arith.constant 0.000000e+00 : f32
    %cst_170 = arith.constant -1.000000e+09 : f32
    %347 = vector.broadcast %cst_169 : f32 to vector<16x16xf32>
    %348 = vector.broadcast %cst_170 : f32 to vector<16x16xf32>
    %349 = arith.select %346, %347, %348 : vector<16x16xi1>, vector<16x16xf32>
    %c9_171 = arith.constant 9 : index
    %c0_172 = arith.constant 0 : index
    %350 = vector.load %arg6[%c9_171, %c0_172] : memref<13x32xf32, #tpu.memory_space<vmem>>, vector<1x32xf32>
    %351 = arith.mulf %328, %328 : vector<16x32xf32>
    %cst_173 = arith.constant dense<0.000000e+00> : vector<16xf32>
    %352 = vector.multi_reduction <add>, %351, %cst_173 [1] : vector<16x32xf32> to vector<16xf32>
    %353 = vector.shape_cast %352 : vector<16xf32> to vector<16x1xf32>
    %cst_174 = arith.constant 3.200000e+01 : f32
    %354 = vector.broadcast %cst_174 : f32 to vector<16x1xf32>
    %355 = arith.divf %353, %354 : vector<16x1xf32>
    %cst_175 = arith.constant 9.99999997E-7 : f32
    %356 = vector.broadcast %cst_175 : f32 to vector<16x1xf32>
    %357 = arith.addf %355, %356 : vector<16x1xf32>
    %358 = math.rsqrt %357 : vector<16x1xf32>
    %359 = vector.broadcast %358 : vector<16x1xf32> to vector<16x32xf32>
    %360 = arith.mulf %328, %359 : vector<16x32xf32>
    %361 = vector.broadcast %350 : vector<1x32xf32> to vector<16x32xf32>
    %362 = arith.mulf %360, %361 : vector<16x32xf32>
    %363 = arith.truncf %362 : vector<16x32xf32> to vector<16x32xbf16>
    %c0_176 = arith.constant 0 : index
    %c0_177 = arith.constant 0 : index
    %c0_178 = arith.constant 0 : index
    %364 = vector.load %arg17[%c0_176, %c0_177, %c0_178] : memref<24x32x8xbf16, #tpu.memory_space<vmem>>, vector<1x32x8xbf16>
    %365 = vector.shape_cast %364 : vector<1x32x8xbf16> to vector<32x8xbf16>
    %cst_179 = arith.constant dense<0.000000e+00> : vector<16x8xf32>
    %366 = tpu.matmul %363, %365, %cst_179 {dimension_numbers = #tpu.dot_dimension_numbers<[1], [0], [0], [1], [0, 0, 1, 1], [], []>} : vector<16x32xbf16>, vector<32x8xbf16>, vector<16x8xf32> -> vector<16x8xf32>
    %367 = arith.truncf %366 : vector<16x8xf32> to vector<16x8xbf16>
    %c1_180 = arith.constant 1 : index
    %c0_181 = arith.constant 0 : index
    %c0_182 = arith.constant 0 : index
    %368 = vector.load %arg17[%c1_180, %c0_181, %c0_182] : memref<24x32x8xbf16, #tpu.memory_space<vmem>>, vector<1x32x8xbf16>
    %369 = vector.shape_cast %368 : vector<1x32x8xbf16> to vector<32x8xbf16>
    %cst_183 = arith.constant dense<0.000000e+00> : vector<16x8xf32>
    %370 = tpu.matmul %363, %369, %cst_183 {dimension_numbers = #tpu.dot_dimension_numbers<[1], [0], [0], [1], [0, 0, 1, 1], [], []>} : vector<16x32xbf16>, vector<32x8xbf16>, vector<16x8xf32> -> vector<16x8xf32>
    %371 = arith.truncf %370 : vector<16x8xf32> to vector<16x8xbf16>
    %c2_184 = arith.constant 2 : index
    %c0_185 = arith.constant 0 : index
    %c0_186 = arith.constant 0 : index
    %372 = vector.load %arg17[%c2_184, %c0_185, %c0_186] : memref<24x32x8xbf16, #tpu.memory_space<vmem>>, vector<1x32x8xbf16>
    %373 = vector.shape_cast %372 : vector<1x32x8xbf16> to vector<32x8xbf16>
    %cst_187 = arith.constant dense<0.000000e+00> : vector<16x8xf32>
    %374 = tpu.matmul %363, %373, %cst_187 {dimension_numbers = #tpu.dot_dimension_numbers<[1], [0], [0], [1], [0, 0, 1, 1], [], []>} : vector<16x32xbf16>, vector<32x8xbf16>, vector<16x8xf32> -> vector<16x8xf32>
    %375 = arith.truncf %374 : vector<16x8xf32> to vector<16x8xbf16>
    %c3_188 = arith.constant 3 : index
    %c0_189 = arith.constant 0 : index
    %c0_190 = arith.constant 0 : index
    %376 = vector.load %arg17[%c3_188, %c0_189, %c0_190] : memref<24x32x8xbf16, #tpu.memory_space<vmem>>, vector<1x32x8xbf16>
    %377 = vector.shape_cast %376 : vector<1x32x8xbf16> to vector<32x8xbf16>
    %cst_191 = arith.constant dense<0.000000e+00> : vector<16x8xf32>
    %378 = tpu.matmul %363, %377, %cst_191 {dimension_numbers = #tpu.dot_dimension_numbers<[1], [0], [0], [1], [0, 0, 1, 1], [], []>} : vector<16x32xbf16>, vector<32x8xbf16>, vector<16x8xf32> -> vector<16x8xf32>
    %379 = arith.truncf %378 : vector<16x8xf32> to vector<16x8xbf16>
    %c4_192 = arith.constant 4 : index
    %c0_193 = arith.constant 0 : index
    %c0_194 = arith.constant 0 : index
    %380 = vector.load %arg17[%c4_192, %c0_193, %c0_194] : memref<24x32x8xbf16, #tpu.memory_space<vmem>>, vector<1x32x8xbf16>
    %381 = vector.shape_cast %380 : vector<1x32x8xbf16> to vector<32x8xbf16>
    %cst_195 = arith.constant dense<0.000000e+00> : vector<16x8xf32>
    %382 = tpu.matmul %363, %381, %cst_195 {dimension_numbers = #tpu.dot_dimension_numbers<[1], [0], [0], [1], [0, 0, 1, 1], [], []>} : vector<16x32xbf16>, vector<32x8xbf16>, vector<16x8xf32> -> vector<16x8xf32>
    %383 = arith.truncf %382 : vector<16x8xf32> to vector<16x8xbf16>
    %c5_196 = arith.constant 5 : index
    %c0_197 = arith.constant 0 : index
    %c0_198 = arith.constant 0 : index
    %384 = vector.load %arg17[%c5_196, %c0_197, %c0_198] : memref<24x32x8xbf16, #tpu.memory_space<vmem>>, vector<1x32x8xbf16>
    %385 = vector.shape_cast %384 : vector<1x32x8xbf16> to vector<32x8xbf16>
    %cst_199 = arith.constant dense<0.000000e+00> : vector<16x8xf32>
    %386 = tpu.matmul %363, %385, %cst_199 {dimension_numbers = #tpu.dot_dimension_numbers<[1], [0], [0], [1], [0, 0, 1, 1], [], []>} : vector<16x32xbf16>, vector<32x8xbf16>, vector<16x8xf32> -> vector<16x8xf32>
    %387 = arith.truncf %386 : vector<16x8xf32> to vector<16x8xbf16>
    %c6_200 = arith.constant 6 : index
    %c0_201 = arith.constant 0 : index
    %c0_202 = arith.constant 0 : index
    %388 = vector.load %arg17[%c6_200, %c0_201, %c0_202] : memref<24x32x8xbf16, #tpu.memory_space<vmem>>, vector<1x32x8xbf16>
    %389 = vector.shape_cast %388 : vector<1x32x8xbf16> to vector<32x8xbf16>
    %cst_203 = arith.constant dense<0.000000e+00> : vector<16x8xf32>
    %390 = tpu.matmul %363, %389, %cst_203 {dimension_numbers = #tpu.dot_dimension_numbers<[1], [0], [0], [1], [0, 0, 1, 1], [], []>} : vector<16x32xbf16>, vector<32x8xbf16>, vector<16x8xf32> -> vector<16x8xf32>
    %391 = arith.truncf %390 : vector<16x8xf32> to vector<16x8xbf16>
    %c7_204 = arith.constant 7 : index
    %c0_205 = arith.constant 0 : index
    %c0_206 = arith.constant 0 : index
    %392 = vector.load %arg17[%c7_204, %c0_205, %c0_206] : memref<24x32x8xbf16, #tpu.memory_space<vmem>>, vector<1x32x8xbf16>
    %393 = vector.shape_cast %392 : vector<1x32x8xbf16> to vector<32x8xbf16>
    %cst_207 = arith.constant dense<0.000000e+00> : vector<16x8xf32>
    %394 = tpu.matmul %363, %393, %cst_207 {dimension_numbers = #tpu.dot_dimension_numbers<[1], [0], [0], [1], [0, 0, 1, 1], [], []>} : vector<16x32xbf16>, vector<32x8xbf16>, vector<16x8xf32> -> vector<16x8xf32>
    %395 = arith.truncf %394 : vector<16x8xf32> to vector<16x8xbf16>
    %c8_208 = arith.constant 8 : index
    %c0_209 = arith.constant 0 : index
    %c0_210 = arith.constant 0 : index
    %396 = vector.load %arg17[%c8_208, %c0_209, %c0_210] : memref<24x32x8xbf16, #tpu.memory_space<vmem>>, vector<1x32x8xbf16>
    %397 = vector.shape_cast %396 : vector<1x32x8xbf16> to vector<32x8xbf16>
    %cst_211 = arith.constant dense<0.000000e+00> : vector<16x8xf32>
    %398 = tpu.matmul %363, %397, %cst_211 {dimension_numbers = #tpu.dot_dimension_numbers<[1], [0], [0], [1], [0, 0, 1, 1], [], []>} : vector<16x32xbf16>, vector<32x8xbf16>, vector<16x8xf32> -> vector<16x8xf32>
    %399 = arith.truncf %398 : vector<16x8xf32> to vector<16x8xbf16>
    %c9_212 = arith.constant 9 : index
    %c0_213 = arith.constant 0 : index
    %c0_214 = arith.constant 0 : index
    %400 = vector.load %arg17[%c9_212, %c0_213, %c0_214] : memref<24x32x8xbf16, #tpu.memory_space<vmem>>, vector<1x32x8xbf16>
    %401 = vector.shape_cast %400 : vector<1x32x8xbf16> to vector<32x8xbf16>
    %cst_215 = arith.constant dense<0.000000e+00> : vector<16x8xf32>
    %402 = tpu.matmul %363, %401, %cst_215 {dimension_numbers = #tpu.dot_dimension_numbers<[1], [0], [0], [1], [0, 0, 1, 1], [], []>} : vector<16x32xbf16>, vector<32x8xbf16>, vector<16x8xf32> -> vector<16x8xf32>
    %403 = arith.truncf %402 : vector<16x8xf32> to vector<16x8xbf16>
    %c10_216 = arith.constant 10 : index
    %c0_217 = arith.constant 0 : index
    %c0_218 = arith.constant 0 : index
    %404 = vector.load %arg17[%c10_216, %c0_217, %c0_218] : memref<24x32x8xbf16, #tpu.memory_space<vmem>>, vector<1x32x8xbf16>
    %405 = vector.shape_cast %404 : vector<1x32x8xbf16> to vector<32x8xbf16>
    %cst_219 = arith.constant dense<0.000000e+00> : vector<16x8xf32>
    %406 = tpu.matmul %363, %405, %cst_219 {dimension_numbers = #tpu.dot_dimension_numbers<[1], [0], [0], [1], [0, 0, 1, 1], [], []>} : vector<16x32xbf16>, vector<32x8xbf16>, vector<16x8xf32> -> vector<16x8xf32>
    %407 = arith.truncf %406 : vector<16x8xf32> to vector<16x8xbf16>
    %c11_220 = arith.constant 11 : index
    %c0_221 = arith.constant 0 : index
    %c0_222 = arith.constant 0 : index
    %408 = vector.load %arg17[%c11_220, %c0_221, %c0_222] : memref<24x32x8xbf16, #tpu.memory_space<vmem>>, vector<1x32x8xbf16>
    %409 = vector.shape_cast %408 : vector<1x32x8xbf16> to vector<32x8xbf16>
    %cst_223 = arith.constant dense<0.000000e+00> : vector<16x8xf32>
    %410 = tpu.matmul %363, %409, %cst_223 {dimension_numbers = #tpu.dot_dimension_numbers<[1], [0], [0], [1], [0, 0, 1, 1], [], []>} : vector<16x32xbf16>, vector<32x8xbf16>, vector<16x8xf32> -> vector<16x8xf32>
    %411 = arith.truncf %410 : vector<16x8xf32> to vector<16x8xbf16>
    %412 = vector.shape_cast %367 : vector<16x8xbf16> to vector<1x16x8xbf16>
    %413 = vector.shape_cast %371 : vector<16x8xbf16> to vector<1x16x8xbf16>
    %414 = vector.shape_cast %375 : vector<16x8xbf16> to vector<1x16x8xbf16>
    %415 = vector.shape_cast %379 : vector<16x8xbf16> to vector<1x16x8xbf16>
    %416 = tpu.concatenate %412, %413, %414, %415 in 0 : vector<1x16x8xbf16>, vector<1x16x8xbf16>, vector<1x16x8xbf16>, vector<1x16x8xbf16> -> vector<4x16x8xbf16>
    %417 = vector.shape_cast %383 : vector<16x8xbf16> to vector<1x16x8xbf16>
    %418 = vector.shape_cast %387 : vector<16x8xbf16> to vector<1x16x8xbf16>
    %419 = vector.shape_cast %391 : vector<16x8xbf16> to vector<1x16x8xbf16>
    %420 = vector.shape_cast %395 : vector<16x8xbf16> to vector<1x16x8xbf16>
    %421 = tpu.concatenate %417, %418, %419, %420 in 0 : vector<1x16x8xbf16>, vector<1x16x8xbf16>, vector<1x16x8xbf16>, vector<1x16x8xbf16> -> vector<4x16x8xbf16>
    %422 = vector.shape_cast %399 : vector<16x8xbf16> to vector<1x16x8xbf16>
    %423 = vector.shape_cast %403 : vector<16x8xbf16> to vector<1x16x8xbf16>
    %424 = vector.shape_cast %407 : vector<16x8xbf16> to vector<1x16x8xbf16>
    %425 = vector.shape_cast %411 : vector<16x8xbf16> to vector<1x16x8xbf16>
    %426 = tpu.concatenate %422, %423, %424, %425 in 0 : vector<1x16x8xbf16>, vector<1x16x8xbf16>, vector<1x16x8xbf16>, vector<1x16x8xbf16> -> vector<4x16x8xbf16>
    "tpu.trace_start"() <{level = 10 : i32, message = "hqd,hkd->hqk"}> : () -> ()
    %cst_224 = arith.constant dense<0.000000e+00> : vector<4x16x16xf32>
    %427 = tpu.matmul %416, %421, %cst_224 {dimension_numbers = #tpu.dot_dimension_numbers<[2], [2], [1], [1], [0, 0, 0, 1, 1, 1], [0], [0]>} : vector<4x16x8xbf16>, vector<4x16x8xbf16>, vector<4x16x16xf32> -> vector<4x16x16xf32>
    "tpu.trace_stop"() : () -> ()
    %428 = vector.shape_cast %349 : vector<16x16xf32> to vector<1x16x16xf32>
    %429 = vector.broadcast %428 : vector<1x16x16xf32> to vector<4x16x16xf32>
    %430 = arith.addf %427, %429 : vector<4x16x16xf32>
    %cst_225 = arith.constant dense<0xFF800000> : vector<4x16xf32>
    %431 = vector.multi_reduction <maximumf>, %430, %cst_225 [2] : vector<4x16x16xf32> to vector<4x16xf32>
    %432 = vector.shape_cast %431 : vector<4x16xf32> to vector<4x16x1xf32>
    %433 = vector.broadcast %432 : vector<4x16x1xf32> to vector<4x16x16xf32>
    %434 = arith.subf %430, %433 : vector<4x16x16xf32>
    %435 = math.exp %434 : vector<4x16x16xf32>
    %cst_226 = arith.constant dense<0.000000e+00> : vector<4x16xf32>
    %436 = vector.multi_reduction <add>, %435, %cst_226 [2] : vector<4x16x16xf32> to vector<4x16xf32>
    %437 = vector.shape_cast %436 : vector<4x16xf32> to vector<4x16x1xf32>
    %438 = tpu.reciprocal %437 {approx = true} : vector<4x16x1xf32> -> vector<4x16x1xf32>
    %439 = vector.broadcast %438 : vector<4x16x1xf32> to vector<4x16x16xf32>
    %440 = arith.mulf %435, %439 : vector<4x16x16xf32>
    %441 = arith.truncf %440 : vector<4x16x16xf32> to vector<4x16x16xbf16>
    "tpu.trace_start"() <{level = 10 : i32, message = "hqk,hkd->hqd"}> : () -> ()
    %cst_227 = arith.constant dense<0.000000e+00> : vector<4x16x8xf32>
    %442 = tpu.matmul %441, %426, %cst_227 {dimension_numbers = #tpu.dot_dimension_numbers<[2], [1], [1], [2], [0, 0, 0, 1, 1, 2], [0], [0]>} : vector<4x16x16xbf16>, vector<4x16x8xbf16>, vector<4x16x8xf32> -> vector<4x16x8xf32>
    "tpu.trace_stop"() : () -> ()
    %443 = vector.extract_strided_slice %442 {offsets = [0, 0, 0], sizes = [1, 16, 8], strides = [1, 1, 1]} : vector<4x16x8xf32> to vector<1x16x8xf32>
    %444 = vector.shape_cast %443 : vector<1x16x8xf32> to vector<16x8xf32>
    %445 = arith.truncf %444 : vector<16x8xf32> to vector<16x8xbf16>
    %c0_228 = arith.constant 0 : index
    %c0_229 = arith.constant 0 : index
    %c0_230 = arith.constant 0 : index
    %446 = vector.load %arg18[%c0_228, %c0_229, %c0_230] : memref<8x8x32xbf16, #tpu.memory_space<vmem>>, vector<1x8x32xbf16>
    %447 = vector.shape_cast %446 : vector<1x8x32xbf16> to vector<8x32xbf16>
    %cst_231 = arith.constant dense<0.000000e+00> : vector<16x32xf32>
    %448 = tpu.matmul %445, %447, %cst_231 {dimension_numbers = #tpu.dot_dimension_numbers<[1], [0], [0], [1], [0, 0, 1, 1], [], []>} : vector<16x8xbf16>, vector<8x32xbf16>, vector<16x32xf32> -> vector<16x32xf32>
    %cst_232 = arith.constant 0.000000e+00 : f32
    %449 = vector.broadcast %cst_232 : f32 to vector<16x32xf32>
    %450 = arith.addf %449, %448 : vector<16x32xf32>
    %451 = vector.extract_strided_slice %442 {offsets = [1, 0, 0], sizes = [1, 16, 8], strides = [1, 1, 1]} : vector<4x16x8xf32> to vector<1x16x8xf32>
    %452 = vector.shape_cast %451 : vector<1x16x8xf32> to vector<16x8xf32>
    %453 = arith.truncf %452 : vector<16x8xf32> to vector<16x8xbf16>
    %c1_233 = arith.constant 1 : index
    %c0_234 = arith.constant 0 : index
    %c0_235 = arith.constant 0 : index
    %454 = vector.load %arg18[%c1_233, %c0_234, %c0_235] : memref<8x8x32xbf16, #tpu.memory_space<vmem>>, vector<1x8x32xbf16>
    %455 = vector.shape_cast %454 : vector<1x8x32xbf16> to vector<8x32xbf16>
    %cst_236 = arith.constant dense<0.000000e+00> : vector<16x32xf32>
    %456 = tpu.matmul %453, %455, %cst_236 {dimension_numbers = #tpu.dot_dimension_numbers<[1], [0], [0], [1], [0, 0, 1, 1], [], []>} : vector<16x8xbf16>, vector<8x32xbf16>, vector<16x32xf32> -> vector<16x32xf32>
    %457 = arith.addf %450, %456 : vector<16x32xf32>
    %458 = vector.extract_strided_slice %442 {offsets = [2, 0, 0], sizes = [1, 16, 8], strides = [1, 1, 1]} : vector<4x16x8xf32> to vector<1x16x8xf32>
    %459 = vector.shape_cast %458 : vector<1x16x8xf32> to vector<16x8xf32>
    %460 = arith.truncf %459 : vector<16x8xf32> to vector<16x8xbf16>
    %c2_237 = arith.constant 2 : index
    %c0_238 = arith.constant 0 : index
    %c0_239 = arith.constant 0 : index
    %461 = vector.load %arg18[%c2_237, %c0_238, %c0_239] : memref<8x8x32xbf16, #tpu.memory_space<vmem>>, vector<1x8x32xbf16>
    %462 = vector.shape_cast %461 : vector<1x8x32xbf16> to vector<8x32xbf16>
    %cst_240 = arith.constant dense<0.000000e+00> : vector<16x32xf32>
    %463 = tpu.matmul %460, %462, %cst_240 {dimension_numbers = #tpu.dot_dimension_numbers<[1], [0], [0], [1], [0, 0, 1, 1], [], []>} : vector<16x8xbf16>, vector<8x32xbf16>, vector<16x32xf32> -> vector<16x32xf32>
    %464 = arith.addf %457, %463 : vector<16x32xf32>
    %465 = vector.extract_strided_slice %442 {offsets = [3, 0, 0], sizes = [1, 16, 8], strides = [1, 1, 1]} : vector<4x16x8xf32> to vector<1x16x8xf32>
    %466 = vector.shape_cast %465 : vector<1x16x8xf32> to vector<16x8xf32>
    %467 = arith.truncf %466 : vector<16x8xf32> to vector<16x8xbf16>
    %c3_241 = arith.constant 3 : index
    %c0_242 = arith.constant 0 : index
    %c0_243 = arith.constant 0 : index
    %468 = vector.load %arg18[%c3_241, %c0_242, %c0_243] : memref<8x8x32xbf16, #tpu.memory_space<vmem>>, vector<1x8x32xbf16>
    %469 = vector.shape_cast %468 : vector<1x8x32xbf16> to vector<8x32xbf16>
    %cst_244 = arith.constant dense<0.000000e+00> : vector<16x32xf32>
    %470 = tpu.matmul %467, %469, %cst_244 {dimension_numbers = #tpu.dot_dimension_numbers<[1], [0], [0], [1], [0, 0, 1, 1], [], []>} : vector<16x8xbf16>, vector<8x32xbf16>, vector<16x32xf32> -> vector<16x32xf32>
    %471 = arith.addf %464, %470 : vector<16x32xf32>
    %472 = arith.addf %328, %471 : vector<16x32xf32>
    %473 = tpu.iota {dimensions = array<i32: 0>} : vector<16x16xi32>
    %474 = tpu.iota {dimensions = array<i32: 1>} : vector<16x16xi32>
    %475 = arith.sitofp %474 : vector<16x16xi32> to vector<16x16xf32>
    %476 = arith.sitofp %474 : vector<16x16xi32> to vector<16x16xf32>
    %cst_245 = arith.constant 5.000000e-01 : f32
    %477 = vector.broadcast %cst_245 : f32 to vector<16x16xf32>
    %478 = arith.mulf %476, %477 : vector<16x16xf32>
    %479 = math.floor %478 : vector<16x16xf32>
    %cst_246 = arith.constant 2.000000e+00 : f32
    %480 = vector.broadcast %cst_246 : f32 to vector<16x16xf32>
    %481 = arith.mulf %480, %479 : vector<16x16xf32>
    %482 = arith.subf %475, %481 : vector<16x16xf32>
    %483 = arith.sitofp %473 : vector<16x16xi32> to vector<16x16xf32>
    %cst_247 = arith.constant 1.250000e-01 : f32
    %484 = vector.broadcast %cst_247 : f32 to vector<16x16xf32>
    %485 = arith.mulf %483, %484 : vector<16x16xf32>
    %486 = math.floor %485 : vector<16x16xf32>
    %487 = arith.cmpf oeq, %486, %482 : vector<16x16xf32>
    %cst_248 = arith.constant 0.000000e+00 : f32
    %cst_249 = arith.constant -1.000000e+09 : f32
    %488 = vector.broadcast %cst_248 : f32 to vector<16x16xf32>
    %489 = vector.broadcast %cst_249 : f32 to vector<16x16xf32>
    %490 = arith.select %487, %488, %489 : vector<16x16xi1>, vector<16x16xf32>
    %c10_250 = arith.constant 10 : index
    %c0_251 = arith.constant 0 : index
    %491 = vector.load %arg6[%c10_250, %c0_251] : memref<13x32xf32, #tpu.memory_space<vmem>>, vector<1x32xf32>
    %492 = arith.mulf %472, %472 : vector<16x32xf32>
    %cst_252 = arith.constant dense<0.000000e+00> : vector<16xf32>
    %493 = vector.multi_reduction <add>, %492, %cst_252 [1] : vector<16x32xf32> to vector<16xf32>
    %494 = vector.shape_cast %493 : vector<16xf32> to vector<16x1xf32>
    %cst_253 = arith.constant 3.200000e+01 : f32
    %495 = vector.broadcast %cst_253 : f32 to vector<16x1xf32>
    %496 = arith.divf %494, %495 : vector<16x1xf32>
    %cst_254 = arith.constant 9.99999997E-7 : f32
    %497 = vector.broadcast %cst_254 : f32 to vector<16x1xf32>
    %498 = arith.addf %496, %497 : vector<16x1xf32>
    %499 = math.rsqrt %498 : vector<16x1xf32>
    %500 = vector.broadcast %499 : vector<16x1xf32> to vector<16x32xf32>
    %501 = arith.mulf %472, %500 : vector<16x32xf32>
    %502 = vector.broadcast %491 : vector<1x32xf32> to vector<16x32xf32>
    %503 = arith.mulf %501, %502 : vector<16x32xf32>
    %504 = arith.truncf %503 : vector<16x32xf32> to vector<16x32xbf16>
    %c12 = arith.constant 12 : index
    %c0_255 = arith.constant 0 : index
    %c0_256 = arith.constant 0 : index
    %505 = vector.load %arg17[%c12, %c0_255, %c0_256] : memref<24x32x8xbf16, #tpu.memory_space<vmem>>, vector<1x32x8xbf16>
    %506 = vector.shape_cast %505 : vector<1x32x8xbf16> to vector<32x8xbf16>
    %cst_257 = arith.constant dense<0.000000e+00> : vector<16x8xf32>
    %507 = tpu.matmul %504, %506, %cst_257 {dimension_numbers = #tpu.dot_dimension_numbers<[1], [0], [0], [1], [0, 0, 1, 1], [], []>} : vector<16x32xbf16>, vector<32x8xbf16>, vector<16x8xf32> -> vector<16x8xf32>
    %508 = arith.truncf %507 : vector<16x8xf32> to vector<16x8xbf16>
    %c13 = arith.constant 13 : index
    %c0_258 = arith.constant 0 : index
    %c0_259 = arith.constant 0 : index
    %509 = vector.load %arg17[%c13, %c0_258, %c0_259] : memref<24x32x8xbf16, #tpu.memory_space<vmem>>, vector<1x32x8xbf16>
    %510 = vector.shape_cast %509 : vector<1x32x8xbf16> to vector<32x8xbf16>
    %cst_260 = arith.constant dense<0.000000e+00> : vector<16x8xf32>
    %511 = tpu.matmul %504, %510, %cst_260 {dimension_numbers = #tpu.dot_dimension_numbers<[1], [0], [0], [1], [0, 0, 1, 1], [], []>} : vector<16x32xbf16>, vector<32x8xbf16>, vector<16x8xf32> -> vector<16x8xf32>
    %512 = arith.truncf %511 : vector<16x8xf32> to vector<16x8xbf16>
    %c14 = arith.constant 14 : index
    %c0_261 = arith.constant 0 : index
    %c0_262 = arith.constant 0 : index
    %513 = vector.load %arg17[%c14, %c0_261, %c0_262] : memref<24x32x8xbf16, #tpu.memory_space<vmem>>, vector<1x32x8xbf16>
    %514 = vector.shape_cast %513 : vector<1x32x8xbf16> to vector<32x8xbf16>
    %cst_263 = arith.constant dense<0.000000e+00> : vector<16x8xf32>
    %515 = tpu.matmul %504, %514, %cst_263 {dimension_numbers = #tpu.dot_dimension_numbers<[1], [0], [0], [1], [0, 0, 1, 1], [], []>} : vector<16x32xbf16>, vector<32x8xbf16>, vector<16x8xf32> -> vector<16x8xf32>
    %516 = arith.truncf %515 : vector<16x8xf32> to vector<16x8xbf16>
    %c15 = arith.constant 15 : index
    %c0_264 = arith.constant 0 : index
    %c0_265 = arith.constant 0 : index
    %517 = vector.load %arg17[%c15, %c0_264, %c0_265] : memref<24x32x8xbf16, #tpu.memory_space<vmem>>, vector<1x32x8xbf16>
    %518 = vector.shape_cast %517 : vector<1x32x8xbf16> to vector<32x8xbf16>
    %cst_266 = arith.constant dense<0.000000e+00> : vector<16x8xf32>
    %519 = tpu.matmul %504, %518, %cst_266 {dimension_numbers = #tpu.dot_dimension_numbers<[1], [0], [0], [1], [0, 0, 1, 1], [], []>} : vector<16x32xbf16>, vector<32x8xbf16>, vector<16x8xf32> -> vector<16x8xf32>
    %520 = arith.truncf %519 : vector<16x8xf32> to vector<16x8xbf16>
    %c16 = arith.constant 16 : index
    %c0_267 = arith.constant 0 : index
    %c0_268 = arith.constant 0 : index
    %521 = vector.load %arg17[%c16, %c0_267, %c0_268] : memref<24x32x8xbf16, #tpu.memory_space<vmem>>, vector<1x32x8xbf16>
    %522 = vector.shape_cast %521 : vector<1x32x8xbf16> to vector<32x8xbf16>
    %cst_269 = arith.constant dense<0.000000e+00> : vector<16x8xf32>
    %523 = tpu.matmul %318, %522, %cst_269 {dimension_numbers = #tpu.dot_dimension_numbers<[1], [0], [0], [1], [0, 0, 1, 1], [], []>} : vector<16x32xbf16>, vector<32x8xbf16>, vector<16x8xf32> -> vector<16x8xf32>
    %524 = arith.truncf %523 : vector<16x8xf32> to vector<16x8xbf16>
    %c17 = arith.constant 17 : index
    %c0_270 = arith.constant 0 : index
    %c0_271 = arith.constant 0 : index
    %525 = vector.load %arg17[%c17, %c0_270, %c0_271] : memref<24x32x8xbf16, #tpu.memory_space<vmem>>, vector<1x32x8xbf16>
    %526 = vector.shape_cast %525 : vector<1x32x8xbf16> to vector<32x8xbf16>
    %cst_272 = arith.constant dense<0.000000e+00> : vector<16x8xf32>
    %527 = tpu.matmul %318, %526, %cst_272 {dimension_numbers = #tpu.dot_dimension_numbers<[1], [0], [0], [1], [0, 0, 1, 1], [], []>} : vector<16x32xbf16>, vector<32x8xbf16>, vector<16x8xf32> -> vector<16x8xf32>
    %528 = arith.truncf %527 : vector<16x8xf32> to vector<16x8xbf16>
    %c18 = arith.constant 18 : index
    %c0_273 = arith.constant 0 : index
    %c0_274 = arith.constant 0 : index
    %529 = vector.load %arg17[%c18, %c0_273, %c0_274] : memref<24x32x8xbf16, #tpu.memory_space<vmem>>, vector<1x32x8xbf16>
    %530 = vector.shape_cast %529 : vector<1x32x8xbf16> to vector<32x8xbf16>
    %cst_275 = arith.constant dense<0.000000e+00> : vector<16x8xf32>
    %531 = tpu.matmul %318, %530, %cst_275 {dimension_numbers = #tpu.dot_dimension_numbers<[1], [0], [0], [1], [0, 0, 1, 1], [], []>} : vector<16x32xbf16>, vector<32x8xbf16>, vector<16x8xf32> -> vector<16x8xf32>
    %532 = arith.truncf %531 : vector<16x8xf32> to vector<16x8xbf16>
    %c19 = arith.constant 19 : index
    %c0_276 = arith.constant 0 : index
    %c0_277 = arith.constant 0 : index
    %533 = vector.load %arg17[%c19, %c0_276, %c0_277] : memref<24x32x8xbf16, #tpu.memory_space<vmem>>, vector<1x32x8xbf16>
    %534 = vector.shape_cast %533 : vector<1x32x8xbf16> to vector<32x8xbf16>
    %cst_278 = arith.constant dense<0.000000e+00> : vector<16x8xf32>
    %535 = tpu.matmul %318, %534, %cst_278 {dimension_numbers = #tpu.dot_dimension_numbers<[1], [0], [0], [1], [0, 0, 1, 1], [], []>} : vector<16x32xbf16>, vector<32x8xbf16>, vector<16x8xf32> -> vector<16x8xf32>
    %536 = arith.truncf %535 : vector<16x8xf32> to vector<16x8xbf16>
    %c20 = arith.constant 20 : index
    %c0_279 = arith.constant 0 : index
    %c0_280 = arith.constant 0 : index
    %537 = vector.load %arg17[%c20, %c0_279, %c0_280] : memref<24x32x8xbf16, #tpu.memory_space<vmem>>, vector<1x32x8xbf16>
    %538 = vector.shape_cast %537 : vector<1x32x8xbf16> to vector<32x8xbf16>
    %cst_281 = arith.constant dense<0.000000e+00> : vector<16x8xf32>
    %539 = tpu.matmul %318, %538, %cst_281 {dimension_numbers = #tpu.dot_dimension_numbers<[1], [0], [0], [1], [0, 0, 1, 1], [], []>} : vector<16x32xbf16>, vector<32x8xbf16>, vector<16x8xf32> -> vector<16x8xf32>
    %540 = arith.truncf %539 : vector<16x8xf32> to vector<16x8xbf16>
    %c21 = arith.constant 21 : index
    %c0_282 = arith.constant 0 : index
    %c0_283 = arith.constant 0 : index
    %541 = vector.load %arg17[%c21, %c0_282, %c0_283] : memref<24x32x8xbf16, #tpu.memory_space<vmem>>, vector<1x32x8xbf16>
    %542 = vector.shape_cast %541 : vector<1x32x8xbf16> to vector<32x8xbf16>
    %cst_284 = arith.constant dense<0.000000e+00> : vector<16x8xf32>
    %543 = tpu.matmul %318, %542, %cst_284 {dimension_numbers = #tpu.dot_dimension_numbers<[1], [0], [0], [1], [0, 0, 1, 1], [], []>} : vector<16x32xbf16>, vector<32x8xbf16>, vector<16x8xf32> -> vector<16x8xf32>
    %544 = arith.truncf %543 : vector<16x8xf32> to vector<16x8xbf16>
    %c22 = arith.constant 22 : index
    %c0_285 = arith.constant 0 : index
    %c0_286 = arith.constant 0 : index
    %545 = vector.load %arg17[%c22, %c0_285, %c0_286] : memref<24x32x8xbf16, #tpu.memory_space<vmem>>, vector<1x32x8xbf16>
    %546 = vector.shape_cast %545 : vector<1x32x8xbf16> to vector<32x8xbf16>
    %cst_287 = arith.constant dense<0.000000e+00> : vector<16x8xf32>
    %547 = tpu.matmul %318, %546, %cst_287 {dimension_numbers = #tpu.dot_dimension_numbers<[1], [0], [0], [1], [0, 0, 1, 1], [], []>} : vector<16x32xbf16>, vector<32x8xbf16>, vector<16x8xf32> -> vector<16x8xf32>
    %548 = arith.truncf %547 : vector<16x8xf32> to vector<16x8xbf16>
    %c23 = arith.constant 23 : index
    %c0_288 = arith.constant 0 : index
    %c0_289 = arith.constant 0 : index
    %549 = vector.load %arg17[%c23, %c0_288, %c0_289] : memref<24x32x8xbf16, #tpu.memory_space<vmem>>, vector<1x32x8xbf16>
    %550 = vector.shape_cast %549 : vector<1x32x8xbf16> to vector<32x8xbf16>
    %cst_290 = arith.constant dense<0.000000e+00> : vector<16x8xf32>
    %551 = tpu.matmul %318, %550, %cst_290 {dimension_numbers = #tpu.dot_dimension_numbers<[1], [0], [0], [1], [0, 0, 1, 1], [], []>} : vector<16x32xbf16>, vector<32x8xbf16>, vector<16x8xf32> -> vector<16x8xf32>
    %552 = arith.truncf %551 : vector<16x8xf32> to vector<16x8xbf16>
    %553 = vector.shape_cast %508 : vector<16x8xbf16> to vector<1x16x8xbf16>
    %554 = vector.shape_cast %512 : vector<16x8xbf16> to vector<1x16x8xbf16>
    %555 = vector.shape_cast %516 : vector<16x8xbf16> to vector<1x16x8xbf16>
    %556 = vector.shape_cast %520 : vector<16x8xbf16> to vector<1x16x8xbf16>
    %557 = tpu.concatenate %553, %554, %555, %556 in 0 : vector<1x16x8xbf16>, vector<1x16x8xbf16>, vector<1x16x8xbf16>, vector<1x16x8xbf16> -> vector<4x16x8xbf16>
    %558 = vector.shape_cast %524 : vector<16x8xbf16> to vector<1x16x8xbf16>
    %559 = vector.shape_cast %528 : vector<16x8xbf16> to vector<1x16x8xbf16>
    %560 = vector.shape_cast %532 : vector<16x8xbf16> to vector<1x16x8xbf16>
    %561 = vector.shape_cast %536 : vector<16x8xbf16> to vector<1x16x8xbf16>
    %562 = tpu.concatenate %558, %559, %560, %561 in 0 : vector<1x16x8xbf16>, vector<1x16x8xbf16>, vector<1x16x8xbf16>, vector<1x16x8xbf16> -> vector<4x16x8xbf16>
    %563 = vector.shape_cast %540 : vector<16x8xbf16> to vector<1x16x8xbf16>
    %564 = vector.shape_cast %544 : vector<16x8xbf16> to vector<1x16x8xbf16>
    %565 = vector.shape_cast %548 : vector<16x8xbf16> to vector<1x16x8xbf16>
    %566 = vector.shape_cast %552 : vector<16x8xbf16> to vector<1x16x8xbf16>
    %567 = tpu.concatenate %563, %564, %565, %566 in 0 : vector<1x16x8xbf16>, vector<1x16x8xbf16>, vector<1x16x8xbf16>, vector<1x16x8xbf16> -> vector<4x16x8xbf16>
    "tpu.trace_start"() <{level = 10 : i32, message = "hqd,hkd->hqk"}> : () -> ()
    %cst_291 = arith.constant dense<0.000000e+00> : vector<4x16x16xf32>
    %568 = tpu.matmul %557, %562, %cst_291 {dimension_numbers = #tpu.dot_dimension_numbers<[2], [2], [1], [1], [0, 0, 0, 1, 1, 1], [0], [0]>} : vector<4x16x8xbf16>, vector<4x16x8xbf16>, vector<4x16x16xf32> -> vector<4x16x16xf32>
    "tpu.trace_stop"() : () -> ()
    %569 = vector.shape_cast %490 : vector<16x16xf32> to vector<1x16x16xf32>
    %570 = vector.broadcast %569 : vector<1x16x16xf32> to vector<4x16x16xf32>
    %571 = arith.addf %568, %570 : vector<4x16x16xf32>
    %cst_292 = arith.constant dense<0xFF800000> : vector<4x16xf32>
    %572 = vector.multi_reduction <maximumf>, %571, %cst_292 [2] : vector<4x16x16xf32> to vector<4x16xf32>
    %573 = vector.shape_cast %572 : vector<4x16xf32> to vector<4x16x1xf32>
    %574 = vector.broadcast %573 : vector<4x16x1xf32> to vector<4x16x16xf32>
    %575 = arith.subf %571, %574 : vector<4x16x16xf32>
    %576 = math.exp %575 : vector<4x16x16xf32>
    %cst_293 = arith.constant dense<0.000000e+00> : vector<4x16xf32>
    %577 = vector.multi_reduction <add>, %576, %cst_293 [2] : vector<4x16x16xf32> to vector<4x16xf32>
    %578 = vector.shape_cast %577 : vector<4x16xf32> to vector<4x16x1xf32>
    %579 = tpu.reciprocal %578 {approx = true} : vector<4x16x1xf32> -> vector<4x16x1xf32>
    %580 = vector.broadcast %579 : vector<4x16x1xf32> to vector<4x16x16xf32>
    %581 = arith.mulf %576, %580 : vector<4x16x16xf32>
    %582 = arith.truncf %581 : vector<4x16x16xf32> to vector<4x16x16xbf16>
    "tpu.trace_start"() <{level = 10 : i32, message = "hqk,hkd->hqd"}> : () -> ()
    %cst_294 = arith.constant dense<0.000000e+00> : vector<4x16x8xf32>
    %583 = tpu.matmul %582, %567, %cst_294 {dimension_numbers = #tpu.dot_dimension_numbers<[2], [1], [1], [2], [0, 0, 0, 1, 1, 2], [0], [0]>} : vector<4x16x16xbf16>, vector<4x16x8xbf16>, vector<4x16x8xf32> -> vector<4x16x8xf32>
    "tpu.trace_stop"() : () -> ()
    %584 = vector.extract_strided_slice %583 {offsets = [0, 0, 0], sizes = [1, 16, 8], strides = [1, 1, 1]} : vector<4x16x8xf32> to vector<1x16x8xf32>
    %585 = vector.shape_cast %584 : vector<1x16x8xf32> to vector<16x8xf32>
    %586 = arith.truncf %585 : vector<16x8xf32> to vector<16x8xbf16>
    %c4_295 = arith.constant 4 : index
    %c0_296 = arith.constant 0 : index
    %c0_297 = arith.constant 0 : index
    %587 = vector.load %arg18[%c4_295, %c0_296, %c0_297] : memref<8x8x32xbf16, #tpu.memory_space<vmem>>, vector<1x8x32xbf16>
    %588 = vector.shape_cast %587 : vector<1x8x32xbf16> to vector<8x32xbf16>
    %cst_298 = arith.constant dense<0.000000e+00> : vector<16x32xf32>
    %589 = tpu.matmul %586, %588, %cst_298 {dimension_numbers = #tpu.dot_dimension_numbers<[1], [0], [0], [1], [0, 0, 1, 1], [], []>} : vector<16x8xbf16>, vector<8x32xbf16>, vector<16x32xf32> -> vector<16x32xf32>
    %cst_299 = arith.constant 0.000000e+00 : f32
    %590 = vector.broadcast %cst_299 : f32 to vector<16x32xf32>
    %591 = arith.addf %590, %589 : vector<16x32xf32>
    %592 = vector.extract_strided_slice %583 {offsets = [1, 0, 0], sizes = [1, 16, 8], strides = [1, 1, 1]} : vector<4x16x8xf32> to vector<1x16x8xf32>
    %593 = vector.shape_cast %592 : vector<1x16x8xf32> to vector<16x8xf32>
    %594 = arith.truncf %593 : vector<16x8xf32> to vector<16x8xbf16>
    %c5_300 = arith.constant 5 : index
    %c0_301 = arith.constant 0 : index
    %c0_302 = arith.constant 0 : index
    %595 = vector.load %arg18[%c5_300, %c0_301, %c0_302] : memref<8x8x32xbf16, #tpu.memory_space<vmem>>, vector<1x8x32xbf16>
    %596 = vector.shape_cast %595 : vector<1x8x32xbf16> to vector<8x32xbf16>
    %cst_303 = arith.constant dense<0.000000e+00> : vector<16x32xf32>
    %597 = tpu.matmul %594, %596, %cst_303 {dimension_numbers = #tpu.dot_dimension_numbers<[1], [0], [0], [1], [0, 0, 1, 1], [], []>} : vector<16x8xbf16>, vector<8x32xbf16>, vector<16x32xf32> -> vector<16x32xf32>
    %598 = arith.addf %591, %597 : vector<16x32xf32>
    %599 = vector.extract_strided_slice %583 {offsets = [2, 0, 0], sizes = [1, 16, 8], strides = [1, 1, 1]} : vector<4x16x8xf32> to vector<1x16x8xf32>
    %600 = vector.shape_cast %599 : vector<1x16x8xf32> to vector<16x8xf32>
    %601 = arith.truncf %600 : vector<16x8xf32> to vector<16x8xbf16>
    %c6_304 = arith.constant 6 : index
    %c0_305 = arith.constant 0 : index
    %c0_306 = arith.constant 0 : index
    %602 = vector.load %arg18[%c6_304, %c0_305, %c0_306] : memref<8x8x32xbf16, #tpu.memory_space<vmem>>, vector<1x8x32xbf16>
    %603 = vector.shape_cast %602 : vector<1x8x32xbf16> to vector<8x32xbf16>
    %cst_307 = arith.constant dense<0.000000e+00> : vector<16x32xf32>
    %604 = tpu.matmul %601, %603, %cst_307 {dimension_numbers = #tpu.dot_dimension_numbers<[1], [0], [0], [1], [0, 0, 1, 1], [], []>} : vector<16x8xbf16>, vector<8x32xbf16>, vector<16x32xf32> -> vector<16x32xf32>
    %605 = arith.addf %598, %604 : vector<16x32xf32>
    %606 = vector.extract_strided_slice %583 {offsets = [3, 0, 0], sizes = [1, 16, 8], strides = [1, 1, 1]} : vector<4x16x8xf32> to vector<1x16x8xf32>
    %607 = vector.shape_cast %606 : vector<1x16x8xf32> to vector<16x8xf32>
    %608 = arith.truncf %607 : vector<16x8xf32> to vector<16x8xbf16>
    %c7_308 = arith.constant 7 : index
    %c0_309 = arith.constant 0 : index
    %c0_310 = arith.constant 0 : index
    %609 = vector.load %arg18[%c7_308, %c0_309, %c0_310] : memref<8x8x32xbf16, #tpu.memory_space<vmem>>, vector<1x8x32xbf16>
    %610 = vector.shape_cast %609 : vector<1x8x32xbf16> to vector<8x32xbf16>
    %cst_311 = arith.constant dense<0.000000e+00> : vector<16x32xf32>
    %611 = tpu.matmul %608, %610, %cst_311 {dimension_numbers = #tpu.dot_dimension_numbers<[1], [0], [0], [1], [0, 0, 1, 1], [], []>} : vector<16x8xbf16>, vector<8x32xbf16>, vector<16x32xf32> -> vector<16x32xf32>
    %612 = arith.addf %605, %611 : vector<16x32xf32>
    %613 = arith.addf %472, %612 : vector<16x32xf32>
    %c11_312 = arith.constant 11 : index
    %c0_313 = arith.constant 0 : index
    %614 = vector.load %arg6[%c11_312, %c0_313] : memref<13x32xf32, #tpu.memory_space<vmem>>, vector<1x32xf32>
    %615 = arith.mulf %613, %613 : vector<16x32xf32>
    %cst_314 = arith.constant dense<0.000000e+00> : vector<16xf32>
    %616 = vector.multi_reduction <add>, %615, %cst_314 [1] : vector<16x32xf32> to vector<16xf32>
    %617 = vector.shape_cast %616 : vector<16xf32> to vector<16x1xf32>
    %cst_315 = arith.constant 3.200000e+01 : f32
    %618 = vector.broadcast %cst_315 : f32 to vector<16x1xf32>
    %619 = arith.divf %617, %618 : vector<16x1xf32>
    %cst_316 = arith.constant 9.99999997E-7 : f32
    %620 = vector.broadcast %cst_316 : f32 to vector<16x1xf32>
    %621 = arith.addf %619, %620 : vector<16x1xf32>
    %622 = math.rsqrt %621 : vector<16x1xf32>
    %623 = vector.broadcast %622 : vector<16x1xf32> to vector<16x32xf32>
    %624 = arith.mulf %613, %623 : vector<16x32xf32>
    %625 = vector.broadcast %614 : vector<1x32xf32> to vector<16x32xf32>
    %626 = arith.mulf %624, %625 : vector<16x32xf32>
    %627 = arith.truncf %626 : vector<16x32xf32> to vector<16x32xbf16>
    %c0_317 = arith.constant 0 : index
    %c0_318 = arith.constant 0 : index
    %628 = vector.load %arg19[%c0_317, %c0_318] : memref<32x64xbf16, #tpu.memory_space<vmem>>, vector<32x64xbf16>
    %cst_319 = arith.constant dense<0.000000e+00> : vector<16x64xf32>
    %629 = tpu.matmul %627, %628, %cst_319 {dimension_numbers = #tpu.dot_dimension_numbers<[1], [0], [0], [1], [0, 0, 1, 1], [], []>} : vector<16x32xbf16>, vector<32x64xbf16>, vector<16x64xf32> -> vector<16x64xf32>
    %cst_320 = arith.constant 0.000000e+00 : f32
    %630 = vector.broadcast %cst_320 : f32 to vector<16x64xf32>
    %631 = arith.maximumf %629, %630 : vector<16x64xf32>
    %632 = arith.truncf %631 : vector<16x64xf32> to vector<16x64xbf16>
    %c0_321 = arith.constant 0 : index
    %c0_322 = arith.constant 0 : index
    %633 = vector.load %arg20[%c0_321, %c0_322] : memref<64x32xbf16, #tpu.memory_space<vmem>>, vector<64x32xbf16>
    %cst_323 = arith.constant dense<0.000000e+00> : vector<16x32xf32>
    %634 = tpu.matmul %632, %633, %cst_323 {dimension_numbers = #tpu.dot_dimension_numbers<[1], [0], [0], [1], [0, 0, 1, 1], [], []>} : vector<16x64xbf16>, vector<64x32xbf16>, vector<16x32xf32> -> vector<16x32xf32>
    %635 = arith.addf %613, %634 : vector<16x32xf32>
    %c12_324 = arith.constant 12 : index
    %c0_325 = arith.constant 0 : index
    %636 = vector.load %arg6[%c12_324, %c0_325] : memref<13x32xf32, #tpu.memory_space<vmem>>, vector<1x32xf32>
    %637 = arith.mulf %635, %635 : vector<16x32xf32>
    %cst_326 = arith.constant dense<0.000000e+00> : vector<16xf32>
    %638 = vector.multi_reduction <add>, %637, %cst_326 [1] : vector<16x32xf32> to vector<16xf32>
    %639 = vector.shape_cast %638 : vector<16xf32> to vector<16x1xf32>
    %cst_327 = arith.constant 3.200000e+01 : f32
    %640 = vector.broadcast %cst_327 : f32 to vector<16x1xf32>
    %641 = arith.divf %639, %640 : vector<16x1xf32>
    %cst_328 = arith.constant 9.99999997E-7 : f32
    %642 = vector.broadcast %cst_328 : f32 to vector<16x1xf32>
    %643 = arith.addf %641, %642 : vector<16x1xf32>
    %644 = math.rsqrt %643 : vector<16x1xf32>
    %645 = vector.broadcast %644 : vector<16x1xf32> to vector<16x32xf32>
    %646 = arith.mulf %635, %645 : vector<16x32xf32>
    %647 = vector.broadcast %636 : vector<1x32xf32> to vector<16x32xf32>
    %648 = arith.mulf %646, %647 : vector<16x32xf32>
    %cst_329 = arith.constant 0.176776692 : f32
    %649 = vector.broadcast %cst_329 : f32 to vector<16x32xf32>
    %650 = arith.mulf %648, %649 : vector<16x32xf32>
    %651 = arith.truncf %650 : vector<16x32xf32> to vector<16x32xbf16>
    %cst_330 = arith.constant dense<0.000000e+00> : vector<16x128xf32>
    %652 = tpu.matmul %651, %319, %cst_330 {dimension_numbers = #tpu.dot_dimension_numbers<[1], [1], [0], [0], [0, 0, 1, 0], [], []>} : vector<16x32xbf16>, vector<128x32xbf16>, vector<16x128xf32> -> vector<16x128xf32>
    %c0_331 = arith.constant 0 : index
    %c0_332 = arith.constant 0 : index
    %653 = vector.load %arg22[%c0_331, %c0_332] : memref<16x128xf32, #tpu.memory_space<vmem>>, vector<16x128xf32>
    tpu.vector_store %arg22[%c0_331, %c0_332], %652 {strides = array<i32>} : memref<16x128xf32, #tpu.memory_space<vmem>>, vector<16x128xf32>,
    %c1_333 = arith.constant 1 : index
    %c0_334 = arith.constant 0 : index
    %c0_335 = arith.constant 0 : index
    %654 = vector.load %arg2[%c1_333, %c0_334, %c0_335] : memref<2x16x1xi32, #tpu.memory_space<vmem>>, vector<1x16x1xi32>
    %655 = vector.shape_cast %654 : vector<1x16x1xi32> to vector<16x1xi32>
    %656 = tpu.iota {dimensions = array<i32: 1>} : vector<16x128xi32>
    %c64_i32 = arith.constant 64 : i32
    %657 = vector.broadcast %c64_i32 : i32 to vector<16x128xi32>
    %658 = arith.cmpi slt, %656, %657 : vector<16x128xi32>
    %cst_336 = arith.constant -1.000000e+30 : f32
    %659 = vector.broadcast %cst_336 : f32 to vector<16x128xf32>
    %660 = arith.select %658, %652, %659 : vector<16x128xi1>, vector<16x128xf32>
    %cst_337 = arith.constant dense<0xFF800000> : vector<16xf32>
    %661 = vector.multi_reduction <maximumf>, %660, %cst_337 [1] : vector<16x128xf32> to vector<16xf32>
    %662 = vector.shape_cast %661 : vector<16xf32> to vector<16x1xf32>
    %663 = vector.broadcast %662 : vector<16x1xf32> to vector<16x128xf32>
    %664 = arith.subf %660, %663 : vector<16x128xf32>
    %665 = math.exp %664 : vector<16x128xf32>
    %cst_338 = arith.constant dense<0.000000e+00> : vector<16xf32>
    %666 = vector.multi_reduction <add>, %665, %cst_338 [1] : vector<16x128xf32> to vector<16xf32>
    %667 = vector.shape_cast %666 : vector<16xf32> to vector<16x1xf32>
    %668 = math.log %667 : vector<16x1xf32>
    %669 = arith.addf %668, %662 : vector<16x1xf32>
    %670 = vector.broadcast %655 : vector<16x1xi32> to vector<16x128xi32>
    %671 = arith.cmpi eq, %656, %670 : vector<16x128xi32>
    %cst_339 = arith.constant 0.000000e+00 : f32
    %672 = vector.broadcast %cst_339 : f32 to vector<16x128xf32>
    %673 = arith.select %671, %652, %672 : vector<16x128xi1>, vector<16x128xf32>
    %cst_340 = arith.constant dense<0.000000e+00> : vector<16xf32>
    %674 = vector.multi_reduction <add>, %673, %cst_340 [1] : vector<16x128xf32> to vector<16xf32>
    %675 = vector.shape_cast %674 : vector<16xf32> to vector<16x1xf32>
    %c-100_i32 = arith.constant -100 : i32
    %676 = vector.broadcast %c-100_i32 : i32 to vector<16x1xi32>
    %677 = arith.cmpi ne, %655, %676 : vector<16x1xi32>
    %678 = arith.extui %677 : vector<16x1xi1> to vector<16x1xi32>
    %679 = arith.sitofp %678 : vector<16x1xi32> to vector<16x1xf32>
    %680 = arith.subf %669, %675 : vector<16x1xf32>
    %681 = arith.mulf %680, %679 : vector<16x1xf32>
    %cst_341 = arith.constant dense<0.000000e+00> : vector<1xf32>
    %682 = vector.multi_reduction <add>, %681, %cst_341 [0] : vector<16x1xf32> to vector<1xf32>
    %683 = vector.shape_cast %682 : vector<1xf32> to vector<1x1xf32>
    %cst_342 = arith.constant dense<0.000000e+00> : vector<1xf32>
    %684 = vector.multi_reduction <add>, %679, %cst_342 [0] : vector<16x1xf32> to vector<1xf32>
    %685 = vector.shape_cast %684 : vector<1xf32> to vector<1x1xf32>
    %cst_343 = arith.constant 1.000000e+00 : f32
    %686 = vector.broadcast %cst_343 : f32 to vector<1x1xf32>
    %687 = arith.maximumf %685, %686 : vector<1x1xf32>
    %688 = arith.divf %683, %687 : vector<1x1xf32>
    %689 = vector.extract %688[0, 0] : f32 from vector<1x1xf32>
    %c0_344 = arith.constant 0 : index
    %c0_345 = arith.constant 0 : index
    %690 = memref.load %arg21[%c0_344, %c0_345] : memref<1x1xf32, #tpu.memory_space<smem>>
    memref.store %689, %arg21[%c0_344, %c0_345] : memref<1x1xf32, #tpu.memory_space<smem>>
    return
  }
}

</mosaic_0001>

<bundles_post_ra>
// kernel: encoder_decoder_forward.1
= control target key start
LH: loop header
LB: loop body
LE: loop exit
PB: predicated region body
PF: predicated region fallthrough
CT: control target
= control target key end

     0   :  { %s8331_s0 = inlined_call_operand.vmem [shape: s32[16,1], index: 0, kind: input, shape index: {}]   ;;  %s8332_s1 = inlined_call_operand.vmem [shape: s32[1,16], index: 1, kind: input, shape index: {}]   ;;  %s8333_s2 = inlined_call_operand.vmem [shape: s32[2,16,1], index: 2, kind: input, shape index: {}]   ;;  %s8334_s3 = inlined_call_operand.vmem [shape: s32[1,16], index: 3, kind: input, shape index: {}]   ;;  %s8335_s4 = inlined_call_operand.vmem [shape: bf16[96,32], index: 4, kind: input, shape index: {}]   ;;  %s8336_s5 = inlined_call_operand.vmem [shape: f32[8,32], index: 5, kind: input, shape index: {}]   ;;  %s8337_s6 = inlined_call_operand.vmem [shape: f32[13,32], index: 6, kind: input, shape index: {}]   ;;  %s8338_s7 = inlined_call_operand.vmem [shape: bf16[12,32,8], index: 7, kind: input, shape index: {}]   ;;  %s8339_s8 = inlined_call_operand.vmem [shape: f32[12,1,8], index: 8, kind: input, shape index: {}]   ;;  %s8340_s9 = inlined_call_operand.vmem [shape: bf16[4,8,32], index: 9, kind: input, shape index: {}]   ;;  %s8341_s10 = inlined_call_operand.vmem [shape: bf16[32,64], index: 10, kind: input, shape index: {}]   ;;  %s8342_s11 = inlined_call_operand.vmem [shape: f32[1,64], index: 11, kind: input, shape index: {}]   ;;  %s8343_s12 = inlined_call_operand.vmem [shape: bf16[64,32], index: 12, kind: input, shape index: {}]   ;;  %s8344_s13 = inlined_call_operand.vmem [shape: bf16[32,32], index: 13, kind: input, shape index: {}]   ;;  %s8345_s14 = inlined_call_operand.vmem [shape: bf16[32,256], index: 14, kind: input, shape index: {}]   ;;  %s8346_s15 = inlined_call_operand.vmem [shape: f32[1,256], index: 15, kind: input, shape index: {}]   ;;  %s8347_s16 = inlined_call_operand.vmem [shape: bf16[128,32], index: 16, kind: input, shape index: {}]   ;;  %s8348_s17 = inlined_call_operand.vmem [shape: bf16[24,32,8], index: 17, kind: input, shape index: {}]   ;;  %s8349_s18 = inlined_call_operand.vmem [shape: bf16[8,8,32], index: 18, kind: input, shape index: {}]   ;;  %s8350_s19 = inlined_call_operand.vmem [shape: bf16[32,64], index: 19, kind: input, shape index: {}]   ;;  %s8351_s20 = inlined_call_operand.vmem [shape: bf16[64,32], index: 20, kind: input, shape index: {}]   ;;  %s8352_s21 = inlined_call_operand.hbm [shape: f32[1,1], index: 21, kind: output, shape index: {0}]   ;;  %s8353_s22 = inlined_call_operand.vmem [shape: f32[16,128], index: 22, kind: output, shape index: {1}]  }
   0x1   :  { %8358 = sst [smem:[#allocation5_spill]] %s8331_s0 }
   0x2   :  { %8359 = sst [smem:[#allocation6_spill]] %s8332_s1 }
   0x3   :  { %8360 = sst [smem:[#allocation7_spill]] %s8333_s2 }
   0x4   :  { %8361 = sst [smem:[#allocation8_spill]] %s8334_s3 }
   0x5   :  { %8362 = sst [smem:[#allocation9_spill]] %s8335_s4 }
   0x6   :  { %8363 = sst [smem:[#allocation10_spill]] %s8336_s5 }
   0x7   :  { %8364 = sst [smem:[#allocation11_spill]] %s8337_s6 }
   0x8   :  { %s8365_s29 = sld [smem:[#allocation5_spill]]  ;;  %v6985_v1 = vmov 0   ;;  %v6986_v2 = vmov 0.0   ;;  %vm6987_vm0 = vmmov 0  }
   0x9   :  { %6704 = vset.pattern.permute.xlu0 %v6985_v1  ;;  %6085 = vmatprep.subr.bf16.mxu1 %v6986_v2  ;;  %s8366_s0 = sld [smem:[#allocation9_spill]] }
   0xa   :  { %6125 = vmatprep.subr.bf16.mxu0 %v6986_v2  ;;  %6705 = vset.pattern.permute.xlu1 %v6985_v1 }
   0xb   :  { %6097 = vmatprep.mubr.msk.bf16.mxu1 %vm6987_vm0, %v6986_v2  ;;  %6129 = vmatprep.mubr.msk.bf16.mxu0 %vm6987_vm0, %v6986_v2 }
   0xe   :  { %v74_v0 = vld [vmem:[%s8365_s29] sm:$0xff]  ;;  %v75_v4 = vld [vmem:[%s8365_s29 + $0x8] sm:$0xff] }
   0xf   :  { %v6721_v3 = vld [vmem:[%s8366_s0 + $0x28] sm:$0xff]   ;;  %77 = vperm.xlu0 %6704, %v74_v0   ;;  %v6722_v5 = vld [vmem:[%s8366_s0 + $0x20] sm:$0xff]   ;;  %v6723_v6 = vld [vmem:[%s8366_s0 + $0x18] sm:$0xff]  }
  0x10   :  { %6086 = vmatpush3.bf16.msra.mxu1 %v6721_v3  ;;  %v6724_v7 = vld [vmem:[%s8366_s0 + $0x10] sm:$0xff]   ;;  %v6725_v8 = vld [vmem:[%s8366_s0 + $0x8] sm:$0xff]   ;;  %v6726_v9 = vld [vmem:[%s8366_s0] sm:$0xff]  }
  0x11   :  { %6087 = vmatprep.subr.bf16.mxu1 %v6986_v2 }
  0x13   :  { %80 = vperm.xlu0 %6704, %v75_v4  }
  0x14   :  { %6088 = vmatpush3.bf16.msra.mxu1 %v6722_v5 }
  0x15   :  { %6089 = vmatprep.subr.bf16.mxu1 %v6986_v2 }
  0x18   :  { %6090 = vmatpush3.bf16.msra.mxu1 %v6723_v6 }
  0x19   :  { %6091 = vmatprep.subr.bf16.mxu1 %v6986_v2 }
  0x1c   :  { %6092 = vmatpush3.bf16.msra.mxu1 %v6724_v7 }
  0x1d   :  { %6093 = vmatprep.subr.bf16.mxu1 %v6986_v2 }
  0x20   :  { %6094 = vmatpush3.bf16.msra.mxu1 %v6725_v8 }
  0x21   :  { %6095 = vmatprep.subr.bf16.mxu1 %v6986_v2 }
  0x24   :  { %6096 = vmatpush3.bf16.msra.mxu1 %v6726_v9 }
  0x25   :  { %6101 = vmatprep.subr.bf16.mxu1 %v6986_v2 }
  0x26   :  { %28 = vsyncpa [#allocation3], 0  ;;  %v72_v10 = vlaneseq  ;;  %vm137_vm3 = vcmask 785408   ;;  %s8367_s0 = sld [smem:[#allocation10_spill]]  ;;  %vm187_vm4 = vcmask 261120   ;;  %v6727_v36 = vld [vmem:[%s8338_s7 + $0x8] sm:$0xff]  }
  0x27   :  { %v6728_v37 = vld [vmem:[%s8338_s7 + $0x38] sm:$0xff]   ;;  %v6729_v38 = vld [vmem:[%s8338_s7] sm:$0xff]   ;;  %v6730_v39 = vld [vmem:[%s8338_s7 + $0x30] sm:$0xff]   ;;  %s8368_s28 = sld [smem:[#allocation11_spill]]  ;;  %vm1059_vm5 = vcmask 64512   ;;  %vm1264_vm12 = vcmask 130048  }
  0x28   :  { %v7148_v11 = vand.u32 127, %v72_v10  ;;  %6126 = vmatpush3.bf16.msra.mxu0 %v6728_v37  ;;  %v6731_v56 = vld [vmem:[%s8338_s7 + $0x18] sm:$0xff]   ;;  %v6733_v59 = vld [vmem:[%s8338_s7 + $0x10] sm:$0xff]   ;;  %v6735_v61 = vld [vmem:[%s8338_s7 + $0x28] sm:$0xff]   ;;  %s8369_s25 = sld [smem:[#allocation6_spill]]  ;;  %vm1539_vm13 = vcmask 1043456  }
  0x29   :  { %6127 = vmatprep.subr.bf16.mxu0 %v6986_v2  ;;  %v6732_v57 = vld [vmem:[%s8338_s7 + $0x58] sm:$0xff]   ;;  %v6734_v60 = vld [vmem:[%s8338_s7 + $0x50] sm:$0xff]   ;;  %v6737_v63 = vld [vmem:[%s8338_s7 + $0x20] sm:$0xff]   ;;  %vm1907_vm14 = vcmask 523264   ;;  %s6992_s23 = smov 64  }
  0x2a   :  { %v6736_v62 = vld [vmem:[%s8338_s7 + $0x78] sm:$0xff]   ;;  %v6738_v0 = vld [vmem:[%s8338_s7 + $0x70] sm:$0xff]   ;;  %v6739_v3 = vld [vmem:[%s8338_s7 + $0x48] sm:$0xff]  }
  0x2b   :  { %v6740_v4 = vld [vmem:[%s8338_s7 + $0x98] sm:$0xff]   ;;  %v6741_v5 = vld [vmem:[%s8338_s7 + $0x40] sm:$0xff]   ;;  %v6742_v6 = vld [vmem:[%s8338_s7 + $0x90] sm:$0xff]  }
  0x2c   :  { %v182_v17 = vld [vmem:[%s8367_s0] sm:$0xff]  ;;  %6128 = vmatpush3.bf16.msra.mxu0 %v6730_v39  ;;  %v6743_v7 = vld [vmem:[%s8338_s7 + $0x68] sm:$0xff]   ;;  %v6744_v8 = vld [vmem:[%s8338_s7 + $0xb8] sm:$0xff]  }
  0x2d   :  { %6141 = vmatprep.subr.bf16.mxu0 %v6986_v2  ;;  %v5493_v48 = vld [vmem:[%s8368_s28] ss:$0 sm:$0xff]  ;;  %v5494_v52 = vld [vmem:[%s8368_s28 + $0x1] ss:$0 sm:$0xff] }
  0x2e   :  { %v6745_v9 = vld [vmem:[%s8338_s7 + $0x60] sm:$0xff]  }
  0x8a   :  { %v78_v12 = vpop.permute.xlu0 %77 }
  0x8b   :  { %vm82_vm1 = vcmp.eq.s32.totalorder %v7148_v11, %v78_v12  ;;  %v6746_v12 = vld [vmem:[%s8338_s7 + $0xb0] sm:$0xff]  }
  0x8c   :  { %v5484_v14 = vsel %vm82_vm1, 1.0, %v6986_v2 }
  0x8e   :  { %v81_v13 = vpop.permute.xlu0 %80 }
  0x8f   :  { %vm83_vm2 = vcmp.eq.s32.totalorder %v7148_v11, %v81_v13  ;;  %v6747_v13 = vld [vmem:[%s8338_s7 + $0x88] sm:$0xff]  }
  0x90   :  { %v5485_v15 = vsel %vm83_vm2, 1.0, %v6986_v2 }
  0x91   :  { %v88_v16 = vpack.c.bf16 %v5485_v15, %v5484_v14  ;;  %v6748_v14 = vld [vmem:[%s8338_s7 + $0x80] sm:$0xff]   ;;  %v6749_v15 = vld [vmem:[%s8338_s7 + $0xa8] sm:$0xff]  }
  0x93   :  { %6098 = vmatmul.mubr.msk.bf16.vlgmr.msra.gmra.mxu1 %vm137_vm3, %v88_v16  ;;  %v6750_v16 = vld [vmem:[%s8338_s7 + $0xa0] sm:$0xff]   ;;  %vm2017_vm3 = vcmask 1041409  }
  0x94   :  { %6105 = vmatprep.mubr.msk.bf16.mxu1 %vm6987_vm0, %v6986_v2  ;;  %6102 = vmatpush3.bf16.msra.mxu1 %v6727_v36 }
  0x95   :  { %6103 = vmatprep.subr.bf16.mxu1 %v6986_v2 }
  0x98   :  { %6104 = vmatpush3.bf16.msra.mxu1 %v6729_v38 }
  0x99   :  { %6109 = vmatprep.subr.bf16.mxu1 %v6986_v2 }
 0x153   :  { %v175_v18 = vpop.f32.mrf.mxu1 }
 0x154   :  { %v183_v19 = vadd.f32 %v182_v17, %v175_v18 }
 0x155   :  { %v6099_v20 = vpop.f32.mrf.mxu1 }
 0x156   :  { %v188_v21 = vsel %vm187_vm4, %v183_v19, 0.0 }
 0x157   :  { %189 = vadd.xlane.f32.xlu1 %v188_v21  ;;  %v178_v22 = vpop.f32.mrf.mxu1 }
 0x158   :  { %v184_v23 = vadd.f32 %v182_v17, %v178_v22 }
 0x159   :  { %v6100_v24 = vpop.f32.mrf.mxu1 }
 0x15a   :  { %v191_v25 = vsel %vm187_vm4, %v184_v23, 0.0 }
 0x15b   :  { %192 = vadd.xlane.f32.xlu1 %v191_v25 }
 0x1e0   :  { %v190_v26 = vpop.xlane.xlu1 %189 }
 0x1e1   :  { %v195_v27 = vmul.f32 0.03125, %v190_v26 }
 0x1e3   :  { %v197_v28 = vsub.f32 %v183_v19, %v195_v27  ;;  %v5540_v27 = vld [vmem:[%s8339_s8 + $0x5] ss:$0 sm:$0xff] }
 0x1e4   :  { %v193_v29 = vpop.xlane.xlu1 %192 }
 0x1e5   :  { %v196_v30 = vmul.f32 0.03125, %v193_v29  ;;  %v199_v31 = vmul.f32 %v197_v28, %v197_v28 }
 0x1e7   :  { %v198_v32 = vsub.f32 %v184_v23, %v196_v30  ;;  %v201_v33 = vsel %vm187_vm4, %v199_v31, 0.0 }
 0x1e8   :  { %202 = vadd.xlane.f32.xlu0 %v201_v33 }
 0x1e9   :  { %v200_v34 = vmul.f32 %v198_v32, %v198_v32 }
 0x1eb   :  { %v204_v35 = vsel %vm187_vm4, %v200_v34, 0.0 }
 0x1ec   :  { %205 = vadd.xlane.f32.xlu1 %v204_v35 }
 0x271   :  { %v203_v40 = vpop.xlane.xlu0 %202 }
 0x272   :  { %v207_v41 = vmul.f32 0.03125, %v203_v40  ;;  %v5504_v40 = vld [vmem:[%s8339_s8 + $0x1] ss:$0 sm:$0xff] }
 0x274   :  { %v209_v42 = vadd.f32 1e-12, %v207_v41  ;;  %v5558_v41 = vld [vmem:[%s8339_s8 + $0x7] ss:$0 sm:$0xff] }
 0x275   :  { %v206_v43 = vpop.xlane.xlu1 %205 }
 0x276   :  { %6827 = vrsqrt.f32 %v209_v42  ;;  %v208_v44 = vmul.f32 0.03125, %v206_v43 }
 0x278   :  { %v210_v45 = vadd.f32 1e-12, %v208_v44 }
 0x27a   :  { %6829 = vrsqrt.f32 %v210_v45 }
 0x283   :  { %v6828_v46 = vpop.eup %6827 }
 0x284   :  { %v213_v47 = vmul.f32 %v6828_v46, %v197_v28 }
 0x286   :  { %v219_v50 = vmul.f32 %v5493_v48, %v213_v47 }
 0x287   :  { %v6830_v49 = vpop.eup %6829 }
 0x288   :  { %v214_v51 = vmul.f32 %v6830_v49, %v198_v32  ;;  %v7185_v54 = vadd.f32 %v5494_v52, %v219_v50 }
 0x28a   :  { %v220_v53 = vmul.f32 %v5493_v48, %v214_v51 }
 0x28c   :  { %v7187_v55 = vadd.f32 %v5494_v52, %v220_v53 }
 0x28e   :  { %v7197_v58 = vpack.c.bf16 %v7187_v55, %v7185_v54 }
 0x290   :  { %6106 = vmatmul.mubr.msk.bf16.vlgmr.msra.gmra.mxu1 %vm187_vm4, %v7197_v58  ;;  %6130 = vmatmul.mubr.msk.bf16.vlgmr.msra.gmra.mxu0 %vm187_vm4, %v7197_v58 }
 0x291   :  { %6110 = vmatpush3.bf16.msra.mxu1 %v6731_v56  ;;  %6142 = vmatpush3.bf16.msra.mxu0 %v6732_v57 }
 0x292   :  { %6111 = vmatprep.subr.bf16.mxu1 %v6986_v2  ;;  %6143 = vmatprep.subr.bf16.mxu0 %v6986_v2 }
 0x293   :  { %6113 = vmatprep.mubr.msk.bf16.mxu1 %vm6987_vm0, %v6986_v2  ;;  %6145 = vmatprep.mubr.msk.bf16.mxu0 %vm6987_vm0, %v6986_v2 }
 0x295   :  { %6112 = vmatpush3.bf16.msra.mxu1 %v6733_v59  ;;  %6144 = vmatpush3.bf16.msra.mxu0 %v6734_v60  ;;  %v5531_v60 = vld [vmem:[%s8339_s8 + $0x4] ss:$0 sm:$0xff] }
 0x296   :  { %6117 = vmatprep.subr.bf16.mxu1 %v6986_v2  ;;  %6157 = vmatprep.subr.bf16.mxu0 %v6986_v2 }
 0x298   :  { %6114 = vmatmul.mubr.msk.bf16.vlgmr.msra.gmra.mxu1 %vm187_vm4, %v7197_v58  ;;  %6146 = vmatmul.mubr.msk.bf16.vlgmr.msra.gmra.mxu0 %vm187_vm4, %v7197_v58 }
 0x299   :  { %6118 = vmatpush3.bf16.msra.mxu1 %v6735_v61  ;;  %6158 = vmatpush3.bf16.msra.mxu0 %v6736_v62  ;;  %v5576_v61 = vld [vmem:[%s8339_s8 + $0x9] ss:$0 sm:$0xff] }
 0x29a   :  { %6119 = vmatprep.subr.bf16.mxu1 %v6986_v2  ;;  %6159 = vmatprep.subr.bf16.mxu0 %v6986_v2 }
 0x29b   :  { %6121 = vmatprep.mubr.msk.bf16.mxu1 %vm6987_vm0, %v6986_v2  ;;  %6161 = vmatprep.mubr.msk.bf16.mxu0 %vm6987_vm0, %v6986_v2 }
 0x29d   :  { %6120 = vmatpush3.bf16.msra.mxu1 %v6737_v63  ;;  %6160 = vmatpush3.bf16.msra.mxu0 %v6738_v0 }
 0x29e   :  { %6133 = vmatprep.subr.bf16.mxu1 %v6986_v2  ;;  %6173 = vmatprep.subr.bf16.mxu0 %v6986_v2 }
 0x2a0   :  { %6122 = vmatmul.mubr.msk.bf16.vlgmr.msra.gmra.mxu1 %vm187_vm4, %v7197_v58  ;;  %6162 = vmatmul.mubr.msk.bf16.vlgmr.msra.gmra.mxu0 %vm187_vm4, %v7197_v58 }
 0x2a1   :  { %6134 = vmatpush3.bf16.msra.mxu1 %v6739_v3  ;;  %6174 = vmatpush3.bf16.msra.mxu0 %v6740_v4 }
 0x2a2   :  { %6135 = vmatprep.subr.bf16.mxu1 %v6986_v2  ;;  %6175 = vmatprep.subr.bf16.mxu0 %v6986_v2 }
 0x2a3   :  { %6137 = vmatprep.mubr.msk.bf16.mxu1 %vm6987_vm0, %v6986_v2  ;;  %6177 = vmatprep.mubr.msk.bf16.mxu0 %vm6987_vm0, %v6986_v2 }
 0x2a5   :  { %6136 = vmatpush3.bf16.msra.mxu1 %v6741_v5  ;;  %6176 = vmatpush3.bf16.msra.mxu0 %v6742_v6 }
 0x2a6   :  { %6149 = vmatprep.subr.bf16.mxu1 %v6986_v2  ;;  %6189 = vmatprep.subr.bf16.mxu0 %v6986_v2 }
 0x2a8   :  { %6138 = vmatmul.mubr.msk.bf16.vlgmr.msra.gmra.mxu1 %vm187_vm4, %v7197_v58  ;;  %6178 = vmatmul.mubr.msk.bf16.vlgmr.msra.gmra.mxu0 %vm187_vm4, %v7197_v58 }
 0x2a9   :  { %6150 = vmatpush3.bf16.msra.mxu1 %v6743_v7  ;;  %6190 = vmatpush3.bf16.msra.mxu0 %v6744_v8 }
 0x2aa   :  { %6151 = vmatprep.subr.bf16.mxu1 %v6986_v2  ;;  %6191 = vmatprep.subr.bf16.mxu0 %v6986_v2 }
 0x2ab   :  { %6153 = vmatprep.mubr.msk.bf16.mxu1 %vm6987_vm0, %v6986_v2  ;;  %6193 = vmatprep.mubr.msk.bf16.mxu0 %vm6987_vm0, %v6986_v2 }
 0x2ad   :  { %6152 = vmatpush3.bf16.msra.mxu1 %v6745_v9  ;;  %6192 = vmatpush3.bf16.msra.mxu0 %v6746_v12 }
 0x2ae   :  { %6165 = vmatprep.subr.bf16.mxu1 %v6986_v2  ;;  %6203 = vmatprep.subr.bf16.mxu0 %v6986_v2 }
 0x2b0   :  { %6154 = vmatmul.mubr.msk.bf16.vlgmr.msra.gmra.mxu1 %vm187_vm4, %v7197_v58  ;;  %6194 = vmatmul.mubr.msk.bf16.vlgmr.msra.gmra.mxu0 %vm187_vm4, %v7197_v58 }
 0x2b1   :  { %6166 = vmatpush3.bf16.msra.mxu1 %v6747_v13  ;;  %6169 = vmatprep.mubr.msk.bf16.mxu1 %vm6987_vm0, %v6986_v2 }
 0x2b2   :  { %6167 = vmatprep.subr.bf16.mxu1 %v6986_v2  ;;  %6205 = vmatprep.mubr.msk.bf16.mxu0 %vm6987_vm0, %v6986_v2 }
 0x2b5   :  { %6168 = vmatpush3.bf16.msra.mxu1 %v6748_v14 }
 0x2b6   :  { %6181 = vmatprep.subr.bf16.mxu1 %v6986_v2 }
 0x2b8   :  { %6170 = vmatmul.mubr.msk.bf16.vlgmr.msra.gmra.mxu1 %vm187_vm4, %v7197_v58 }
 0x2b9   :  { %6182 = vmatpush3.bf16.msra.mxu1 %v6749_v15  ;;  %6185 = vmatprep.mubr.msk.bf16.mxu1 %vm6987_vm0, %v6986_v2 }
 0x2ba   :  { %6183 = vmatprep.subr.bf16.mxu1 %v6986_v2 }
 0x2bd   :  { %6184 = vmatpush3.bf16.msra.mxu1 %v6750_v16 }
 0x2be   :  { %6197 = vmatprep.subr.bf16.mxu1 %v6986_v2 }
 0x2c0   :  { %6186 = vmatmul.mubr.msk.bf16.vlgmr.msra.gmra.mxu1 %vm187_vm4, %v7197_v58  ;;  %v5522_v58 = vld [vmem:[%s8339_s8 + $0x3] ss:$0 sm:$0xff] }
 0x2c1   :  { %6199 = vmatprep.mubr.msk.bf16.mxu1 %vm6987_vm0, %v6986_v2 }
 0x350   :  { %v7321_v17 = vpop.f32.mrf.mxu1  ;;  %v515_v18 = vpop.f32.mrf.mxu0 }
 0x351   :  { %v516_v3 = vadd.f32 %v5522_v58, %v515_v18 }
 0x352   :  { %v6107_v19 = vpop.f32.mrf.mxu1  ;;  %v6131_v20 = vpop.f32.mrf.mxu0 }
 0x354   :  { %v7323_v21 = vpop.f32.mrf.mxu1  ;;  %v518_v22 = vpop.f32.mrf.mxu0 }
 0x355   :  { %v519_v0 = vadd.f32 %v5522_v58, %v518_v22  ;;  %v5495_v22 = vld [vmem:[%s8339_s8] ss:$0 sm:$0xff] }
 0x356   :  { %v6108_v23 = vpop.f32.mrf.mxu1  ;;  %v6132_v24 = vpop.f32.mrf.mxu0 }
 0x357   :  { %v522_v14 = vpack.c.bf16 %v519_v0, %v516_v3  ;;  %v5549_v23 = vld [vmem:[%s8339_s8 + $0x6] ss:$0 sm:$0xff]  ;;  %v5594_v24 = vld [vmem:[%s8339_s8 + $0xb] ss:$0 sm:$0xff]  ;;  %v7411_v0 = vcvt.s32.f32 %v7148_v11 }
 0x358   :  { %v381_v25 = vpop.f32.mrf.mxu1  ;;  %v649_v26 = vpop.f32.mrf.mxu0 }
 0x359   :  { %v650_v32 = vadd.f32 %v5540_v27, %v649_v26  ;;  %v382_v47 = vadd.f32 %v5504_v40, %v381_v25 }
 0x35a   :  { %v6115_v28 = vpop.f32.mrf.mxu1  ;;  %v6147_v29 = vpop.f32.mrf.mxu0 }
 0x35b   :  { %v315_v28 = vadd.f32 %v5495_v22, %v7321_v17 }
 0x35c   :  { %v384_v30 = vpop.f32.mrf.mxu1  ;;  %v652_v31 = vpop.f32.mrf.mxu0 }
 0x35d   :  { %v653_v33 = vadd.f32 %v5540_v27, %v652_v31  ;;  %v385_v44 = vadd.f32 %v5504_v40, %v384_v30  ;;  %v318_v27 = vadd.f32 %v5495_v22, %v7323_v21 }
 0x35e   :  { %v6116_v34 = vpop.f32.mrf.mxu1  ;;  %v6148_v35 = vpop.f32.mrf.mxu0 }
 0x35f   :  { %v656_v36 = vpack.c.bf16 %v653_v33, %v650_v32  ;;  %v388_v52 = vpack.c.bf16 %v385_v44, %v382_v47  ;;  %v321_v21 = vpack.c.bf16 %v318_v27, %v315_v28 }
 0x360   :  { %v7328_v37 = vpop.f32.mrf.mxu1  ;;  %v783_v38 = vpop.f32.mrf.mxu0 }
 0x361   :  { %v1111_v39 = vsel %vm1059_vm5, %v656_v36, 0  ;;  %v784_v48 = vadd.f32 %v5558_v41, %v783_v38 }
 0x362   :  { %v6123_v42 = vpop.f32.mrf.mxu1  ;;  %v6163_v43 = vpop.f32.mrf.mxu0  ;;  %6204 = vmatpush3.bf16.xpose.msra.mxu0 %v1111_v39 }
 0x363   :  { %6215 = vmatprep.subr.bf16.mxu0 %v6986_v2  ;;  %v5567_v42 = vld [vmem:[%s8339_s8 + $0x8] ss:$0 sm:$0xff] }
 0x364   :  { %v7338_v45 = vpop.f32.mrf.mxu1  ;;  %v786_v46 = vpop.f32.mrf.mxu0 }
 0x365   :  { %v787_v49 = vadd.f32 %v5558_v41, %v786_v46  ;;  %v5513_v41 = vld [vmem:[%s8339_s8 + $0x2] ss:$0 sm:$0xff] }
 0x366   :  { %v6124_v50 = vpop.f32.mrf.mxu1  ;;  %v6164_v51 = vpop.f32.mrf.mxu0  ;;  %v452_v44 = vadd.f32 %v5513_v41, %v7338_v45  ;;  %v449_v47 = vadd.f32 %v5513_v41, %v7328_v37 }
 0x367   :  { %v790_v53 = vpack.c.bf16 %v787_v49, %v784_v48 }
 0x368   :  { %v582_v56 = vpop.f32.mrf.mxu1  ;;  %v917_v57 = vpop.f32.mrf.mxu0  ;;  %v455_v51 = vpack.c.bf16 %v452_v44, %v449_v47 }
 0x369   :  { %6206 = vmatmul.mubr.msk.bf16.vlgmr.msra.gmra.mxu0 %vm1059_vm5, %v388_v52  ;;  %v1205_v59 = vsel %vm1059_vm5, %v790_v53, 0  ;;  %v583_v6 = vadd.f32 %v5531_v60, %v582_v56  ;;  %v918_v7 = vadd.f32 %v5576_v61, %v917_v57  ;;  %v5585_v56 = vld [vmem:[%s8339_s8 + $0xa] ss:$0 sm:$0xff] }
 0x36a   :  { %v6139_v62 = vpop.f32.mrf.mxu1  ;;  %v6179_v63 = vpop.f32.mrf.mxu0  ;;  %6216 = vmatpush3.bf16.xpose.msra.mxu0 %v1205_v59  ;;  %6217 = vmatprep.mubr.msk.bf16.mxu0 %vm6987_vm0, %v6986_v2 }
 0x36b   :  { %6227 = vmatprep.subr.bf16.mxu0 %v6986_v2  ;;  %v241_v62 = vld [vmem:[%s8369_s25] sm:$0x1]  ;;  %s8375_s25 = sld [smem:[#allocation8_spill]] }
 0x36c   :  { %v585_v4 = vpop.f32.mrf.mxu1  ;;  %v920_v5 = vpop.f32.mrf.mxu0  ;;  %vm242_vm6 = vcmp.gt.s32.totalorder %v241_v62, 0 }
 0x36d   :  { %v586_v8 = vadd.f32 %v5531_v60, %v585_v4  ;;  %v921_v9 = vadd.f32 %v5576_v61, %v920_v5  ;;  %v7404_v61 = vshrl.u32 %v72_v10, 7  ;;  %v237_v5 = vmul.f32 0.125, %v7411_v0 }
 0x36e   :  { %v6140_v12 = vpop.f32.mrf.mxu1  ;;  %v6180_v13 = vpop.f32.mrf.mxu0 }
 0x36f   :  { %v589_v15 = vpack.c.bf16 %v586_v8, %v583_v6  ;;  %v924_v16 = vpack.c.bf16 %v921_v9, %v918_v7  ;;  %v230_v63 = vcvt.s32.f32 %v7404_v61  ;;  %v7414_v3 = vadd.s32 8, %v7404_v61 }
 0x370   :  { %v716_v19 = vpop.f32.mrf.mxu1  ;;  %v1051_v20 = vpop.f32.mrf.mxu0  ;;  %v7420_v10 = vsub.s32 0, %v7404_v61  ;;  %v243_v7 = vsel %vm242_vm6, 1, %v6985_v1  ;;  %v238_v9 = vfloor.f32 %v237_v5 }
 0x371   :  { %6218 = vmatmul.mubr.msk.bf16.vlgmr.msra.gmra.mxu0 %vm1059_vm5, %v522_v14  ;;  %v1064_v18 = vsel %vm1059_vm5, %v589_v15, 0  ;;  %v717_v31 = vadd.f32 %v5549_v23, %v716_v19  ;;  %v7371_v32 = vadd.f32 %v5594_v24, %v1051_v20  ;;  %v7416_v4 = vmul.f32 0.125, %v230_v63 }
 0x372   :  { %v6155_v25 = vpop.f32.mrf.mxu1  ;;  %v6195_v26 = vpop.f32.mrf.mxu0  ;;  %6198 = vmatpush3.bf16.xpose.msra.mxu1 %v1064_v18  ;;  %6228 = vmatpush3.bf16.msra.mxu0 %v924_v16  ;;  %v231_v6 = vcvt.s32.f32 %v7414_v3  ;;  %v247_v12 = vrot.slane %v243_v7, %v7420_v10  ;;  %v6988_v20 = vmov -1e+09  }
 0x373   :  { %6209 = vmatprep.subr.bf16.mxu1 %v6986_v2  ;;  %6229 = vmatprep.mubr.msk.bf16.mxu0 %vm6987_vm0, %v6986_v2  ;;  %v234_v8 = vfloor.f32 %v7416_v4 }
 0x374   :  { %v719_v29 = vpop.f32.mrf.mxu1  ;;  %v1054_v30 = vpop.f32.mrf.mxu0  ;;  %6239 = vmatprep.subr.bf16.mxu0 %v6986_v2  ;;  %v7426_v13 = vmul.f32 0.125, %v231_v6  ;;  %vm248_vm8 = vcmp.eq.s32.totalorder %v247_v12, 1 }
 0x375   :  { %v720_v33 = vadd.f32 %v5549_v23, %v719_v29  ;;  %v7373_v34 = vadd.f32 %v5594_v24, %v1054_v30  ;;  %vm7430_vm7 = vcmp.eq.f32.partialorder %v234_v8, %v238_v9 }
 0x376   :  { %v6156_v35 = vpop.f32.mrf.mxu1  ;;  %v6196_v36 = vpop.f32.mrf.mxu0  ;;  %v235_v15 = vfloor.f32 %v7426_v13  ;;  %vm249_vm9 = vmand %vm7430_vm7, %vm248_vm8 }
 0x377   :  { %v723_v38 = vpack.c.bf16 %v720_v33, %v717_v31  ;;  %v1058_v39 = vpack.c.bf16 %v7373_v34, %v7371_v32  ;;  %v251_v22 = vsel %vm249_vm9, 0.0, %v6988_v20  ;;  %v1535_v32 = vld [vmem:[%s8340_s9] sm:$0xf] }
 0x378   :  { %v850_v40 = vpop.f32.mrf.mxu1  ;;  %vm7439_vm10 = vcmp.eq.f32.partialorder %v235_v15, %v238_v9  ;;  %v1541_v34 = vsel %vm1539_vm13, %v1535_v32, 0 }
 0x379   :  { %6200 = vmatmul.mubr.msk.bf16.vlgmr.msra.gmra.mxu1 %vm1059_vm5, %v321_v21  ;;  %v1158_v17 = vsel %vm1059_vm5, %v723_v38, 0  ;;  %v851_v48 = vadd.f32 %v5567_v42, %v850_v40  ;;  %vm250_vm11 = vmand %vm7439_vm10, %vm248_vm8  ;;  %vm2312_vm8 = vcmp.ge.s32.totalorder %v7404_v61, %v7148_v11 }
 0x37a   :  { %v6171_v43 = vpop.f32.mrf.mxu1  ;;  %6210 = vmatpush3.bf16.xpose.msra.mxu1 %v1158_v17  ;;  %6211 = vmatprep.mubr.msk.bf16.mxu1 %vm6987_vm0, %v6986_v2  ;;  %v252_v26 = vsel %vm250_vm11, 0.0, %v6988_v20  ;;  %vm2314_vm9 = vmand %vm7430_vm7, %vm2312_vm8  ;;  %vm2183_vm7 = vcmask 1041408  }
 0x37b   :  { %6221 = vmatprep.subr.bf16.mxu1 %v6986_v2 }
 0x37c   :  { %v853_v46 = vpop.f32.mrf.mxu1 }
 0x37d   :  { %v854_v49 = vadd.f32 %v5567_v42, %v853_v46 }
 0x37e   :  { %v6172_v50 = vpop.f32.mrf.mxu1 }
 0x37f   :  { %v857_v52 = vpack.c.bf16 %v854_v49, %v851_v48 }
 0x380   :  { %v984_v53 = vpop.f32.mrf.mxu1 }
 0x381   :  { %6212 = vmatmul.mubr.msk.bf16.vlgmr.msra.gmra.mxu1 %vm1059_vm5, %v455_v51  ;;  %v7397_v45 = vadd.f32 %v5585_v56, %v984_v53 }
 0x382   :  { %v6187_v57 = vpop.f32.mrf.mxu1  ;;  %6222 = vmatpush3.bf16.msra.mxu1 %v857_v52  ;;  %6223 = vmatprep.mubr.msk.bf16.mxu1 %vm6987_vm0, %v6986_v2 }
 0x383   :  { %6233 = vmatprep.subr.bf16.mxu1 %v6986_v2 }
 0x384   :  { %v987_v37 = vpop.f32.mrf.mxu1 }
 0x385   :  { %v7399_v58 = vadd.f32 %v5585_v56, %v987_v37 }
 0x386   :  { %v6188_v59 = vpop.f32.mrf.mxu1 }
 0x387   :  { %v991_v60 = vpack.c.bf16 %v7399_v58, %v7397_v45 }
 0x429   :  { %v1147_v19 = vpop.f32.mrf.mxu0 }
 0x42a   :  { %v1250_v18 = vmul.f32 0.35355338, %v1147_v19 }
 0x42b   :  { %v6207_v23 = vpop.f32.mrf.mxu0 }
 0x42c   :  { %v1258_v24 = vadd.f32 %v1250_v18, %v251_v22 }
 0x42d   :  { %v1150_v25 = vpop.f32.mrf.mxu0 }
 0x42e   :  { %v1251_v27 = vmul.f32 0.35355338, %v1150_v25  ;;  %v1271_v28 = vsel %vm1264_vm12, %v1258_v24, -inf }
 0x42f   :  { %1272 = vmax.xlane.f32.xlu1 %v1271_v28  ;;  %v6208_v29 = vpop.f32.mrf.mxu0 }
 0x430   :  { %v1259_v30 = vadd.f32 %v1251_v27, %v252_v26 }
 0x431   :  { %v1241_v31 = vpop.f32.mrf.mxu0 }
 0x432   :  { %v1274_v33 = vsel %vm1264_vm12, %v1259_v30, -inf  ;;  %v1254_v59 = vmul.f32 0.35355338, %v1241_v31 }
 0x433   :  { %1275 = vmax.xlane.f32.xlu1 %v1274_v33  ;;  %v6219_v35 = vpop.f32.mrf.mxu0 }
 0x434   :  { %v1262_v9 = vadd.f32 %v1254_v59, %v251_v22 }
 0x435   :  { %v1244_v36 = vpop.f32.mrf.mxu0 }
 0x436   :  { %v1255_v21 = vmul.f32 0.35355338, %v1244_v36  ;;  %v1283_v12 = vsel %vm1264_vm12, %v1262_v9, -inf }
 0x437   :  { %v6220_v38 = vpop.f32.mrf.mxu0 }
 0x438   :  { %v1263_v40 = vadd.f32 %v1255_v21, %v252_v26 }
 0x439   :  { %v1100_v17 = vpop.f32.mrf.mxu1 }
 0x43a   :  { %v1248_v41 = vmul.f32 0.35355338, %v1100_v17  ;;  %v1286_v42 = vsel %vm1264_vm12, %v1263_v40, -inf }
 0x43b   :  { %1287 = vmax.xlane.f32.xlu0 %v1286_v42  ;;  %v6201_v43 = vpop.f32.mrf.mxu1 }
 0x43c   :  { %v1256_v44 = vadd.f32 %v1248_v41, %v251_v22 }
 0x43d   :  { %v1103_v46 = vpop.f32.mrf.mxu1 }
 0x43e   :  { %v1249_v47 = vmul.f32 0.35355338, %v1103_v46  ;;  %v1265_v48 = vsel %vm1264_vm12, %v1256_v44, -inf }
 0x43f   :  { %1266 = vmax.xlane.f32.xlu1 %v1265_v48  ;;  %v6202_v49 = vpop.f32.mrf.mxu1 }
 0x440   :  { %v1257_v50 = vadd.f32 %v1249_v47, %v252_v26 }
 0x441   :  { %v1194_v51 = vpop.f32.mrf.mxu1 }
 0x442   :  { %v1252_v52 = vmul.f32 0.35355338, %v1194_v51  ;;  %v1268_v53 = vsel %vm1264_vm12, %v1257_v50, -inf }
 0x443   :  { %1269 = vmax.xlane.f32.xlu1 %v1268_v53  ;;  %v6213_v56 = vpop.f32.mrf.mxu1 }
 0x444   :  { %v1260_v57 = vadd.f32 %v1252_v52, %v251_v22 }
 0x445   :  { %v1197_v37 = vpop.f32.mrf.mxu1 }
 0x446   :  { %v1253_v62 = vmul.f32 0.35355338, %v1197_v37  ;;  %v1277_v63 = vsel %vm1264_vm12, %v1260_v57, -inf }
 0x447   :  { %1278 = vmax.xlane.f32.xlu1 %v1277_v63  ;;  %v6214_v5 = vpop.f32.mrf.mxu1 }
 0x448   :  { %v1261_v6 = vadd.f32 %v1253_v62, %v252_v26 }
 0x44a   :  { %v1280_v7 = vsel %vm1264_vm12, %v1261_v6, -inf }
 0x44b   :  { %1281 = vmax.xlane.f32.xlu1 %v1280_v7 }
 0x44f   :  { %1284 = vmax.xlane.f32.xlu1 %v1283_v12 }
 0x4b8   :  { %v1273_v19 = vpop.xlane.xlu1 %1272 }
 0x4b9   :  { %v1291_v23 = vsub.f32 %v1258_v24, %v1273_v19 }
 0x4bb   :  { %v1301_v28 = vmul.f32 1.442695, %v1291_v23 }
 0x4bc   :  { %v1276_v18 = vpop.xlane.xlu1 %1275 }
 0x4bd   :  { %v1292_v29 = vsub.f32 %v1259_v30, %v1276_v18 }
 0x4bf   :  { %v1303_v26 = vmul.f32 1.442695, %v1292_v29 }
 0x4c4   :  { %v1288_v21 = vpop.xlane.xlu0 %1287 }
 0x4c5   :  { %v1296_v17 = vsub.f32 %v1263_v40, %v1288_v21 }
 0x4c7   :  { %v1311_v43 = vmul.f32 1.442695, %v1296_v17 }
 0x4c8   :  { %v1267_v25 = vpop.xlane.xlu1 %1266 }
 0x4c9   :  { %v1289_v27 = vsub.f32 %v1256_v44, %v1267_v25 }
 0x4cb   :  { %v1297_v31 = vmul.f32 1.442695, %v1289_v27 }
 0x4cc   :  { %v1270_v33 = vpop.xlane.xlu1 %1269 }
 0x4cd   :  { %6831 = vpow2.f32 %v1297_v31  ;;  %v1290_v35 = vsub.f32 %v1257_v50, %v1270_v33 }
 0x4ce   :  { %6833 = vpow2.f32 %v1301_v28 }
 0x4cf   :  { %v1299_v36 = vmul.f32 1.442695, %v1290_v35 }
 0x4d0   :  { %v1279_v22 = vpop.xlane.xlu1 %1278 }
 0x4d1   :  { %6835 = vpow2.f32 %v1299_v36  ;;  %v1293_v38 = vsub.f32 %v1260_v57, %v1279_v22 }
 0x4d2   :  { %6837 = vpow2.f32 %v1303_v26 }
 0x4d3   :  { %v1305_v41 = vmul.f32 1.442695, %v1293_v38 }
 0x4d4   :  { %v1282_v42 = vpop.xlane.xlu1 %1281 }
 0x4d5   :  { %6839 = vpow2.f32 %v1305_v41  ;;  %v1294_v24 = vsub.f32 %v1261_v6, %v1282_v42 }
 0x4d7   :  { %v1307_v44 = vmul.f32 1.442695, %v1294_v24 }
 0x4d8   :  { %v1285_v30 = vpop.xlane.xlu1 %1284 }
 0x4d9   :  { %6841 = vpow2.f32 %v1307_v44  ;;  %v1295_v46 = vsub.f32 %v1262_v9, %v1285_v30 }
 0x4da   :  { %v6832_v47 = vpop.eup %6831  ;;  %6843 = vpow2.f32 %v1311_v43 }
 0x4db   :  { %v1309_v48 = vmul.f32 1.442695, %v1295_v46  ;;  %v1313_v49 = vsel %vm1264_vm12, %v6832_v47, 0.0  ;;  %v6834_v50 = vpop.eup %6833 }
 0x4dc   :  { %1314 = vadd.xlane.f32.xlu1 %v1313_v49  ;;  %v1319_v52 = vsel %vm1264_vm12, %v6834_v50, 0.0 }
 0x4dd   :  { %6845 = vpow2.f32 %v1309_v48 }
 0x4de   :  { %v6836_v51 = vpop.eup %6835 }
 0x4df   :  { %v1316_v40 = vsel %vm1264_vm12, %v6836_v51, 0.0  ;;  %v6838_v53 = vpop.eup %6837 }
 0x4e0   :  { %1317 = vadd.xlane.f32.xlu0 %v1316_v40  ;;  %1320 = vadd.xlane.f32.xlu1 %v1319_v52  ;;  %v1322_v57 = vsel %vm1264_vm12, %v6838_v53, 0.0 }
 0x4e2   :  { %v6840_v56 = vpop.eup %6839 }
 0x4e3   :  { %v1325_v37 = vsel %vm1264_vm12, %v6840_v56, 0.0 }
 0x4e4   :  { %1323 = vadd.xlane.f32.xlu0 %v1322_v57  ;;  %1326 = vadd.xlane.f32.xlu1 %v1325_v37  ;;  %v5612_v37 = vld [vmem:[%s8340_s9 + $0xc] sm:$0xf] }
 0x4e6   :  { %v6842_v59 = vpop.eup %6841 }
 0x4e7   :  { %v1328_v62 = vsel %vm1264_vm12, %v6842_v59, 0.0  ;;  %v6844_v63 = vpop.eup %6843 }
 0x4e8   :  { %1329 = vadd.xlane.f32.xlu0 %v1328_v62  ;;  %v1334_v6 = vsel %vm1264_vm12, %v6844_v63, 0.0 }
 0x4ea   :  { %v6846_v5 = vpop.eup %6845 }
 0x4eb   :  { %v1331_v7 = vsel %vm1264_vm12, %v6846_v5, 0.0 }
 0x4ec   :  { %1335 = vadd.xlane.f32.xlu0 %v1334_v6  ;;  %1332 = vadd.xlane.f32.xlu1 %v1331_v7 }
 0x565   :  { %v1315_v9 = vpop.xlane.xlu1 %1314 }
 0x566   :  { %6847 = vrcp.f32 %v1315_v9 }
 0x569   :  { %v1318_v12 = vpop.xlane.xlu0 %1317  ;;  %v1321_v19 = vpop.xlane.xlu1 %1320 }
 0x56a   :  { %6849 = vrcp.f32 %v1318_v12 }
 0x56b   :  { %6851 = vrcp.f32 %v1321_v19 }
 0x56d   :  { %v1324_v18 = vpop.xlane.xlu0 %1323  ;;  %v1327_v23 = vpop.xlane.xlu1 %1326 }
 0x56e   :  { %6853 = vrcp.f32 %v1324_v18 }
 0x56f   :  { %6855 = vrcp.f32 %v1327_v23 }
 0x571   :  { %v1330_v25 = vpop.xlane.xlu0 %1329 }
 0x572   :  { %6857 = vrcp.f32 %v1330_v25 }
 0x573   :  { %v6848_v27 = vpop.eup %6847 }
 0x574   :  { %v1345_v33 = vmul.f32 %v6848_v27, %v6832_v47 }
 0x575   :  { %v1336_v28 = vpop.xlane.xlu0 %1335  ;;  %v1333_v29 = vpop.xlane.xlu1 %1332 }
 0x576   :  { %6859 = vrcp.f32 %v1336_v28 }
 0x577   :  { %v6850_v31 = vpop.eup %6849  ;;  %6861 = vrcp.f32 %v1333_v29 }
 0x578   :  { %v1346_v35 = vmul.f32 %v6850_v31, %v6836_v51  ;;  %v6852_v26 = vpop.eup %6851 }
 0x579   :  { %v1347_v22 = vmul.f32 %v6852_v26, %v6834_v50  ;;  %v5610_v50 = vld [vmem:[%s8340_s9 + $0x8] sm:$0xf]  ;;  %v5607_v26 = vld [vmem:[%s8368_s28 + $0x2] ss:$0 sm:$0xff] }
 0x57a   :  { %v1353_v36 = vpack.c.bf16 %v1346_v35, %v1345_v33 }
 0x57b   :  { %v6854_v21 = vpop.eup %6853 }
 0x57c   :  { %6224 = vmatmul.mubr.msk.bf16.vlgmr.msra.gmra.mxu1 %vm1264_vm12, %v1353_v36  ;;  %v1348_v38 = vmul.f32 %v6854_v21, %v6838_v53  ;;  %v6856_v17 = vpop.eup %6855  ;;  %v1649_v53 = vsel %vm1539_vm13, %v5610_v50, 0 }
 0x57d   :  { %6234 = vmatpush3.bf16.msra.mxu1 %v991_v60  ;;  %6235 = vmatprep.mubr.msk.bf16.mxu1 %vm6987_vm0, %v6986_v2  ;;  %v1349_v24 = vmul.f32 %v6856_v17, %v6840_v56 }
 0x57e   :  { %v1354_v41 = vpack.c.bf16 %v1348_v38, %v1347_v22  ;;  %6245 = vmatprep.subr.bf16.mxu1 %v6986_v2 }
 0x57f   :  { %v6858_v42 = vpop.eup %6857 }
 0x580   :  { %6230 = vmatmul.mubr.msk.bf16.vlgmr.msra.gmra.mxu0 %vm1264_vm12, %v1354_v41  ;;  %v1350_v43 = vmul.f32 %v6858_v42, %v6842_v59 }
 0x581   :  { %6240 = vmatpush3.bf16.msra.mxu0 %v1058_v39  ;;  %6241 = vmatprep.mubr.msk.bf16.mxu0 %vm6987_vm0, %v6986_v2  ;;  %v5608_v39 = vld [vmem:[%s8340_s9 + $0x4] sm:$0xf] }
 0x582   :  { %v1355_v45 = vpack.c.bf16 %v1350_v43, %v1349_v24  ;;  %6251 = vmatprep.subr.bf16.mxu0 %v6986_v2  ;;  %v1597_v47 = vsel %vm1539_vm13, %v5608_v39, 0 }
 0x583   :  { %v6860_v58 = vpop.eup %6859 }
 0x584   :  { %v6862_v60 = vpop.eup %6861  ;;  %6236 = vmatmul.mubr.msk.bf16.vlgmr.msra.gmra.mxu1 %vm1264_vm12, %v1355_v45  ;;  %v1352_v44 = vmul.f32 %v6860_v58, %v6844_v63 }
 0x585   :  { %v1351_v30 = vmul.f32 %v6862_v60, %v6846_v5  ;;  %6247 = vmatprep.mubr.msk.bf16.mxu1 %vm6987_vm0, %v6986_v2  ;;  %6246 = vmatpush3.bf16.msra.mxu1 %v1541_v34  ;;  %v1701_v5 = vsel %vm1539_vm13, %v5612_v37, 0 }
 0x586   :  { %6257 = vmatprep.subr.bf16.mxu1 %v6986_v2 }
 0x587   :  { %v1356_v46 = vpack.c.bf16 %v1352_v44, %v1351_v30 }
 0x589   :  { %6242 = vmatmul.mubr.msk.bf16.vlgmr.msra.gmra.mxu0 %vm1264_vm12, %v1356_v46 }
 0x58a   :  { %6253 = vmatprep.mubr.msk.bf16.mxu0 %vm6987_vm0, %v6986_v2  ;;  %6252 = vmatpush3.bf16.msra.mxu0 %v1597_v47 }
 0x58b   :  { %6263 = vmatprep.subr.bf16.mxu0 %v6986_v2 }
 0x63c   :  { %v1394_v48 = vpop.f32.mrf.mxu1 }
 0x63e   :  { %v6225_v49 = vpop.f32.mrf.mxu1 }
 0x640   :  { %v1397_v51 = vpop.f32.mrf.mxu1  ;;  %v1438_v40 = vpop.f32.mrf.mxu0 }
 0x641   :  { %v1534_v52 = vpack.c.bf16 %v1397_v51, %v1394_v48 }
 0x642   :  { %v6226_v56 = vpop.f32.mrf.mxu1  ;;  %v6231_v57 = vpop.f32.mrf.mxu0 }
 0x643   :  { %6248 = vmatmul.mubr.msk.bf16.vlgmr.msra.gmra.mxu1 %vm1059_vm5, %v1534_v52 }
 0x644   :  { %v1441_v59 = vpop.f32.mrf.mxu0  ;;  %v1482_v62 = vpop.f32.mrf.mxu1  ;;  %6258 = vmatpush3.bf16.msra.mxu1 %v1649_v53  ;;  %6259 = vmatprep.mubr.msk.bf16.mxu1 %vm6987_vm0, %v6986_v2 }
 0x645   :  { %v1590_v63 = vpack.c.bf16 %v1441_v59, %v1438_v40  ;;  %6269 = vmatprep.subr.bf16.mxu1 %v6986_v2 }
 0x646   :  { %v6232_v6 = vpop.f32.mrf.mxu0  ;;  %v6237_v7 = vpop.f32.mrf.mxu1 }
 0x647   :  { %6254 = vmatmul.mubr.msk.bf16.vlgmr.msra.gmra.mxu0 %vm1059_vm5, %v1590_v63  ;;  %v6752_v6 = vld [vmem:[%s8341_s10] sm:$0xff]  }
 0x648   :  { %v1485_v9 = vpop.f32.mrf.mxu1  ;;  %6264 = vmatpush3.bf16.msra.mxu0 %v1701_v5  ;;  %6265 = vmatprep.mubr.msk.bf16.mxu0 %vm6987_vm0, %v6986_v2 }
 0x649   :  { %v1642_v12 = vpack.c.bf16 %v1485_v9, %v1482_v62  ;;  %v1526_v19 = vpop.f32.mrf.mxu0  ;;  %6277 = vmatprep.subr.bf16.mxu0 %v6986_v2 }
 0x64a   :  { %v6238_v18 = vpop.f32.mrf.mxu1 }
 0x64b   :  { %v6243_v23 = vpop.f32.mrf.mxu0  ;;  %6260 = vmatmul.mubr.msk.bf16.vlgmr.msra.gmra.mxu1 %vm1059_vm5, %v1642_v12 }
 0x64c   :  { %6273 = vmatprep.mubr.msk.bf16.mxu1 %vm6987_vm0, %v6986_v2 }
 0x64d   :  { %v1529_v25 = vpop.f32.mrf.mxu0 }
 0x64e   :  { %v1694_v27 = vpack.c.bf16 %v1529_v25, %v1526_v19 }
 0x64f   :  { %v6244_v28 = vpop.f32.mrf.mxu0 }
 0x650   :  { %6266 = vmatmul.mubr.msk.bf16.vlgmr.msra.gmra.mxu0 %vm1059_vm5, %v1694_v27  ;;  %v5614_v28 = vld [vmem:[%s8368_s28 + $0x3] ss:$0 sm:$0xff] }
 0x651   :  { %6285 = vmatprep.mubr.msk.bf16.mxu0 %vm6987_vm0, %v6986_v2 }
 0x703   :  { %v1577_v29 = vpop.f32.mrf.mxu1 }
 0x704   :  { %v1588_v22 = vadd.f32 %v5607_v26, %v1577_v29 }
 0x705   :  { %v6249_v31 = vpop.f32.mrf.mxu1 }
 0x707   :  { %v1580_v33 = vpop.f32.mrf.mxu1  ;;  %v1633_v35 = vpop.f32.mrf.mxu0 }
 0x708   :  { %v1640_v41 = vadd.f32 %v1633_v35, %v1588_v22  ;;  %v1589_v43 = vadd.f32 %v5607_v26, %v1580_v33  ;;  %v5615_v35 = vld [vmem:[%s8368_s28 + $0x4] ss:$0 sm:$0xff] }
 0x709   :  { %v6250_v36 = vpop.f32.mrf.mxu1  ;;  %v6255_v21 = vpop.f32.mrf.mxu0 }
 0x70b   :  { %v1636_v38 = vpop.f32.mrf.mxu0  ;;  %v1685_v17 = vpop.f32.mrf.mxu1 }
 0x70c   :  { %v1692_v45 = vadd.f32 %v1685_v17, %v1640_v41  ;;  %v1641_v44 = vadd.f32 %v1636_v38, %v1589_v43  ;;  %v6753_v38 = vld [vmem:[%s8343_s12 + $0x18] sm:$0xff]   ;;  %v6754_v17 = vld [vmem:[%s8343_s12 + $0x10] sm:$0xff]   ;;  %v6755_v41 = vld [vmem:[%s8343_s12 + $0x8] sm:$0xff]  }
 0x70d   :  { %v6256_v42 = vpop.f32.mrf.mxu0  ;;  %v6261_v24 = vpop.f32.mrf.mxu1  ;;  %6278 = vmatpush3.bf16.msra.mxu0 %v6753_v38 }
 0x70e   :  { %6279 = vmatprep.subr.bf16.mxu0 %v6986_v2  ;;  %v6756_v42 = vld [vmem:[%s8343_s12] sm:$0xff]   ;;  %s6991_s12 = smov 32  }
 0x70f   :  { %v1688_v58 = vpop.f32.mrf.mxu1  ;;  %v5616_v24 = vld [vmem:[%s8342_s11] ss:$0 sm:$0xff]  ;;  %s8374_s11 = sld [smem:[#allocation7_spill]] }
 0x710   :  { %v1737_v60 = vpop.f32.mrf.mxu0  ;;  %v1693_v34 = vadd.f32 %v1688_v58, %v1641_v44 }
 0x711   :  { %v1744_v30 = vadd.f32 %v1737_v60, %v1692_v45  ;;  %v6262_v46 = vpop.f32.mrf.mxu1  ;;  %6280 = vmatpush3.bf16.msra.mxu0 %v6754_v17 }
 0x712   :  { %v6267_v32 = vpop.f32.mrf.mxu0  ;;  %6281 = vmatprep.subr.bf16.mxu0 %v6986_v2 }
 0x713   :  { %v1746_v39 = vadd.f32 %v1744_v30, %v7185_v54 }
 0x714   :  { %v1740_v47 = vpop.f32.mrf.mxu0 }
 0x715   :  { %v1745_v48 = vadd.f32 %v1740_v47, %v1693_v34  ;;  %v1750_v49 = vsel %vm187_vm4, %v1746_v39, 0.0  ;;  %6282 = vmatpush3.bf16.msra.mxu0 %v6755_v41  ;;  %v2209_v38 = vld [vmem:[%s8374_s11 + $0x8] sm:$0xff] }
 0x716   :  { %v6268_v50 = vpop.f32.mrf.mxu0  ;;  %1751 = vadd.xlane.f32.xlu1 %v1750_v49  ;;  %6283 = vmatprep.subr.bf16.mxu0 %v6986_v2 }
 0x717   :  { %v1747_v51 = vadd.f32 %v1745_v48, %v7187_v55  ;;  %v6751_v55 = vld [vmem:[%s8341_s10 + $0x8] sm:$0xff]  }
 0x718   :  { %6270 = vmatpush3.bf16.msra.mxu1 %v6751_v55  ;;  %v6758_v55 = vld [vmem:[%s8347_s16 + $0x30] sm:$0xff]  }
 0x719   :  { %v1753_v40 = vsel %vm187_vm4, %v1747_v51, 0.0  ;;  %6271 = vmatprep.subr.bf16.mxu1 %v6986_v2  ;;  %6284 = vmatpush3.bf16.msra.mxu0 %v6756_v42 }
 0x71a   :  { %1754 = vadd.xlane.f32.xlu0 %v1753_v40  ;;  %6297 = vmatprep.subr.bf16.mxu0 %v6986_v2 }
 0x71c   :  { %6272 = vmatpush3.bf16.msra.mxu1 %v6752_v6  ;;  %v6759_v6 = vld [vmem:[%s8347_s16 + $0x28] sm:$0xff]  }
 0x71d   :  { %6289 = vmatprep.subr.bf16.mxu1 %v6986_v2 }
 0x79f   :  { %v1752_v52 = vpop.xlane.xlu1 %1751 }
 0x7a0   :  { %v1756_v53 = vmul.f32 0.03125, %v1752_v52 }
 0x7a2   :  { %v1758_v56 = vsub.f32 %v1746_v39, %v1756_v53 }
 0x7a3   :  { %v1755_v57 = vpop.xlane.xlu0 %1754 }
 0x7a4   :  { %v1757_v37 = vmul.f32 0.03125, %v1755_v57  ;;  %v1760_v59 = vmul.f32 %v1758_v56, %v1758_v56 }
 0x7a6   :  { %v1759_v62 = vsub.f32 %v1747_v51, %v1757_v37  ;;  %v1762_v54 = vsel %vm187_vm4, %v1760_v59, 0.0 }
 0x7a7   :  { %1763 = vadd.xlane.f32.xlu1 %v1762_v54 }
 0x7a8   :  { %v1761_v63 = vmul.f32 %v1759_v62, %v1759_v62 }
 0x7aa   :  { %v1765_v5 = vsel %vm187_vm4, %v1761_v63, 0.0 }
 0x7ab   :  { %1766 = vadd.xlane.f32.xlu0 %v1765_v5  ;;  %v6757_v5 = vld [vmem:[%s8347_s16 + $0x38] sm:$0xff]  }
 0x830   :  { %v1764_v7 = vpop.xlane.xlu1 %1763 }
 0x831   :  { %v1768_v9 = vmul.f32 0.03125, %v1764_v7  ;;  %v6760_v7 = vld [vmem:[%s8347_s16 + $0x20] sm:$0xff]  }
 0x833   :  { %v1770_v12 = vadd.f32 1e-12, %v1768_v9  ;;  %v6761_v9 = vld [vmem:[%s8347_s16 + $0x18] sm:$0xff]  }
 0x834   :  { %v1767_v19 = vpop.xlane.xlu0 %1766 }
 0x835   :  { %6863 = vrsqrt.f32 %v1770_v12  ;;  %v1769_v18 = vmul.f32 0.03125, %v1767_v19  ;;  %v6762_v12 = vld [vmem:[%s8347_s16 + $0x10] sm:$0xff]  }
 0x837   :  { %v1771_v23 = vadd.f32 1e-12, %v1769_v18  ;;  %v5625_v18 = vld [vmem:[%s8368_s28 + $0x5] ss:$0 sm:$0xff] }
 0x839   :  { %6865 = vrsqrt.f32 %v1771_v23 }
 0x842   :  { %v6864_v25 = vpop.eup %6863 }
 0x843   :  { %v1774_v27 = vmul.f32 %v6864_v25, %v1758_v56 }
 0x845   :  { %v1780_v33 = vmul.f32 %v5614_v28, %v1774_v27 }
 0x846   :  { %v6866_v29 = vpop.eup %6865 }
 0x847   :  { %v1775_v31 = vmul.f32 %v6866_v29, %v1759_v62  ;;  %v7538_v36 = vadd.f32 %v5615_v35, %v1780_v33 }
 0x849   :  { %v1781_v26 = vmul.f32 %v5614_v28, %v1775_v31 }
 0x84b   :  { %v7540_v21 = vadd.f32 %v5615_v35, %v1781_v26 }
 0x84d   :  { %v1788_v22 = vpack.c.bf16 %v7540_v21, %v7538_v36 }
 0x84f   :  { %6274 = vmatmul.mubr.msk.bf16.vlgmr.msra.gmra.mxu1 %vm187_vm4, %v1788_v22  ;;  %v6763_v22 = vld [vmem:[%s8347_s16 + $0x8] sm:$0xff]  }
 0x850   :  { %6293 = vmatprep.mubr.msk.bf16.mxu1 %vm6987_vm0, %v6986_v2 }
 0x90f   :  { %v1849_v43 = vpop.f32.mrf.mxu1 }
 0x910   :  { %v1850_v45 = vadd.f32 %v5616_v24, %v1849_v43 }
 0x911   :  { %v6275_v58 = vpop.f32.mrf.mxu1 }
 0x912   :  { %v1856_v60 = vmul.f32 %v1850_v45, %v1850_v45 }
 0x913   :  { %v1852_v44 = vpop.f32.mrf.mxu1 }
 0x914   :  { %v1858_v30 = vmul.f32 %v1856_v60, %v1850_v45  ;;  %v1853_v46 = vadd.f32 %v5616_v24, %v1852_v44 }
 0x915   :  { %v6276_v32 = vpop.f32.mrf.mxu1 }
 0x916   :  { %v1860_v34 = vmul.f32 0.044715, %v1858_v30  ;;  %v1857_v39 = vmul.f32 %v1853_v46, %v1853_v46  ;;  %v6989_v32 = vmov 1.0|1.0  }
 0x918   :  { %v1862_v47 = vadd.f32 %v1860_v34, %v1850_v45  ;;  %v1859_v48 = vmul.f32 %v1857_v39, %v1853_v46  ;;  %v6765_v39 = vld [vmem:[%s8344_s13 + $0x8] sm:$0xff]  }
 0x919   :  { %6290 = vmatpush3.bf16.msra.mxu1 %v6765_v39 }
 0x91a   :  { %v1864_v49 = vmul.f32 0.7978846, %v1862_v47  ;;  %v1861_v50 = vmul.f32 0.044715, %v1859_v48  ;;  %v6766_v47 = vld [vmem:[%s8344_s13] sm:$0xff]   ;;  %6291 = vmatprep.subr.bf16.mxu1 %v6986_v2 }
 0x91c   :  { %6867 = vtanh.f32 %v1864_v49  ;;  %v1863_v51 = vadd.f32 %v1861_v50, %v1853_v46 }
 0x91d   :  { %6292 = vmatpush3.bf16.msra.mxu1 %v6766_v47 }
 0x91e   :  { %v1865_v40 = vmul.f32 0.7978846, %v1863_v51 }
 0x920   :  { %6869 = vtanh.f32 %v1865_v40 }
 0x929   :  { %v6868_v52 = vpop.eup %6867 }
 0x92a   :  { %v1868_v53 = vadd.f32 1.0, %v6868_v52 }
 0x92c   :  { %v1870_v57 = vmul.f32 0.5, %v1868_v53 }
 0x92d   :  { %v6870_v56 = vpop.eup %6869 }
 0x92e   :  { %v1869_v37 = vadd.f32 1.0, %v6870_v56  ;;  %v1872_v62 = vmul.f32 %v1870_v57, %v1850_v45  ;;  %v5626_v56 = vld [vmem:[%s8368_s28 + $0x6] ss:$0 sm:$0xff] }
 0x930   :  { %v1871_v59 = vmul.f32 0.5, %v1869_v37 }
 0x932   :  { %v1873_v54 = vmul.f32 %v1871_v59, %v1853_v46 }
 0x934   :  { %v1874_v63 = vpack.c.bf16 %v1873_v54, %v1872_v62  ;;  %v5627_v62 = vld [vmem:[%s8368_s28 + $0x7] ss:$0 sm:$0xff] }
 0x936   :  { %6286 = vmatmul.mubr.msk.bf16.vlgmr.msra.gmra.mxu0 %vm1907_vm14, %v1874_v63 }
 0x937   :  { %6313 = vmatprep.mubr.msk.bf16.mxu0 %vm6987_vm0, %v6986_v2  ;;  %6298 = vmatpush3.bf16.msra.mxu0 %v6757_v5 }
 0x938   :  { %6299 = vmatprep.subr.bf16.mxu0 %v6986_v2 }
 0x93b   :  { %6300 = vmatpush3.bf16.msra.mxu0 %v6758_v55 }
 0x93c   :  { %6301 = vmatprep.subr.bf16.mxu0 %v6986_v2 }
 0x93f   :  { %6302 = vmatpush3.bf16.msra.mxu0 %v6759_v6 }
 0x940   :  { %6303 = vmatprep.subr.bf16.mxu0 %v6986_v2 }
 0x943   :  { %6304 = vmatpush3.bf16.msra.mxu0 %v6760_v7 }
 0x944   :  { %6305 = vmatprep.subr.bf16.mxu0 %v6986_v2 }
 0x947   :  { %6306 = vmatpush3.bf16.msra.mxu0 %v6761_v9 }
 0x948   :  { %6307 = vmatprep.subr.bf16.mxu0 %v6986_v2 }
 0x94b   :  { %6308 = vmatpush3.bf16.msra.mxu0 %v6762_v12 }
 0x94c   :  { %6309 = vmatprep.subr.bf16.mxu0 %v6986_v2 }
 0x94f   :  { %6310 = vmatpush3.bf16.msra.mxu0 %v6763_v22  ;;  %v6767_v22 = vld [vmem:[%s8348_s17 + $0x48] sm:$0xff]  }
 0x950   :  { %6311 = vmatprep.subr.bf16.mxu0 %v6986_v2 }
 0x9f6   :  { %v1945_v19 = vpop.f32.mrf.mxu0 }
 0x9f7   :  { %v1952_v23 = vadd.f32 %v1945_v19, %v7538_v36  ;;  %v6764_v36 = vld [vmem:[%s8347_s16] sm:$0xff]  }
 0x9f8   :  { %v6287_v25 = vpop.f32.mrf.mxu0  ;;  %6312 = vmatpush3.bf16.msra.mxu0 %v6764_v36  ;;  %v6768_v36 = vld [vmem:[%s8348_s17 + $0x40] sm:$0xff]  }
 0x9f9   :  { %v1959_v27 = vadd.f32 %v5625_v18, %v1952_v23  ;;  %6349 = vmatprep.subr.bf16.mxu0 %v6986_v2 }
 0x9fa   :  { %v1948_v28 = vpop.f32.mrf.mxu0 }
 0x9fb   :  { %v1953_v29 = vadd.f32 %v1948_v28, %v7540_v21  ;;  %v1963_v31 = vsel %vm187_vm4, %v1959_v27, 0.0  ;;  %v2208_v21 = vld [vmem:[%s8374_s11] sm:$0xff] }
 0x9fc   :  { %1964 = vadd.xlane.f32.xlu0 %v1963_v31  ;;  %v6288_v33 = vpop.f32.mrf.mxu0 }
 0x9fd   :  { %v1960_v35 = vadd.f32 %v5625_v18, %v1953_v29 }
 0x9ff   :  { %v1966_v26 = vsel %vm187_vm4, %v1960_v35, 0.0 }
 0xa00   :  { %1967 = vadd.xlane.f32.xlu1 %v1966_v26 }
 0xa11   :  { %2211 = vperm.xlu1 %6705, %v2208_v21   ;;  %v6774_v21 = vld [vmem:[%s8345_s14 + $0x14] ss:$8 sps:$4 sm:$0xff]  }
 0xa12   :  { %2214 = vperm.xlu0 %6704, %v2209_v38   ;;  %v6772_v38 = vld [vmem:[%s8345_s14 + $0x10] ss:$8 sps:$4 sm:$0xff]   ;;  %2128 = vmatprep.subr.bf16.mxu1 %v6774_v21 }
 0xa85   :  { %v1965_v17 = vpop.xlane.xlu0 %1964 }
 0xa86   :  { %v1969_v41 = vmul.f32 0.03125, %v1965_v17  ;;  %v6778_v17 = vld [vmem:[%s8345_s14 + $0x4] ss:$8 sps:$4 sm:$0xff]  }
 0xa88   :  { %v1971_v42 = vsub.f32 %v1959_v27, %v1969_v41  ;;  %v6776_v41 = vld [vmem:[%s8345_s14] ss:$8 sps:$4 sm:$0xff]  }
 0xa89   :  { %v1968_v24 = vpop.xlane.xlu1 %1967 }
 0xa8a   :  { %v1970_v43 = vmul.f32 0.03125, %v1968_v24  ;;  %v1973_v45 = vmul.f32 %v1971_v42, %v1971_v42 }
 0xa8c   :  { %v1972_v58 = vsub.f32 %v1960_v35, %v1970_v43  ;;  %v1975_v60 = vsel %vm187_vm4, %v1973_v45, 0.0 }
 0xa8d   :  { %1976 = vadd.xlane.f32.xlu0 %v1975_v60  ;;  %v2215_v44 = vpop.permute.xlu0 %2214  ;;  %v2212_v30 = vpop.permute.xlu1 %2211 }
 0xa8e   :  { %vm2217_vm15 = vcmp.eq.s32.totalorder %v7148_v11, %v2215_v44  ;;  %vm2216_vm1 = vcmp.eq.s32.totalorder %v7148_v11, %v2212_v30  ;;  %v1974_v46 = vmul.f32 %v1972_v58, %v1972_v58 }
 0xa8f   :  { %vm5647_vm2 = vmpackc.low %vm2217_vm15, %vm2216_vm1  ;;  %vm2313_vm15 = vcmp.ge.s32.totalorder %v7414_v3, %v7148_v11 }
 0xa90   :  { %6314 = vmatmul.mubr.msk.bf16.vlgmr.msra.gmra.mxu0 %vm5647_vm2, %v6989_v32  ;;  %v1978_v34 = vsel %vm187_vm4, %v1974_v46, 0.0  ;;  %v5649_v32 = vld [vmem:[%s8368_s28 + $0x9] ss:$0 sm:$0xff]  ;;  %vm2315_vm2 = vmand %vm7439_vm10, %vm2313_vm15  ;;  %vm2186_vm10 = vcmask 1045504  }
 0xa91   :  { %1979 = vadd.xlane.f32.xlu1 %v1978_v34  ;;  %6353 = vmatprep.mubr.msk.bf16.mxu0 %vm6987_vm0, %v6986_v2 }
 0xa92   :  { %6350 = vmatpush3.bf16.msra.mxu0 %v6767_v22  ;;  %v6795_v22 = vld [vmem:[%s8348_s17 + $0xb8] sm:$0xff]  }
 0xa93   :  { %6351 = vmatprep.subr.bf16.mxu0 %v6986_v2 }
 0xa96   :  { %6352 = vmatpush3.bf16.msra.mxu0 %v6768_v36  ;;  %v6796_v36 = vld [vmem:[%s8348_s17 + $0xb0] sm:$0xff]  }
 0xa97   :  { %6365 = vmatprep.subr.bf16.mxu0 %v6986_v2 }
 0xb16   :  { %v1977_v48 = vpop.xlane.xlu0 %1976 }
 0xb17   :  { %v1981_v49 = vmul.f32 0.03125, %v1977_v48  ;;  %v6769_v48 = vld [vmem:[%s8348_s17 + $0x68] sm:$0xff]  }
 0xb19   :  { %v1983_v50 = vadd.f32 1e-12, %v1981_v49 }
 0xb1a   :  { %v1980_v51 = vpop.xlane.xlu1 %1979 }
 0xb1b   :  { %6871 = vrsqrt.f32 %v1983_v50  ;;  %v1982_v40 = vmul.f32 0.03125, %v1980_v51  ;;  %v5628_v50 = vld [vmem:[%s8368_s28 + $0x8] ss:$0 sm:$0xff]  ;;  %v6770_v51 = vld [vmem:[%s8348_s17 + $0x60] sm:$0xff]  }
 0xb1d   :  { %v1984_v52 = vadd.f32 1e-12, %v1982_v40 }
 0xb1f   :  { %6873 = vrsqrt.f32 %v1984_v52 }
 0xb28   :  { %v6872_v53 = vpop.eup %6871 }
 0xb29   :  { %v1987_v57 = vmul.f32 %v6872_v53, %v1971_v42 }
 0xb2b   :  { %v1993_v37 = vmul.f32 %v5626_v56, %v1987_v57 }
 0xb2c   :  { %v6874_v59 = vpop.eup %6873 }
 0xb2d   :  { %v1988_v54 = vmul.f32 %v6874_v59, %v1972_v58  ;;  %v1999_v5 = vadd.f32 %v5627_v62, %v1993_v37  ;;  %v6775_v59 = vld [vmem:[%s8348_s17 + $0x80] sm:$0xff]  }
 0xb2f   :  { %v1994_v63 = vmul.f32 %v5626_v56, %v1988_v54  ;;  %v2001_v6 = vpack.c.bf16 %v1999_v5, %v1999_v5  ;;  %v6771_v56 = vld [vmem:[%s8348_s17 + $0x88] sm:$0xff]   ;;  %v6780_v54 = vld [vmem:[%s8348_s17 + $0xa0] sm:$0xff]  }
 0xb30   :  { %v6781_v5 = vld [vmem:[%s8348_s17 + $0x8] sm:$0xff]  }
 0xb31   :  { %v2000_v55 = vadd.f32 %v5627_v62, %v1994_v63  ;;  %v2014_v12 = vunpack.c.l.b16 %v2001_v6  ;;  %v6779_v62 = vld [vmem:[%s8348_s17 + $0xa8] sm:$0xff]   ;;  %v6782_v6 = vld [vmem:[%s8348_s17] sm:$0xff]  }
 0xb33   :  { %v2002_v7 = vpack.c.bf16 %v2000_v55, %v2000_v55 }
 0xb35   :  { %v2015_v9 = vunpack.c.l.b16 %v2002_v7  ;;  %v6783_v7 = vld [vmem:[%s8348_s17 + $0x18] sm:$0xff]  }
 0xb37   :  { %v2016_v19 = vrot.slane %v2015_v9, 7  ;;  %v6784_v9 = vld [vmem:[%s8348_s17 + $0x10] sm:$0xff]  }
 0xb39   :  { %v2018_v18 = vsel %vm2017_vm3, %v2016_v19, %v2014_v12  ;;  %v6785_v12 = vld [vmem:[%s8348_s17 + $0x28] sm:$0xff]   ;;  %v6786_v19 = vld [vmem:[%s8348_s17 + $0x20] sm:$0xff]  }
 0xb3a   :  { %v2019_v23 = vpack.c.b16 %v2018_v18, %v2018_v18  ;;  %v6787_v18 = vld [vmem:[%s8348_s17 + $0x38] sm:$0xff]  }
 0xb3c   :  { %6294 = vmatmul.mubr.msk.bf16.vlgmr.msra.gmra.mxu1 %vm187_vm4, %v2019_v23  ;;  %v6788_v23 = vld [vmem:[%s8348_s17 + $0x30] sm:$0xff]  }
 0xb3d   :  { %2148 = vmatprep.mubr.bf16.mxu1 %v6985_v1  ;;  %2129 = vmatpush1.bf16.msra.mxu1 %v6772_v38 }
 0xb3e   :  { %2130 = vmatprep.subr.bf16.mxu1 %v6778_v17 }
 0xb41   :  { %2131 = vmatpush1.bf16.msra.mxu1 %v6776_v41 }
 0xb42   :  { %6317 = vmatprep.subr.bf16.mxu1 %v6986_v2 }
 0xb50   :  { %v7635_v25 = vpop.f32.mrf.mxu0 }
 0xb51   :  { %v2329_v27 = vmul.f32 %v7635_v25, %v7635_v25 }
 0xb52   :  { %v6315_v28 = vpop.f32.mrf.mxu0 }
 0xb53   :  { %v2331_v29 = vsel %vm187_vm4, %v2329_v27, 0.0  ;;  %v6789_v27 = vld [vmem:[%s8348_s17 + $0x58] sm:$0xff]   ;;  %v6790_v28 = vld [vmem:[%s8348_s17 + $0x50] sm:$0xff]  }
 0xb54   :  { %2332 = vadd.xlane.f32.xlu1 %v2331_v29  ;;  %v7640_v31 = vpop.f32.mrf.mxu0  ;;  %v6791_v29 = vld [vmem:[%s8348_s17 + $0x78] sm:$0xff]  }
 0xb55   :  { %v2330_v33 = vmul.f32 %v7640_v31, %v7640_v31 }
 0xb56   :  { %v6316_v35 = vpop.f32.mrf.mxu0 }
 0xb57   :  { %v2334_v26 = vsel %vm187_vm4, %v2330_v33, 0.0  ;;  %v6792_v33 = vld [vmem:[%s8348_s17 + $0x70] sm:$0xff]   ;;  %v6793_v35 = vld [vmem:[%s8348_s17 + $0x98] sm:$0xff]  }
 0xb58   :  { %2335 = vadd.xlane.f32.xlu0 %v2334_v26  ;;  %v6794_v26 = vld [vmem:[%s8348_s17 + $0x90] sm:$0xff]  }
 0xbdd   :  { %v2333_v42 = vpop.xlane.xlu1 %2332 }
 0xbde   :  { %v2337_v24 = vmul.f32 0.03125, %v2333_v42 }
 0xbe0   :  { %v2339_v43 = vadd.f32 1e-06, %v2337_v24 }
 0xbe1   :  { %v2336_v45 = vpop.xlane.xlu0 %2335 }
 0xbe2   :  { %6875 = vrsqrt.f32 %v2339_v43  ;;  %v2338_v58 = vmul.f32 0.03125, %v2336_v45 }
 0xbe4   :  { %v2340_v60 = vadd.f32 1e-06, %v2338_v58 }
 0xbe6   :  { %6877 = vrsqrt.f32 %v2340_v60 }
 0xbef   :  { %v6876_v44 = vpop.eup %6875 }
 0xbf0   :  { %v2343_v30 = vmul.f32 %v6876_v44, %v7635_v25 }
 0xbf2   :  { %v2349_v39 = vmul.f32 %v5649_v32, %v2343_v30 }
 0xbf3   :  { %v6878_v46 = vpop.eup %6877 }
 0xbf4   :  { %v2344_v34 = vmul.f32 %v6878_v46, %v7640_v31 }
 0xbf6   :  { %v2350_v47 = vmul.f32 %v5649_v32, %v2344_v34 }
 0xbf8   :  { %v7674_v49 = vpack.c.bf16 %v2350_v47, %v2349_v39 }
 0xbfa   :  { %6354 = vmatmul.mubr.msk.bf16.vlgmr.msra.gmra.mxu0 %vm187_vm4, %v7674_v49 }
 0xbfb   :  { %6366 = vmatpush3.bf16.msra.mxu0 %v6769_v48  ;;  %6369 = vmatprep.mubr.msk.bf16.mxu0 %vm6987_vm0, %v6986_v2 }
 0xbfc   :  { %v2069_v40 = vpop.f32.mrf.mxu1  ;;  %6367 = vmatprep.subr.bf16.mxu0 %v6986_v2 }
 0xbfd   :  { %v2070_v52 = vadd.f32 %v5628_v50, %v2069_v40 }
 0xbfe   :  { %v6295_v53 = vpop.f32.mrf.mxu1 }
 0xbff   :  { %6879 = vtanh.f32 %v2070_v52  ;;  %6368 = vmatpush3.bf16.msra.mxu0 %v6770_v51 }
 0xc00   :  { %v2072_v57 = vpop.f32.mrf.mxu1  ;;  %6381 = vmatprep.subr.bf16.mxu0 %v6986_v2 }
 0xc02   :  { %v6296_v37 = vpop.f32.mrf.mxu1  ;;  %6370 = vmatmul.mubr.msk.bf16.vlgmr.msra.gmra.mxu0 %vm187_vm4, %v7674_v49 }
 0xc03   :  { %6382 = vmatpush3.bf16.msra.mxu0 %v6771_v56  ;;  %6385 = vmatprep.mubr.msk.bf16.mxu0 %vm6987_vm0, %v6986_v2 }
 0xc04   :  { %6383 = vmatprep.subr.bf16.mxu0 %v6986_v2 }
 0xc07   :  { %6384 = vmatpush3.bf16.msra.mxu0 %v6775_v59 }
 0xc08   :  { %6397 = vmatprep.subr.bf16.mxu0 %v6986_v2 }
 0xc0a   :  { %6386 = vmatmul.mubr.msk.bf16.vlgmr.msra.gmra.mxu0 %vm187_vm4, %v7674_v49 }
 0xc0b   :  { %6398 = vmatpush3.bf16.msra.mxu0 %v6779_v62  ;;  %6401 = vmatprep.mubr.msk.bf16.mxu0 %vm6987_vm0, %v6986_v2 }
 0xc0c   :  { %v6880_v63 = vpop.eup %6879  ;;  %6399 = vmatprep.subr.bf16.mxu0 %v6986_v2 }
 0xc0d   :  { %v2076_v55 = vpack.c.bf16 %v6880_v63, %v6880_v63 }
 0xc0f   :  { %5636 = vmatmul.mubr.msk.bf16.vlgmr.msra.gmra.mxu1 %vm187_vm4, %v2076_v55  ;;  %6400 = vmatpush3.bf16.msra.mxu0 %v6780_v54 }
 0xc10   :  { %6318 = vmatpush3.bf16.msra.mxu1 %v6781_v5  ;;  %6321 = vmatprep.mubr.msk.bf16.mxu1 %vm6987_vm0, %v6986_v2 }
 0xc11   :  { %6319 = vmatprep.subr.bf16.mxu1 %v6986_v2  ;;  %6413 = vmatprep.subr.bf16.mxu0 %v6986_v2 }
 0xc12   :  { %6402 = vmatmul.mubr.msk.bf16.vlgmr.msra.gmra.mxu0 %vm187_vm4, %v7674_v49 }
 0xc13   :  { %6415 = vmatprep.mubr.msk.bf16.mxu0 %vm6987_vm0, %v6986_v2 }
 0xc14   :  { %6320 = vmatpush3.bf16.msra.mxu1 %v6782_v6 }
 0xc15   :  { %6325 = vmatprep.subr.bf16.mxu1 %v6986_v2 }
 0xc17   :  { %6322 = vmatmul.mubr.msk.bf16.vlgmr.msra.gmra.mxu1 %vm187_vm4, %v7674_v49 }
 0xc18   :  { %6326 = vmatpush3.bf16.msra.mxu1 %v6783_v7  ;;  %6329 = vmatprep.mubr.msk.bf16.mxu1 %vm6987_vm0, %v6986_v2 }
 0xc19   :  { %6327 = vmatprep.subr.bf16.mxu1 %v6986_v2 }
 0xc1c   :  { %6328 = vmatpush3.bf16.msra.mxu1 %v6784_v9 }
 0xc1d   :  { %6333 = vmatprep.subr.bf16.mxu1 %v6986_v2 }
 0xc1f   :  { %6330 = vmatmul.mubr.msk.bf16.vlgmr.msra.gmra.mxu1 %vm187_vm4, %v7674_v49 }
 0xc20   :  { %6334 = vmatpush3.bf16.msra.mxu1 %v6785_v12  ;;  %6337 = vmatprep.mubr.msk.bf16.mxu1 %vm6987_vm0, %v6986_v2 }
 0xc21   :  { %6335 = vmatprep.subr.bf16.mxu1 %v6986_v2 }
 0xc24   :  { %6336 = vmatpush3.bf16.msra.mxu1 %v6786_v19 }
 0xc25   :  { %6341 = vmatprep.subr.bf16.mxu1 %v6986_v2 }
 0xc27   :  { %6338 = vmatmul.mubr.msk.bf16.vlgmr.msra.gmra.mxu1 %vm187_vm4, %v7674_v49 }
 0xc28   :  { %6342 = vmatpush3.bf16.msra.mxu1 %v6787_v18  ;;  %6345 = vmatprep.mubr.msk.bf16.mxu1 %vm6987_vm0, %v6986_v2 }
 0xc29   :  { %6343 = vmatprep.subr.bf16.mxu1 %v6986_v2 }
 0xc2c   :  { %6344 = vmatpush3.bf16.msra.mxu1 %v6788_v23 }
 0xc2d   :  { %6357 = vmatprep.subr.bf16.mxu1 %v6986_v2 }
 0xc2f   :  { %6346 = vmatmul.mubr.msk.bf16.vlgmr.msra.gmra.mxu1 %vm187_vm4, %v7674_v49 }
 0xc30   :  { %6358 = vmatpush3.bf16.msra.mxu1 %v6789_v27  ;;  %6361 = vmatprep.mubr.msk.bf16.mxu1 %vm6987_vm0, %v6986_v2 }
 0xc31   :  { %6359 = vmatprep.subr.bf16.mxu1 %v6986_v2 }
 0xc34   :  { %6360 = vmatpush3.bf16.msra.mxu1 %v6790_v28 }
 0xc35   :  { %6373 = vmatprep.subr.bf16.mxu1 %v6986_v2 }
 0xc37   :  { %6362 = vmatmul.mubr.msk.bf16.vlgmr.msra.gmra.mxu1 %vm187_vm4, %v7674_v49 }
 0xc38   :  { %6374 = vmatpush3.bf16.msra.mxu1 %v6791_v29  ;;  %6377 = vmatprep.mubr.msk.bf16.mxu1 %vm6987_vm0, %v6986_v2 }
 0xc39   :  { %6375 = vmatprep.subr.bf16.mxu1 %v6986_v2 }
 0xc3c   :  { %6376 = vmatpush3.bf16.msra.mxu1 %v6792_v33 }
 0xc3d   :  { %6389 = vmatprep.subr.bf16.mxu1 %v6986_v2 }
 0xc3f   :  { %6378 = vmatmul.mubr.msk.bf16.vlgmr.msra.gmra.mxu1 %vm187_vm4, %v7674_v49 }
 0xc40   :  { %6390 = vmatpush3.bf16.msra.mxu1 %v6793_v35  ;;  %6393 = vmatprep.mubr.msk.bf16.mxu1 %vm6987_vm0, %v6986_v2 }
 0xc41   :  { %6391 = vmatprep.subr.bf16.mxu1 %v6986_v2 }
 0xc44   :  { %6392 = vmatpush3.bf16.msra.mxu1 %v6794_v26 }
 0xc45   :  { %6405 = vmatprep.subr.bf16.mxu1 %v6986_v2 }
 0xc47   :  { %6394 = vmatmul.mubr.msk.bf16.vlgmr.msra.gmra.mxu1 %vm187_vm4, %v7674_v49 }
 0xc48   :  { %6406 = vmatpush3.bf16.msra.mxu1 %v6795_v22  ;;  %6409 = vmatprep.mubr.msk.bf16.mxu1 %vm6987_vm0, %v6986_v2 }
 0xc49   :  { %6407 = vmatprep.subr.bf16.mxu1 %v6986_v2 }
 0xc4c   :  { %6408 = vmatpush3.bf16.msra.mxu1 %v6796_v36 }
 0xc4d   :  { %6419 = vmatprep.subr.bf16.mxu1 %v6986_v2 }
 0xc4f   :  { %6410 = vmatmul.mubr.msk.bf16.vlgmr.msra.gmra.mxu1 %vm187_vm4, %v7674_v49 }
 0xc50   :  { %6421 = vmatprep.mubr.msk.bf16.mxu1 %vm6987_vm0, %v6986_v2 }
 0xcba   :  { %v2641_v21 = vpop.f32.mrf.mxu0 }
 0xcbc   :  { %v6355_v38 = vpop.f32.mrf.mxu0 }
 0xcbe   :  { %v2644_v17 = vpop.f32.mrf.mxu0 }
 0xcbf   :  { %v2648_v41 = vpack.c.bf16 %v2644_v17, %v2641_v21 }
 0xcc0   :  { %v6356_v42 = vpop.f32.mrf.mxu0 }
 0xcc1   :  { %v3066_v24 = vsel %vm1059_vm5, %v2648_v41, 0 }
 0xcc2   :  { %v2759_v43 = vpop.f32.mrf.mxu0  ;;  %6414 = vmatpush3.bf16.xpose.msra.mxu0 %v3066_v24 }
 0xcc3   :  { %6425 = vmatprep.subr.bf16.mxu0 %v6986_v2 }
 0xcc4   :  { %v6371_v45 = vpop.f32.mrf.mxu0 }
 0xcc6   :  { %v2762_v58 = vpop.f32.mrf.mxu0 }
 0xcc7   :  { %v2766_v57 = vpack.c.bf16 %v2762_v58, %v2759_v43 }
 0xcc8   :  { %v6372_v60 = vpop.f32.mrf.mxu0 }
 0xcc9   :  { %v3160_v54 = vsel %vm1059_vm5, %v2766_v57, 0  ;;  %v2316_v57 = vld [vmem:[%s8375_s25] sm:$0x1] }
 0xcca   :  { %v2877_v44 = vpop.f32.mrf.mxu0  ;;  %vm2317_vm6 = vcmp.gt.s32.totalorder %v2316_v57, 0 }
 0xccc   :  { %v6387_v30 = vpop.f32.mrf.mxu0 }
 0xcce   :  { %v2880_v46 = vpop.f32.mrf.mxu0 }
 0xccf   :  { %v7817_v32 = vpop.f32.mrf.mxu1  ;;  %v2884_v18 = vpack.c.bf16 %v2880_v46, %v2877_v44 }
 0xcd0   :  { %v6388_v34 = vpop.f32.mrf.mxu0 }
 0xcd1   :  { %v7819_v39 = vpop.f32.mrf.mxu1 }
 0xcd2   :  { %v7821_v47 = vpop.f32.mrf.mxu0 }
 0xcd3   :  { %v2154_v48 = vpop.f32.mrf.mxu1 }
 0xcd4   :  { %v6403_v49 = vpop.f32.mrf.mxu0 }
 0xcd5   :  { %v2155_v50 = vpop.f32.mrf.mxu1 }
 0xcd6   :  { %v7823_v51 = vpop.f32.mrf.mxu0 }
 0xcd7   :  { %v3002_v40 = vpack.c.bf16 %v7823_v51, %v7821_v47  ;;  %v2405_v52 = vpop.f32.mrf.mxu1 }
 0xcd8   :  { %v6404_v53 = vpop.f32.mrf.mxu0 }
 0xcd9   :  { %v6323_v56 = vpop.f32.mrf.mxu1 }
 0xcdb   :  { %v2408_v37 = vpop.f32.mrf.mxu1 }
 0xcdc   :  { %v2412_v59 = vpack.c.bf16 %v2408_v37, %v2405_v52  ;;  %v2318_v37 = vsel %vm2317_vm6, 1, %v6985_v1 }
 0xcdd   :  { %v6324_v62 = vpop.f32.mrf.mxu1 }
 0xcde   :  { %6416 = vmatmul.mubr.msk.bf16.vlgmr.msra.gmra.mxu0 %vm1059_vm5, %v2412_v59  ;;  %v2322_v59 = vrot.slane %v2318_v37, %v7420_v10 }
 0xcdf   :  { %6426 = vmatpush3.bf16.xpose.msra.mxu0 %v3160_v54  ;;  %v2464_v63 = vpop.f32.mrf.mxu1  ;;  %6427 = vmatprep.mubr.msk.bf16.mxu0 %vm6987_vm0, %v6986_v2 }
 0xce0   :  { %6437 = vmatprep.subr.bf16.mxu0 %v6986_v2  ;;  %vm2323_vm11 = vcmp.eq.s32.totalorder %v2322_v59, 1 }
 0xce1   :  { %v6331_v5 = vpop.f32.mrf.mxu1  ;;  %vm2324_vm1 = vmand %vm2314_vm9, %vm2323_vm11 }
 0xce2   :  { %v2326_v62 = vsel %vm2324_vm1, 0.0, %v6988_v20  ;;  %vm2325_vm3 = vmand %vm2315_vm2, %vm2323_vm11 }
 0xce3   :  { %v2467_v55 = vpop.f32.mrf.mxu1  ;;  %v2327_v5 = vsel %vm2325_vm3, 0.0, %v6988_v20 }
 0xce4   :  { %v2471_v24 = vpack.c.bf16 %v2467_v55, %v2464_v63 }
 0xce5   :  { %v6332_v6 = vpop.f32.mrf.mxu1 }
 0xce7   :  { %v2523_v7 = vpop.f32.mrf.mxu1 }
 0xce9   :  { %v6339_v9 = vpop.f32.mrf.mxu1 }
 0xceb   :  { %v2526_v12 = vpop.f32.mrf.mxu1 }
 0xcec   :  { %v2530_v19 = vpack.c.bf16 %v2526_v12, %v2523_v7 }
 0xced   :  { %v6340_v23 = vpop.f32.mrf.mxu1 }
 0xcee   :  { %6428 = vmatmul.mubr.msk.bf16.vlgmr.msra.gmra.mxu0 %vm1059_vm5, %v2530_v19 }
 0xcef   :  { %6438 = vmatpush3.bf16.msra.mxu0 %v2884_v18  ;;  %v2582_v27 = vpop.f32.mrf.mxu1  ;;  %6439 = vmatprep.mubr.msk.bf16.mxu0 %vm6987_vm0, %v6986_v2 }
 0xcf0   :  { %6449 = vmatprep.subr.bf16.mxu0 %v6986_v2 }
 0xcf1   :  { %v6347_v28 = vpop.f32.mrf.mxu1 }
 0xcf3   :  { %v2585_v29 = vpop.f32.mrf.mxu1 }
 0xcf4   :  { %v2589_v46 = vpack.c.bf16 %v2585_v29, %v2582_v27 }
 0xcf5   :  { %v6348_v33 = vpop.f32.mrf.mxu1 }
 0xcf7   :  { %v2700_v35 = vpop.f32.mrf.mxu1 }
 0xcf9   :  { %v6363_v26 = vpop.f32.mrf.mxu1 }
 0xcfb   :  { %v2703_v22 = vpop.f32.mrf.mxu1 }
 0xcfc   :  { %v2707_v36 = vpack.c.bf16 %v2703_v22, %v2700_v35 }
 0xcfd   :  { %v6364_v21 = vpop.f32.mrf.mxu1 }
 0xcfe   :  { %v3113_v38 = vsel %vm1059_vm5, %v2707_v36, 0 }
 0xcff   :  { %v2818_v17 = vpop.f32.mrf.mxu1  ;;  %6420 = vmatpush3.bf16.xpose.msra.mxu1 %v3113_v38 }
 0xd00   :  { %6431 = vmatprep.subr.bf16.mxu1 %v6986_v2 }
 0xd01   :  { %v6379_v41 = vpop.f32.mrf.mxu1 }
 0xd03   :  { %v2821_v42 = vpop.f32.mrf.mxu1 }
 0xd04   :  { %v2825_v43 = vpack.c.bf16 %v2821_v42, %v2818_v17 }
 0xd05   :  { %v6380_v45 = vpop.f32.mrf.mxu1 }
 0xd06   :  { %v3207_v58 = vsel %vm1059_vm5, %v2825_v43, 0  ;;  %6422 = vmatmul.mubr.msk.bf16.vlgmr.msra.gmra.mxu1 %vm1059_vm5, %v2471_v24 }
 0xd07   :  { %v2936_v60 = vpop.f32.mrf.mxu1  ;;  %6432 = vmatpush3.bf16.xpose.msra.mxu1 %v3207_v58  ;;  %6433 = vmatprep.mubr.msk.bf16.mxu1 %vm6987_vm0, %v6986_v2 }
 0xd08   :  { %6443 = vmatprep.subr.bf16.mxu1 %v6986_v2 }
 0xd09   :  { %v6395_v44 = vpop.f32.mrf.mxu1 }
 0xd0b   :  { %v2939_v30 = vpop.f32.mrf.mxu1 }
 0xd0c   :  { %v2943_v34 = vpack.c.bf16 %v2939_v30, %v2936_v60 }
 0xd0d   :  { %v6396_v48 = vpop.f32.mrf.mxu1 }
 0xd0e   :  { %6434 = vmatmul.mubr.msk.bf16.vlgmr.msra.gmra.mxu1 %vm1059_vm5, %v2589_v46 }
 0xd0f   :  { %v7844_v49 = vpop.f32.mrf.mxu1  ;;  %6444 = vmatpush3.bf16.msra.mxu1 %v2943_v34  ;;  %6445 = vmatprep.mubr.msk.bf16.mxu1 %vm6987_vm0, %v6986_v2 }
 0xd10   :  { %6455 = vmatprep.subr.bf16.mxu1 %v6986_v2 }
 0xd11   :  { %v6411_v50 = vpop.f32.mrf.mxu1 }
 0xd13   :  { %v7849_v52 = vpop.f32.mrf.mxu1 }
 0xd14   :  { %v3061_v53 = vpack.c.bf16 %v7849_v52, %v7844_v49  ;;  %v3519_v49 = vld [vmem:[%s8349_s18] sm:$0xf] }
 0xd15   :  { %v6412_v56 = vpop.f32.mrf.mxu1  ;;  %v3574_v52 = vsel %vm1539_vm13, %v3519_v49, 0 }
 0xd9e   :  { %v3102_v1 = vpop.f32.mrf.mxu0 }
 0xd9f   :  { %v3103_v54 = vadd.f32 %v3102_v1, %v2326_v62 }
 0xda0   :  { %v6417_v63 = vpop.f32.mrf.mxu0 }
 0xda1   :  { %v3250_v55 = vsel %vm1264_vm12, %v3103_v54, -inf }
 0xda2   :  { %3251 = vmax.xlane.f32.xlu1 %v3250_v55  ;;  %v3105_v14 = vpop.f32.mrf.mxu0 }
 0xda3   :  { %v3106_v6 = vadd.f32 %v3105_v14, %v2327_v5 }
 0xda4   :  { %v6418_v7 = vpop.f32.mrf.mxu0 }
 0xda5   :  { %v3253_v3 = vsel %vm1264_vm12, %v3106_v6, -inf }
 0xda6   :  { %3254 = vmax.xlane.f32.xlu0 %v3253_v3 }
 0xdae   :  { %v3196_v9 = vpop.f32.mrf.mxu0 }
 0xdaf   :  { %v3197_v28 = vadd.f32 %v3196_v9, %v2326_v62 }
 0xdb0   :  { %v6429_v16 = vpop.f32.mrf.mxu0 }
 0xdb1   :  { %v3262_v36 = vsel %vm1264_vm12, %v3197_v28, -inf }
 0xdb2   :  { %v3199_v12 = vpop.f32.mrf.mxu0 }
 0xdb3   :  { %v3200_v22 = vadd.f32 %v3199_v12, %v2327_v5 }
 0xdb4   :  { %v6430_v19 = vpop.f32.mrf.mxu0 }
 0xdb5   :  { %v3265_v42 = vsel %vm1264_vm12, %v3200_v22, -inf }
 0xdc6   :  { %v3149_v18 = vpop.f32.mrf.mxu1 }
 0xdc7   :  { %v3150_v23 = vadd.f32 %v3149_v18, %v2326_v62 }
 0xdc8   :  { %v6423_v27 = vpop.f32.mrf.mxu1 }
 0xdc9   :  { %v3256_v29 = vsel %vm1264_vm12, %v3150_v23, -inf }
 0xdca   :  { %3257 = vmax.xlane.f32.xlu1 %v3256_v29  ;;  %v3152_v33 = vpop.f32.mrf.mxu1 }
 0xdcb   :  { %v3153_v35 = vadd.f32 %v3152_v33, %v2327_v5 }
 0xdcc   :  { %v6424_v26 = vpop.f32.mrf.mxu1 }
 0xdcd   :  { %v3259_v21 = vsel %vm1264_vm12, %v3153_v35, -inf }
 0xdce   :  { %3263 = vmax.xlane.f32.xlu1 %v3262_v36  ;;  %3260 = vmax.xlane.f32.xlu0 %v3259_v21  ;;  %v3243_v38 = vpop.f32.mrf.mxu1 }
 0xdcf   :  { %v3244_v17 = vadd.f32 %v3243_v38, %v2326_v62 }
 0xdd0   :  { %v6435_v41 = vpop.f32.mrf.mxu1 }
 0xdd1   :  { %v3268_v24 = vsel %vm1264_vm12, %v3244_v17, -inf }
 0xdd2   :  { %3266 = vmax.xlane.f32.xlu0 %v3265_v42  ;;  %3269 = vmax.xlane.f32.xlu1 %v3268_v24  ;;  %v3246_v43 = vpop.f32.mrf.mxu1 }
 0xdd3   :  { %v3247_v45 = vadd.f32 %v3246_v43, %v2327_v5 }
 0xdd4   :  { %v6436_v58 = vpop.f32.mrf.mxu1 }
 0xdd5   :  { %v3271_v60 = vsel %vm1264_vm12, %v3247_v45, -inf }
 0xdd6   :  { %3272 = vmax.xlane.f32.xlu0 %v3271_v60 }
 0xe2b   :  { %v3252_v44 = vpop.xlane.xlu1 %3251 }
 0xe2c   :  { %v3274_v30 = vsub.f32 %v3103_v54, %v3252_v44 }
 0xe2e   :  { %v3282_v46 = vmul.f32 1.442695, %v3274_v30 }
 0xe2f   :  { %v3255_v34 = vpop.xlane.xlu0 %3254 }
 0xe30   :  { %6881 = vpow2.f32 %v3282_v46  ;;  %v3275_v48 = vsub.f32 %v3106_v6, %v3255_v34 }
 0xe32   :  { %v3284_v50 = vmul.f32 1.442695, %v3275_v48 }
 0xe34   :  { %6883 = vpow2.f32 %v3284_v50 }
 0xe3d   :  { %v6882_v56 = vpop.eup %6881 }
 0xe3e   :  { %v3298_v57 = vsel %vm1264_vm12, %v6882_v56, 0.0 }
 0xe3f   :  { %3299 = vadd.xlane.f32.xlu1 %v3298_v57 }
 0xe41   :  { %v6884_v37 = vpop.eup %6883 }
 0xe42   :  { %v3301_v59 = vsel %vm1264_vm12, %v6884_v37, 0.0 }
 0xe43   :  { %3302 = vadd.xlane.f32.xlu0 %v3301_v59 }
 0xe53   :  { %v3258_v62 = vpop.xlane.xlu1 %3257 }
 0xe54   :  { %v3276_v1 = vsub.f32 %v3150_v23, %v3258_v62 }
 0xe56   :  { %v3286_v63 = vmul.f32 1.442695, %v3276_v1 }
 0xe57   :  { %v3264_v5 = vpop.xlane.xlu1 %3263  ;;  %v3261_v55 = vpop.xlane.xlu0 %3260 }
 0xe58   :  { %6885 = vpow2.f32 %v3286_v63  ;;  %v3278_v54 = vsub.f32 %v3197_v28, %v3264_v5  ;;  %v3277_v14 = vsub.f32 %v3153_v35, %v3261_v55 }
 0xe5a   :  { %v3290_v7 = vmul.f32 1.442695, %v3278_v54  ;;  %v3288_v6 = vmul.f32 1.442695, %v3277_v14 }
 0xe5b   :  { %v3267_v3 = vpop.xlane.xlu0 %3266  ;;  %v3270_v9 = vpop.xlane.xlu1 %3269 }
 0xe5c   :  { %6887 = vpow2.f32 %v3290_v7  ;;  %v3279_v16 = vsub.f32 %v3200_v22, %v3267_v3  ;;  %v3280_v12 = vsub.f32 %v3244_v17, %v3270_v9 }
 0xe5d   :  { %6889 = vpow2.f32 %v3288_v6 }
 0xe5e   :  { %v3292_v19 = vmul.f32 1.442695, %v3279_v16  ;;  %v3294_v18 = vmul.f32 1.442695, %v3280_v12 }
 0xe5f   :  { %v3273_v27 = vpop.xlane.xlu0 %3272 }
 0xe60   :  { %6891 = vpow2.f32 %v3292_v19  ;;  %v3281_v29 = vsub.f32 %v3247_v45, %v3273_v27 }
 0xe61   :  { %6893 = vpow2.f32 %v3294_v18  ;;  %v5743_v18 = vld [vmem:[%s8349_s18 + $0xc] sm:$0xf] }
 0xe62   :  { %v3296_v23 = vmul.f32 1.442695, %v3281_v29 }
 0xe64   :  { %6895 = vpow2.f32 %v3296_v23  ;;  %v3676_v23 = vsel %vm1539_vm13, %v5743_v18, 0 }
 0xe65   :  { %v6886_v33 = vpop.eup %6885 }
 0xe66   :  { %v3304_v28 = vsel %vm1264_vm12, %v6886_v33, 0.0 }
 0xe67   :  { %3305 = vadd.xlane.f32.xlu1 %v3304_v28 }
 0xe69   :  { %v6888_v35 = vpop.eup %6887 }
 0xe6a   :  { %v6890_v26 = vpop.eup %6889  ;;  %v3310_v36 = vsel %vm1264_vm12, %v6888_v35, 0.0 }
 0xe6b   :  { %3311 = vadd.xlane.f32.xlu1 %v3310_v36  ;;  %v3307_v22 = vsel %vm1264_vm12, %v6890_v26, 0.0 }
 0xe6c   :  { %3308 = vadd.xlane.f32.xlu0 %v3307_v22 }
 0xe6d   :  { %v6892_v21 = vpop.eup %6891 }
 0xe6e   :  { %v6894_v38 = vpop.eup %6893  ;;  %v3313_v17 = vsel %vm1264_vm12, %v6892_v21, 0.0 }
 0xe6f   :  { %v3316_v41 = vsel %vm1264_vm12, %v6894_v38, 0.0 }
 0xe70   :  { %3317 = vadd.xlane.f32.xlu1 %v3316_v41  ;;  %3314 = vadd.xlane.f32.xlu0 %v3313_v17 }
 0xe71   :  { %v6896_v42 = vpop.eup %6895 }
 0xe72   :  { %v3319_v24 = vsel %vm1264_vm12, %v6896_v42, 0.0 }
 0xe74   :  { %3320 = vadd.xlane.f32.xlu0 %v3319_v24 }
 0xec8   :  { %v3300_v43 = vpop.xlane.xlu1 %3299 }
 0xec9   :  { %6897 = vrcp.f32 %v3300_v43 }
 0xecc   :  { %v3303_v45 = vpop.xlane.xlu0 %3302 }
 0xecd   :  { %6899 = vrcp.f32 %v3303_v45 }
 0xed6   :  { %v6898_v58 = vpop.eup %6897 }
 0xed7   :  { %v3330_v44 = vmul.f32 %v6898_v58, %v6882_v56 }
 0xeda   :  { %v6900_v60 = vpop.eup %6899 }
 0xedb   :  { %v3331_v30 = vmul.f32 %v6900_v60, %v6884_v37 }
 0xedd   :  { %v3338_v46 = vpack.c.bf16 %v3331_v30, %v3330_v44 }
 0xedf   :  { %6440 = vmatmul.mubr.msk.bf16.vlgmr.msra.gmra.mxu0 %vm1264_vm12, %v3338_v46 }
 0xee0   :  { %6450 = vmatpush3.bf16.msra.mxu0 %v3002_v40  ;;  %6451 = vmatprep.mubr.msk.bf16.mxu0 %vm6987_vm0, %v6986_v2 }
 0xee1   :  { %6461 = vmatprep.subr.bf16.mxu0 %v6986_v2 }
 0xef0   :  { %v3306_v34 = vpop.xlane.xlu1 %3305 }
 0xef1   :  { %6901 = vrcp.f32 %v3306_v34 }
 0xef4   :  { %v3312_v48 = vpop.xlane.xlu1 %3311 }
 0xef5   :  { %v3309_v50 = vpop.xlane.xlu0 %3308 }
 0xef6   :  { %6903 = vrcp.f32 %v3309_v50 }
 0xef7   :  { %6905 = vrcp.f32 %v3312_v48 }
 0xef9   :  { %v3318_v56 = vpop.xlane.xlu1 %3317  ;;  %v3315_v57 = vpop.xlane.xlu0 %3314 }
 0xefa   :  { %6907 = vrcp.f32 %v3315_v57 }
 0xefb   :  { %6909 = vrcp.f32 %v3318_v56 }
 0xefd   :  { %v3321_v37 = vpop.xlane.xlu0 %3320 }
 0xefe   :  { %6911 = vrcp.f32 %v3321_v37  ;;  %v6902_v59 = vpop.eup %6901 }
 0xeff   :  { %v3332_v51 = vmul.f32 %v6902_v59, %v6886_v33 }
 0xf03   :  { %v6904_v47 = vpop.eup %6903 }
 0xf04   :  { %v3333_v40 = vmul.f32 %v6904_v47, %v6890_v26  ;;  %v6906_v62 = vpop.eup %6905  ;;  %v5741_v26 = vld [vmem:[%s8349_s18 + $0x8] sm:$0xf] }
 0xf05   :  { %v3334_v55 = vmul.f32 %v6906_v62, %v6888_v35 }
 0xf06   :  { %v3339_v1 = vpack.c.bf16 %v3333_v40, %v3332_v51 }
 0xf07   :  { %v6908_v63 = vpop.eup %6907 }
 0xf08   :  { %6446 = vmatmul.mubr.msk.bf16.vlgmr.msra.gmra.mxu1 %vm1264_vm12, %v3339_v1  ;;  %v6910_v5 = vpop.eup %6909  ;;  %v3335_v54 = vmul.f32 %v6908_v63, %v6892_v21 }
 0xf09   :  { %6456 = vmatpush3.bf16.msra.mxu1 %v3061_v53  ;;  %6457 = vmatprep.mubr.msk.bf16.mxu1 %vm6987_vm0, %v6986_v2  ;;  %v3336_v6 = vmul.f32 %v6910_v5, %v6894_v38  ;;  %v5738_v53 = vld [vmem:[%s8349_s18 + $0x4] sm:$0xf]  ;;  %v3624_v38 = vsel %vm1539_vm13, %v5741_v26, 0 }
 0xf0a   :  { %6467 = vmatprep.subr.bf16.mxu1 %v6986_v2  ;;  %v3340_v7 = vpack.c.bf16 %v3335_v54, %v3334_v55  ;;  %v3527_v16 = vsel %vm1539_vm13, %v5738_v53, 0  ;;  %v2089_v53 = vsub.s32 1, %v7404_v61 }
 0xf0b   :  { %v6912_v14 = vpop.eup %6911 }
 0xf0c   :  { %v3337_v3 = vmul.f32 %v6912_v14, %v6896_v42  ;;  %6452 = vmatmul.mubr.msk.bf16.vlgmr.msra.gmra.mxu0 %vm1264_vm12, %v3340_v7 }
 0xf0d   :  { %6463 = vmatprep.mubr.msk.bf16.mxu0 %vm6987_vm0, %v6986_v2  ;;  %6462 = vmatpush3.bf16.msra.mxu0 %v3527_v16 }
 0xf0e   :  { %v3341_v9 = vpack.c.bf16 %v3337_v3, %v3336_v6  ;;  %6473 = vmatprep.subr.bf16.mxu0 %v6986_v2 }
 0xf10   :  { %6458 = vmatmul.mubr.msk.bf16.vlgmr.msra.gmra.mxu1 %vm1264_vm12, %v3341_v9 }
 0xf11   :  { %6469 = vmatprep.mubr.msk.bf16.mxu1 %vm6987_vm0, %v6986_v2  ;;  %6468 = vmatpush3.bf16.msra.mxu1 %v3574_v52 }
 0xf12   :  { %6479 = vmatprep.subr.bf16.mxu1 %v6986_v2 }
 0xf9f   :  { %v3379_v12 = vpop.f32.mrf.mxu0 }
 0xfa1   :  { %v6441_v19 = vpop.f32.mrf.mxu0 }
 0xfa3   :  { %v3382_v27 = vpop.f32.mrf.mxu0 }
 0xfa4   :  { %v3518_v29 = vpack.c.bf16 %v3382_v27, %v3379_v12 }
 0xfa5   :  { %v6442_v33 = vpop.f32.mrf.mxu0 }
 0xfa6   :  { %6470 = vmatmul.mubr.msk.bf16.vlgmr.msra.gmra.mxu1 %vm1059_vm5, %v3518_v29 }
 0xfa7   :  { %6480 = vmatpush3.bf16.msra.mxu1 %v3676_v23  ;;  %6481 = vmatprep.mubr.msk.bf16.mxu1 %vm6987_vm0, %v6986_v2 }
 0xfa8   :  { %6493 = vmatprep.subr.bf16.mxu1 %v6986_v2 }
 0xfc8   :  { %v3423_v28 = vpop.f32.mrf.mxu1 }
 0xfca   :  { %v6447_v35 = vpop.f32.mrf.mxu1 }
 0xfcc   :  { %v3426_v36 = vpop.f32.mrf.mxu1  ;;  %v3467_v21 = vpop.f32.mrf.mxu0 }
 0xfcd   :  { %v3520_v22 = vpack.c.bf16 %v3426_v36, %v3423_v28 }
 0xfce   :  { %v6448_v17 = vpop.f32.mrf.mxu1  ;;  %v6453_v41 = vpop.f32.mrf.mxu0 }
 0xfcf   :  { %6464 = vmatmul.mubr.msk.bf16.vlgmr.msra.gmra.mxu0 %vm1059_vm5, %v3520_v22  ;;  %v6797_v22 = vld [vmem:[%s8348_s17 + $0xc8] sm:$0xff]   ;;  %v6800_v17 = vld [vmem:[%s8348_s17 + $0xd0] sm:$0xff]  }
 0xfd0   :  { %v3511_v42 = vpop.f32.mrf.mxu1  ;;  %6474 = vmatpush3.bf16.msra.mxu0 %v3624_v38  ;;  %6475 = vmatprep.mubr.msk.bf16.mxu0 %vm6987_vm0, %v6986_v2  ;;  %v3470_v24 = vpop.f32.mrf.mxu0  ;;  %v6799_v38 = vld [vmem:[%s8348_s17 + $0xc0] sm:$0xff]  }
 0xfd1   :  { %6485 = vmatprep.subr.bf16.mxu0 %v6986_v2  ;;  %v3617_v60 = vpack.c.bf16 %v3470_v24, %v3467_v21  ;;  %v6798_v21 = vld [vmem:[%s8348_s17 + $0xd8] sm:$0xff]  }
 0xfd2   :  { %v6459_v43 = vpop.f32.mrf.mxu1  ;;  %v6454_v45 = vpop.f32.mrf.mxu0 }
 0xfd4   :  { %v3514_v58 = vpop.f32.mrf.mxu1 }
 0xfd5   :  { %v3669_v44 = vpack.c.bf16 %v3514_v58, %v3511_v42 }
 0xfd6   :  { %v6460_v30 = vpop.f32.mrf.mxu1 }
 0xfd7   :  { %6476 = vmatmul.mubr.msk.bf16.vlgmr.msra.gmra.mxu0 %vm1059_vm5, %v3617_v60  ;;  %6482 = vmatmul.mubr.msk.bf16.vlgmr.msra.gmra.mxu1 %vm1059_vm5, %v3669_v44 }
 0xfd8   :  { %6489 = vmatprep.mubr.msk.bf16.mxu0 %vm6987_vm0, %v6986_v2  ;;  %6497 = vmatprep.mubr.msk.bf16.mxu1 %vm6987_vm0, %v6986_v2 }
 0xfd9   :  { %6486 = vmatpush3.bf16.msra.mxu0 %v6797_v22  ;;  %6494 = vmatpush3.bf16.msra.mxu1 %v6798_v21 }
 0xfda   :  { %6487 = vmatprep.subr.bf16.mxu0 %v6986_v2  ;;  %6495 = vmatprep.subr.bf16.mxu1 %v6986_v2 }
 0xfdd   :  { %6488 = vmatpush3.bf16.msra.mxu0 %v6799_v38  ;;  %6496 = vmatpush3.bf16.msra.mxu1 %v6800_v17 }
 0xfde   :  { %6501 = vmatprep.subr.bf16.mxu0 %v6986_v2  ;;  %6509 = vmatprep.subr.bf16.mxu1 %v6986_v2 }
0x1066   :  { %v3610_v46 = vpop.f32.mrf.mxu1 }
0x1068   :  { %v6471_v34 = vpop.f32.mrf.mxu1 }
0x106a   :  { %v3613_v48 = vpop.f32.mrf.mxu1 }
0x106c   :  { %v6472_v50 = vpop.f32.mrf.mxu1 }
0x108f   :  { %v3563_v56 = vpop.f32.mrf.mxu0 }
0x1090   :  { %v3611_v47 = vadd.f32 %v3610_v46, %v3563_v56  ;;  %v5745_v46 = vld [vmem:[%s8368_s28 + $0xa] ss:$0 sm:$0xff] }
0x1091   :  { %v6465_v57 = vpop.f32.mrf.mxu0  ;;  %v6801_v56 = vld [vmem:[%s8348_s17 + $0xe8] sm:$0xff]  }
0x1092   :  { %v6802_v57 = vld [vmem:[%s8348_s17 + $0xf8] sm:$0xff]  }
0x1093   :  { %v3566_v37 = vpop.f32.mrf.mxu0 }
0x1094   :  { %v3614_v5 = vadd.f32 %v3613_v48, %v3566_v37 }
0x1095   :  { %v6466_v59 = vpop.f32.mrf.mxu0 }
0x1097   :  { %v3660_v51 = vpop.f32.mrf.mxu0  ;;  %v3712_v40 = vpop.f32.mrf.mxu1 }
0x1098   :  { %v3667_v62 = vadd.f32 %v3660_v51, %v3611_v47  ;;  %v6803_v51 = vld [vmem:[%s8348_s17 + $0xe0] sm:$0xff]  }
0x1099   :  { %v6477_v1 = vpop.f32.mrf.mxu0  ;;  %v6483_v63 = vpop.f32.mrf.mxu1 }
0x109a   :  { %v3719_v55 = vadd.f32 %v3712_v40, %v3667_v62  ;;  %v6804_v40 = vld [vmem:[%s8348_s17 + $0xf0] sm:$0xff]  }
0x109b   :  { %v3663_v54 = vpop.f32.mrf.mxu0  ;;  %v3715_v14 = vpop.f32.mrf.mxu1 }
0x109c   :  { %v7937_v7 = vadd.f32 %v3719_v55, %v7635_v25  ;;  %v3668_v6 = vadd.f32 %v3663_v54, %v3614_v5  ;;  %v2081_v25 = vld [vmem:[%s8346_s15] sm:$0x3]  ;;  %s6990_s15 = smov 96   ;;  %v6805_v54 = vld [vmem:[%s8348_s17 + $0x108] sm:$0xff]  }
0x109d   :  { %v6478_v3 = vpop.f32.mrf.mxu0  ;;  %v6484_v9 = vpop.f32.mrf.mxu1  ;;  %v2090_v18 = vrot.slane %v2081_v25, %v2089_v53  ;;  %v2086_v29 = vrot.slane %v2081_v25, %v7420_v10 }
0x109e   :  { %v3720_v49 = vadd.f32 %v3715_v14, %v3668_v6  ;;  %v3732_v52 = vmul.f32 %v7937_v7, %v7937_v7  ;;  %v6806_v14 = vld [vmem:[%s8348_s17 + $0x118] sm:$0xff]  }
0x109f   :  { %v7954_v61 = vadd.f32 %v7819_v39, %v2090_v18 }
0x10a0   :  { %v7943_v16 = vadd.f32 %v3720_v49, %v7640_v31  ;;  %v3734_v12 = vsel %vm187_vm4, %v3732_v52, 0.0  ;;  %v7957_v31 = vadd.f32 %v7817_v32, %v2086_v29  ;;  %v6810_v29 = vld [vmem:[%s8348_s17 + $0x138] sm:$0xff]  }
0x10a1   :  { %3735 = vadd.xlane.f32.xlu1 %v3734_v12  ;;  %v2171_v23 = vrot.slane %v7954_v61, 6  ;;  %v2179_v35 = vrot.slane %v7954_v61, 2  ;;  %v2175_v10 = vrot.slane %v7954_v61, 4  ;;  %v6807_v12 = vld [vmem:[%s8348_s17 + $0x100] sm:$0xff]  }
0x10a2   :  { %v3733_v19 = vmul.f32 %v7943_v16, %v7943_v16  ;;  %v2158_v33 = vrot.slane %v7957_v31, 6  ;;  %v2166_v26 = vrot.slane %v7957_v31, 2  ;;  %v2162_v39 = vrot.slane %v7957_v31, 4 }
0x10a4   :  { %v3737_v27 = vsel %vm187_vm4, %v3733_v19, 0.0  ;;  %v6706_v28 = vpack.i.bf16 %v2171_v23, %v2158_v33  ;;  %v6716_v36 = vpack.i.bf16 %v2179_v35, %v2166_v26  ;;  %v6711_v32 = vpack.i.bf16 %v2175_v10, %v2162_v39  ;;  %v6808_v19 = vld [vmem:[%s8348_s17 + $0x110] sm:$0xff]   ;;  %v6813_v33 = vld [vmem:[%s8348_s17 + $0x148] sm:$0xff]   ;;  %v6815_v35 = vld [vmem:[%s8348_s17 + $0x140] sm:$0xff]  }
0x10a5   :  { %3738 = vadd.xlane.f32.xlu0 %v3737_v27  ;;  %v6809_v27 = vld [vmem:[%s8348_s17 + $0x128] sm:$0xff]   ;;  %v6812_v23 = vld [vmem:[%s8348_s17 + $0x130] sm:$0xff]   ;;  %v6818_v10 = vld [vmem:[%s8348_s17 + $0x178] sm:$0xff]  }
0x10a6   :  { %v6816_v26 = vld [vmem:[%s8348_s17 + $0x150] sm:$0xff]   ;;  %v6819_v39 = vld [vmem:[%s8348_s17 + $0x160] sm:$0xff]  }
0x10b2   :  { %6707 = vrot.lane.b32.xlu1 %v6706_v28, %s6990_s15  ;;  %v6814_v28 = vld [vmem:[%s8348_s17 + $0x158] sm:$0xff]  }
0x10b6   :  { %6717 = vrot.lane.b32.xlu1 %v6716_v36, %s6991_s12  ;;  %v6817_v36 = vld [vmem:[%s8348_s17 + $0x168] sm:$0xff]  }
0x10bb   :  { %6712 = vrot.lane.b32.xlu0 %v6711_v32, %s6992_s23  ;;  %v6820_v32 = vld [vmem:[%s8348_s17 + $0x170] sm:$0xff]  }
0x112a   :  { %v3736_v41 = vpop.xlane.xlu1 %3735 }
0x112b   :  { %v3740_v42 = vmul.f32 0.03125, %v3736_v41 }
0x112d   :  { %v3742_v24 = vadd.f32 1e-06, %v3740_v42 }
0x112e   :  { %v3739_v43 = vpop.xlane.xlu0 %3738  ;;  %v6708_v37 = vpop.permute.xlu1 %6707 }
0x112f   :  { %6913 = vrsqrt.f32 %v3742_v24  ;;  %v3741_v45 = vmul.f32 0.03125, %v3739_v43  ;;  %v6710_v62 = vunpack.i.h.bf16 %v6708_v37  ;;  %v6709_v1 = vunpack.i.l.bf16 %v6708_v37 }
0x1131   :  { %v3743_v58 = vadd.f32 1e-06, %v3741_v45  ;;  %v2188_v6 = vsel %vm2183_vm7, %v7954_v61, %v6710_v62  ;;  %v2184_v3 = vsel %vm2183_vm7, %v7957_v31, %v6709_v1  ;;  %v6811_v31 = vld [vmem:[%s8348_s17 + $0x120] sm:$0xff]  }
0x1132   :  { %v6713_v47 = vpop.permute.xlu0 %6712  ;;  %v6718_v55 = vpop.permute.xlu1 %6717 }
0x1133   :  { %6915 = vrsqrt.f32 %v3743_v58  ;;  %v6715_v63 = vunpack.i.h.bf16 %v6713_v47  ;;  %v6714_v5 = vunpack.i.l.bf16 %v6713_v47  ;;  %v6720_v9 = vunpack.i.h.bf16 %v6718_v55 }
0x1134   :  { %v6719_v49 = vunpack.i.l.bf16 %v6718_v55 }
0x1135   :  { %v2185_v52 = vsel %vm1539_vm13, %v2184_v3, %v6714_v5  ;;  %v2189_v53 = vsel %vm1539_vm13, %v2188_v6, %v6715_v63 }
0x1136   :  { %v2187_v25 = vsel %vm2186_vm10, %v2185_v52, %v6719_v49  ;;  %v2190_v18 = vsel %vm2186_vm10, %v2189_v53, %v6720_v9 }
0x1137   :  { %v2191_v61 = vpack.c.bf16 %v2190_v18, %v2187_v25 }
0x113c   :  { %v6914_v60 = vpop.eup %6913 }
0x113d   :  { %v3746_v44 = vmul.f32 %v6914_v60, %v7937_v7 }
0x113f   :  { %v3752_v48 = vmul.f32 %v5745_v46, %v3746_v44 }
0x1140   :  { %v6916_v30 = vpop.eup %6915 }
0x1141   :  { %v3747_v34 = vmul.f32 %v6916_v30, %v7943_v16 }
0x1143   :  { %v3753_v50 = vmul.f32 %v5745_v46, %v3747_v34 }
0x1145   :  { %v3754_v59 = vpack.c.bf16 %v3753_v50, %v3752_v48 }
0x1147   :  { %6490 = vmatmul.mubr.msk.bf16.vlgmr.msra.gmra.mxu0 %vm187_vm4, %v3754_v59  ;;  %6498 = vmatmul.mubr.msk.bf16.vlgmr.msra.gmra.mxu1 %vm187_vm4, %v3754_v59 }
0x1148   :  { %6502 = vmatpush3.bf16.msra.mxu0 %v6801_v56  ;;  %6510 = vmatpush3.bf16.msra.mxu1 %v6802_v57 }
0x1149   :  { %6503 = vmatprep.subr.bf16.mxu0 %v6986_v2  ;;  %6511 = vmatprep.subr.bf16.mxu1 %v6986_v2 }
0x114a   :  { %6505 = vmatprep.mubr.msk.bf16.mxu0 %vm6987_vm0, %v6986_v2  ;;  %6513 = vmatprep.mubr.msk.bf16.mxu1 %vm6987_vm0, %v6986_v2 }
0x114c   :  { %6504 = vmatpush3.bf16.msra.mxu0 %v6803_v51  ;;  %6512 = vmatpush3.bf16.msra.mxu1 %v6804_v40 }
0x114d   :  { %6517 = vmatprep.subr.bf16.mxu0 %v6986_v2  ;;  %6525 = vmatprep.subr.bf16.mxu1 %v6986_v2 }
0x114f   :  { %6506 = vmatmul.mubr.msk.bf16.vlgmr.msra.gmra.mxu0 %vm187_vm4, %v3754_v59  ;;  %6514 = vmatmul.mubr.msk.bf16.vlgmr.msra.gmra.mxu1 %vm187_vm4, %v3754_v59 }
0x1150   :  { %6518 = vmatpush3.bf16.msra.mxu0 %v6805_v54  ;;  %6526 = vmatpush3.bf16.msra.mxu1 %v6806_v14 }
0x1151   :  { %6519 = vmatprep.subr.bf16.mxu0 %v6986_v2  ;;  %6527 = vmatprep.subr.bf16.mxu1 %v6986_v2 }
0x1152   :  { %6521 = vmatprep.mubr.msk.bf16.mxu0 %vm6987_vm0, %v6986_v2  ;;  %6529 = vmatprep.mubr.msk.bf16.mxu1 %vm6987_vm0, %v6986_v2 }
0x1154   :  { %6520 = vmatpush3.bf16.msra.mxu0 %v6807_v12  ;;  %6528 = vmatpush3.bf16.msra.mxu1 %v6808_v19 }
0x1155   :  { %6533 = vmatprep.subr.bf16.mxu0 %v6986_v2  ;;  %6541 = vmatprep.subr.bf16.mxu1 %v6986_v2 }
0x1157   :  { %6522 = vmatmul.mubr.msk.bf16.vlgmr.msra.gmra.mxu0 %vm187_vm4, %v2191_v61  ;;  %6530 = vmatmul.mubr.msk.bf16.vlgmr.msra.gmra.mxu1 %vm187_vm4, %v2191_v61 }
0x1158   :  { %6534 = vmatpush3.bf16.msra.mxu0 %v6809_v27  ;;  %6542 = vmatpush3.bf16.msra.mxu1 %v6810_v29 }
0x1159   :  { %6535 = vmatprep.subr.bf16.mxu0 %v6986_v2  ;;  %6543 = vmatprep.subr.bf16.mxu1 %v6986_v2 }
0x115a   :  { %6537 = vmatprep.mubr.msk.bf16.mxu0 %vm6987_vm0, %v6986_v2  ;;  %6545 = vmatprep.mubr.msk.bf16.mxu1 %vm6987_vm0, %v6986_v2 }
0x115c   :  { %6536 = vmatpush3.bf16.msra.mxu0 %v6811_v31  ;;  %6544 = vmatpush3.bf16.msra.mxu1 %v6812_v23 }
0x115d   :  { %6549 = vmatprep.subr.bf16.mxu0 %v6986_v2  ;;  %6557 = vmatprep.subr.bf16.mxu1 %v6986_v2 }
0x115f   :  { %6538 = vmatmul.mubr.msk.bf16.vlgmr.msra.gmra.mxu0 %vm187_vm4, %v2191_v61  ;;  %6546 = vmatmul.mubr.msk.bf16.vlgmr.msra.gmra.mxu1 %vm187_vm4, %v2191_v61 }
0x1160   :  { %6550 = vmatpush3.bf16.msra.mxu0 %v6813_v33  ;;  %6558 = vmatpush3.bf16.msra.mxu1 %v6814_v28 }
0x1161   :  { %6551 = vmatprep.subr.bf16.mxu0 %v6986_v2  ;;  %6559 = vmatprep.subr.bf16.mxu1 %v6986_v2 }
0x1162   :  { %6553 = vmatprep.mubr.msk.bf16.mxu0 %vm6987_vm0, %v6986_v2  ;;  %6561 = vmatprep.mubr.msk.bf16.mxu1 %vm6987_vm0, %v6986_v2 }
0x1164   :  { %6552 = vmatpush3.bf16.msra.mxu0 %v6815_v35  ;;  %6560 = vmatpush3.bf16.msra.mxu1 %v6816_v26 }
0x1165   :  { %6565 = vmatprep.subr.bf16.mxu0 %v6986_v2  ;;  %6573 = vmatprep.subr.bf16.mxu1 %v6986_v2 }
0x1167   :  { %6554 = vmatmul.mubr.msk.bf16.vlgmr.msra.gmra.mxu0 %vm187_vm4, %v2191_v61  ;;  %6562 = vmatmul.mubr.msk.bf16.vlgmr.msra.gmra.mxu1 %vm187_vm4, %v2191_v61 }
0x1168   :  { %6566 = vmatpush3.bf16.msra.mxu0 %v6817_v36  ;;  %6574 = vmatpush3.bf16.msra.mxu1 %v6818_v10 }
0x1169   :  { %6567 = vmatprep.subr.bf16.mxu0 %v6986_v2  ;;  %6575 = vmatprep.subr.bf16.mxu1 %v6986_v2 }
0x116a   :  { %6569 = vmatprep.mubr.msk.bf16.mxu0 %vm6987_vm0, %v6986_v2  ;;  %6577 = vmatprep.mubr.msk.bf16.mxu1 %vm6987_vm0, %v6986_v2 }
0x116c   :  { %6568 = vmatpush3.bf16.msra.mxu0 %v6819_v39  ;;  %6576 = vmatpush3.bf16.msra.mxu1 %v6820_v32 }
0x116d   :  { %6581 = vmatprep.subr.bf16.mxu0 %v6986_v2  ;;  %6587 = vmatprep.subr.bf16.mxu1 %v6986_v2 }
0x116f   :  { %6570 = vmatmul.mubr.msk.bf16.vlgmr.msra.gmra.mxu0 %vm187_vm4, %v2191_v61  ;;  %6578 = vmatmul.mubr.msk.bf16.vlgmr.msra.gmra.mxu1 %vm187_vm4, %v2191_v61 }
0x1170   :  { %6583 = vmatprep.mubr.msk.bf16.mxu0 %vm6987_vm0, %v6986_v2  ;;  %6589 = vmatprep.mubr.msk.bf16.mxu1 %vm6987_vm0, %v6986_v2 }
0x1207   :  { %v3809_v22 = vpop.f32.mrf.mxu0  ;;  %v3868_v21 = vpop.f32.mrf.mxu1 }
0x1209   :  { %v6491_v38 = vpop.f32.mrf.mxu0  ;;  %v6499_v17 = vpop.f32.mrf.mxu1 }
0x120b   :  { %v3812_v41 = vpop.f32.mrf.mxu0  ;;  %v3871_v42 = vpop.f32.mrf.mxu1 }
0x120c   :  { %v3816_v49 = vpack.c.bf16 %v3812_v41, %v3809_v22  ;;  %v3875_v52 = vpack.c.bf16 %v3871_v42, %v3868_v21 }
0x120d   :  { %v6492_v24 = vpop.f32.mrf.mxu0  ;;  %v6500_v43 = vpop.f32.mrf.mxu1 }
0x120f   :  { %v3927_v45 = vpop.f32.mrf.mxu0  ;;  %v3986_v58 = vpop.f32.mrf.mxu1 }
0x1211   :  { %v6507_v60 = vpop.f32.mrf.mxu0  ;;  %v6515_v44 = vpop.f32.mrf.mxu1 }
0x1212   :  { %v3723_v60 = vmul.f32 0.5, %v7411_v0 }
0x1213   :  { %v3930_v30 = vpop.f32.mrf.mxu0  ;;  %v3989_v46 = vpop.f32.mrf.mxu1 }
0x1214   :  { %v3934_v35 = vpack.c.bf16 %v3930_v30, %v3927_v45  ;;  %v3993_v26 = vpack.c.bf16 %v3989_v46, %v3986_v58  ;;  %v3724_v44 = vfloor.f32 %v3723_v60 }
0x1215   :  { %v6508_v34 = vpop.f32.mrf.mxu0  ;;  %v6516_v48 = vpop.f32.mrf.mxu1 }
0x1216   :  { %v3725_v30 = vmul.f32 2.0, %v3724_v44 }
0x1217   :  { %v4048_v50 = vpop.f32.mrf.mxu0  ;;  %v4107_v56 = vpop.f32.mrf.mxu1 }
0x1218   :  { %v3726_v46 = vsub.f32 %v7411_v0, %v3725_v30 }
0x1219   :  { %v6523_v57 = vpop.f32.mrf.mxu0  ;;  %v6531_v37 = vpop.f32.mrf.mxu1 }
0x121a   :  { %vm3727_vm6 = vcmp.eq.f32.partialorder %v234_v8, %v3726_v46  ;;  %vm3728_vm8 = vcmp.eq.f32.partialorder %v235_v15, %v3726_v46 }
0x121b   :  { %v4051_v59 = vpop.f32.mrf.mxu0  ;;  %v4110_v47 = vpop.f32.mrf.mxu1  ;;  %v3729_v34 = vsel %vm3727_vm6, 0.0, %v6988_v20 }
0x121c   :  { %v4055_v51 = vpack.c.bf16 %v4051_v59, %v4048_v50  ;;  %v4114_v40 = vpack.c.bf16 %v4110_v47, %v4107_v56  ;;  %v3730_v59 = vsel %vm3728_vm8, 0.0, %v6988_v20 }
0x121d   :  { %v6524_v62 = vpop.f32.mrf.mxu0  ;;  %v6532_v1 = vpop.f32.mrf.mxu1 }
0x121e   :  { %v4473_v63 = vsel %vm1059_vm5, %v4055_v51, 0  ;;  %v4520_v5 = vsel %vm1059_vm5, %v4114_v40, 0 }
0x121f   :  { %v4166_v55 = vpop.f32.mrf.mxu0  ;;  %v4225_v54 = vpop.f32.mrf.mxu1  ;;  %6582 = vmatpush3.bf16.xpose.msra.mxu0 %v4473_v63  ;;  %6588 = vmatpush3.bf16.xpose.msra.mxu1 %v4520_v5 }
0x1220   :  { %6593 = vmatprep.subr.bf16.mxu0 %v6986_v2  ;;  %6599 = vmatprep.subr.bf16.mxu1 %v6986_v2 }
0x1221   :  { %v6539_v14 = vpop.f32.mrf.mxu0  ;;  %v6547_v6 = vpop.f32.mrf.mxu1 }
0x1223   :  { %v4169_v3 = vpop.f32.mrf.mxu0  ;;  %v4228_v9 = vpop.f32.mrf.mxu1 }
0x1224   :  { %v4173_v53 = vpack.c.bf16 %v4169_v3, %v4166_v55  ;;  %v4232_v12 = vpack.c.bf16 %v4228_v9, %v4225_v54 }
0x1225   :  { %v6540_v19 = vpop.f32.mrf.mxu0  ;;  %v6548_v25 = vpop.f32.mrf.mxu1 }
0x1226   :  { %v4567_v18 = vsel %vm1059_vm5, %v4173_v53, 0  ;;  %v4614_v27 = vsel %vm1059_vm5, %v4232_v12, 0  ;;  %6584 = vmatmul.mubr.msk.bf16.vlgmr.msra.gmra.mxu0 %vm1059_vm5, %v3816_v49  ;;  %6590 = vmatmul.mubr.msk.bf16.vlgmr.msra.gmra.mxu1 %vm1059_vm5, %v3875_v52 }
0x1227   :  { %v4284_v29 = vpop.f32.mrf.mxu0  ;;  %v4343_v61 = vpop.f32.mrf.mxu1  ;;  %6594 = vmatpush3.bf16.xpose.msra.mxu0 %v4567_v18  ;;  %6600 = vmatpush3.bf16.xpose.msra.mxu1 %v4614_v27 }
0x1228   :  { %6595 = vmatprep.mubr.msk.bf16.mxu0 %vm6987_vm0, %v6986_v2  ;;  %6601 = vmatprep.mubr.msk.bf16.mxu1 %vm6987_vm0, %v6986_v2 }
0x1229   :  { %v6555_v31 = vpop.f32.mrf.mxu0  ;;  %v6563_v23 = vpop.f32.mrf.mxu1  ;;  %6605 = vmatprep.subr.bf16.mxu0 %v6986_v2  ;;  %6611 = vmatprep.subr.bf16.mxu1 %v6986_v2 }
0x122b   :  { %v4287_v33 = vpop.f32.mrf.mxu0  ;;  %v4346_v28 = vpop.f32.mrf.mxu1 }
0x122c   :  { %v4291_v36 = vpack.c.bf16 %v4287_v33, %v4284_v29  ;;  %v4350_v10 = vpack.c.bf16 %v4346_v28, %v4343_v61 }
0x122d   :  { %v6556_v39 = vpop.f32.mrf.mxu0  ;;  %v6564_v32 = vpop.f32.mrf.mxu1 }
0x122e   :  { %6596 = vmatmul.mubr.msk.bf16.vlgmr.msra.gmra.mxu0 %vm1059_vm5, %v3934_v35  ;;  %6602 = vmatmul.mubr.msk.bf16.vlgmr.msra.gmra.mxu1 %vm1059_vm5, %v3993_v26 }
0x122f   :  { %v8122_v22 = vpop.f32.mrf.mxu0  ;;  %v8124_v21 = vpop.f32.mrf.mxu1  ;;  %6606 = vmatpush3.bf16.msra.mxu0 %v4291_v36  ;;  %6612 = vmatpush3.bf16.msra.mxu1 %v4350_v10 }
0x1230   :  { %6607 = vmatprep.mubr.msk.bf16.mxu0 %vm6987_vm0, %v6986_v2  ;;  %6617 = vmatprep.subr.bf16.mxu0 %v6986_v2 }
0x1231   :  { %v6571_v38 = vpop.f32.mrf.mxu0  ;;  %v6579_v17 = vpop.f32.mrf.mxu1  ;;  %6613 = vmatprep.mubr.msk.bf16.mxu1 %vm6987_vm0, %v6986_v2  ;;  %6623 = vmatprep.subr.bf16.mxu1 %v6986_v2 }
0x1233   :  { %v8132_v41 = vpop.f32.mrf.mxu0  ;;  %v8134_v42 = vpop.f32.mrf.mxu1 }
0x1234   :  { %v4409_v24 = vpack.c.bf16 %v8132_v41, %v8122_v22  ;;  %v4468_v43 = vpack.c.bf16 %v8134_v42, %v8124_v21  ;;  %v5838_v21 = vld [vmem:[%s8349_s18 + $0x10] sm:$0xf] }
0x1235   :  { %v6572_v45 = vpop.f32.mrf.mxu0  ;;  %v6580_v58 = vpop.f32.mrf.mxu1  ;;  %v4982_v42 = vsel %vm1539_vm13, %v5838_v21, 0 }
0x12e6   :  { %v4509_v48 = vpop.f32.mrf.mxu0  ;;  %v4556_v50 = vpop.f32.mrf.mxu1 }
0x12e7   :  { %v4510_v56 = vadd.f32 %v4509_v48, %v3729_v34  ;;  %v4557_v1 = vadd.f32 %v4556_v50, %v3729_v34 }
0x12e8   :  { %v6585_v57 = vpop.f32.mrf.mxu0  ;;  %v6591_v37 = vpop.f32.mrf.mxu1 }
0x12e9   :  { %v4657_v47 = vsel %vm1264_vm12, %v4510_v56, -inf  ;;  %v4663_v14 = vsel %vm1264_vm12, %v4557_v1, -inf }
0x12ea   :  { %v4559_v51 = vpop.f32.mrf.mxu1  ;;  %4658 = vmax.xlane.f32.xlu1 %v4657_v47  ;;  %v4512_v0 = vpop.f32.mrf.mxu0 }
0x12eb   :  { %v4560_v40 = vadd.f32 %v4559_v51, %v3730_v59  ;;  %v4513_v4 = vadd.f32 %v4512_v0, %v3730_v59 }
0x12ec   :  { %v6586_v8 = vpop.f32.mrf.mxu0  ;;  %v6592_v62 = vpop.f32.mrf.mxu1 }
0x12ed   :  { %v4666_v13 = vsel %vm1264_vm12, %v4560_v40, -inf  ;;  %v4660_v15 = vsel %vm1264_vm12, %v4513_v4, -inf }
0x12ee   :  { %v4650_v63 = vpop.f32.mrf.mxu1  ;;  %4667 = vmax.xlane.f32.xlu1 %v4666_v13  ;;  %4661 = vmax.xlane.f32.xlu0 %v4660_v15  ;;  %v4603_v5 = vpop.f32.mrf.mxu0 }
0x12ef   :  { %v4604_v54 = vadd.f32 %v4603_v5, %v3729_v34  ;;  %v4651_v53 = vadd.f32 %v4650_v63, %v3729_v34 }
0x12f0   :  { %v6597_v55 = vpop.f32.mrf.mxu0  ;;  %v6603_v20 = vpop.f32.mrf.mxu1 }
0x12f1   :  { %v4669_v19 = vsel %vm1264_vm12, %v4604_v54, -inf  ;;  %v4675_v18 = vsel %vm1264_vm12, %v4651_v53, -inf }
0x12f2   :  { %v4653_v6 = vpop.f32.mrf.mxu1  ;;  %4664 = vmax.xlane.f32.xlu0 %v4663_v14  ;;  %v4606_v3 = vpop.f32.mrf.mxu0 }
0x12f3   :  { %v4607_v9 = vadd.f32 %v4606_v3, %v3730_v59  ;;  %v4654_v12 = vadd.f32 %v4653_v6, %v3730_v59 }
0x12f4   :  { %v6598_v49 = vpop.f32.mrf.mxu0  ;;  %v6604_v52 = vpop.f32.mrf.mxu1 }
0x12f5   :  { %v4672_v25 = vsel %vm1264_vm12, %v4607_v9, -inf  ;;  %v4678_v27 = vsel %vm1264_vm12, %v4654_v12, -inf }
0x12f6   :  { %4670 = vmax.xlane.f32.xlu0 %v4669_v19  ;;  %4673 = vmax.xlane.f32.xlu1 %v4672_v25 }
0x12fa   :  { %4676 = vmax.xlane.f32.xlu0 %v4675_v18  ;;  %4679 = vmax.xlane.f32.xlu1 %v4678_v27 }
0x1373   :  { %v4659_v29 = vpop.xlane.xlu1 %4658 }
0x1374   :  { %v4681_v61 = vsub.f32 %v4510_v56, %v4659_v29 }
0x1376   :  { %v4689_v31 = vmul.f32 1.442695, %v4681_v61 }
0x1377   :  { %v4668_v23 = vpop.xlane.xlu1 %4667  ;;  %v4662_v33 = vpop.xlane.xlu0 %4661 }
0x1378   :  { %6917 = vpow2.f32 %v4689_v31  ;;  %v4684_v28 = vsub.f32 %v4560_v40, %v4668_v23  ;;  %v4682_v35 = vsub.f32 %v4513_v4, %v4662_v33 }
0x137a   :  { %v4691_v26 = vmul.f32 1.442695, %v4682_v35  ;;  %v4695_v36 = vmul.f32 1.442695, %v4684_v28 }
0x137b   :  { %v4665_v10 = vpop.xlane.xlu0 %4664 }
0x137c   :  { %v4683_v39 = vsub.f32 %v4557_v1, %v4665_v10  ;;  %6919 = vpow2.f32 %v4691_v26 }
0x137d   :  { %6921 = vpow2.f32 %v4695_v36 }
0x137e   :  { %v4693_v32 = vmul.f32 1.442695, %v4683_v39 }
0x137f   :  { %v4671_v38 = vpop.xlane.xlu0 %4670  ;;  %v4674_v17 = vpop.xlane.xlu1 %4673 }
0x1380   :  { %6923 = vpow2.f32 %v4693_v32  ;;  %v4685_v45 = vsub.f32 %v4604_v54, %v4671_v38  ;;  %v4686_v58 = vsub.f32 %v4607_v9, %v4674_v17 }
0x1382   :  { %v4697_v60 = vmul.f32 1.442695, %v4685_v45  ;;  %v4699_v44 = vmul.f32 1.442695, %v4686_v58  ;;  %v5844_v45 = vld [vmem:[%s8349_s18 + $0x1c] sm:$0xf] }
0x1383   :  { %v4677_v30 = vpop.xlane.xlu0 %4676  ;;  %v4680_v46 = vpop.xlane.xlu1 %4679 }
0x1384   :  { %6925 = vpow2.f32 %v4697_v60  ;;  %v4687_v34 = vsub.f32 %v4651_v53, %v4677_v30  ;;  %v4688_v48 = vsub.f32 %v4654_v12, %v4680_v46  ;;  %v5084_v30 = vsel %vm1539_vm13, %v5844_v45, 0 }
0x1385   :  { %v6918_v50 = vpop.eup %6917  ;;  %6927 = vpow2.f32 %v4699_v44 }
0x1386   :  { %v4701_v56 = vmul.f32 1.442695, %v4687_v34  ;;  %v4703_v57 = vmul.f32 1.442695, %v4688_v48  ;;  %v4705_v37 = vsel %vm1264_vm12, %v6918_v50, 0.0 }
0x1387   :  { %4706 = vadd.xlane.f32.xlu0 %v4705_v37  ;;  %v5842_v48 = vld [vmem:[%s8349_s18 + $0x18] sm:$0xf] }
0x1388   :  { %6929 = vpow2.f32 %v4701_v56  ;;  %v5032_v37 = vsel %vm1539_vm13, %v5842_v48, 0  ;;  %v6826_v48 = vld [vmem:[%s8351_s20] sm:$0xff]  }
0x1389   :  { %6931 = vpow2.f32 %v4703_v57  ;;  %v6920_v59 = vpop.eup %6919 }
0x138a   :  { %v4708_v47 = vsel %vm1264_vm12, %v6920_v59, 0.0  ;;  %v6922_v51 = vpop.eup %6921 }
0x138b   :  { %4709 = vadd.xlane.f32.xlu1 %v4708_v47  ;;  %v4714_v4 = vsel %vm1264_vm12, %v6922_v51, 0.0 }
0x138d   :  { %v6924_v0 = vpop.eup %6923 }
0x138e   :  { %v4711_v40 = vsel %vm1264_vm12, %v6924_v0, 0.0 }
0x138f   :  { %4712 = vadd.xlane.f32.xlu0 %v4711_v40  ;;  %4715 = vadd.xlane.f32.xlu1 %v4714_v4 }
0x1391   :  { %v6926_v8 = vpop.eup %6925 }
0x1392   :  { %v6928_v62 = vpop.eup %6927  ;;  %v4717_v1 = vsel %vm1264_vm12, %v6926_v8, 0.0 }
0x1393   :  { %4718 = vadd.xlane.f32.xlu0 %v4717_v1  ;;  %v4720_v13 = vsel %vm1264_vm12, %v6928_v62, 0.0 }
0x1394   :  { %4721 = vadd.xlane.f32.xlu1 %v4720_v13 }
0x1395   :  { %v6930_v15 = vpop.eup %6929 }
0x1396   :  { %v6932_v63 = vpop.eup %6931  ;;  %v4723_v5 = vsel %vm1264_vm12, %v6930_v15, 0.0 }
0x1397   :  { %4724 = vadd.xlane.f32.xlu0 %v4723_v5  ;;  %v4726_v55 = vsel %vm1264_vm12, %v6932_v63, 0.0 }
0x1398   :  { %4727 = vadd.xlane.f32.xlu1 %v4726_v55 }
0x1410   :  { %v4707_v20 = vpop.xlane.xlu0 %4706 }
0x1411   :  { %6933 = vrcp.f32 %v4707_v20 }
0x1414   :  { %v4710_v54 = vpop.xlane.xlu1 %4709 }
0x1415   :  { %6935 = vrcp.f32 %v4710_v54 }
0x1418   :  { %v4713_v14 = vpop.xlane.xlu0 %4712  ;;  %v4716_v6 = vpop.xlane.xlu1 %4715 }
0x1419   :  { %6937 = vrcp.f32 %v4713_v14 }
0x141a   :  { %6939 = vrcp.f32 %v4716_v6 }
0x141c   :  { %v4719_v3 = vpop.xlane.xlu0 %4718 }
0x141d   :  { %6941 = vrcp.f32 %v4719_v3  ;;  %v4722_v9 = vpop.xlane.xlu1 %4721 }
0x141e   :  { %6943 = vrcp.f32 %v4722_v9  ;;  %v6934_v52 = vpop.eup %6933 }
0x141f   :  { %v4737_v19 = vmul.f32 %v6934_v52, %v6918_v50 }
0x1420   :  { %v4725_v49 = vpop.xlane.xlu0 %4724 }
0x1421   :  { %6945 = vrcp.f32 %v4725_v49  ;;  %v4728_v53 = vpop.xlane.xlu1 %4727 }
0x1422   :  { %6947 = vrcp.f32 %v4728_v53  ;;  %v6936_v12 = vpop.eup %6935 }
0x1423   :  { %v4738_v25 = vmul.f32 %v6936_v12, %v6920_v59 }
0x1425   :  { %v4745_v27 = vpack.c.bf16 %v4738_v25, %v4737_v19 }
0x1426   :  { %v6938_v18 = vpop.eup %6937 }
0x1427   :  { %v6940_v29 = vpop.eup %6939  ;;  %v4739_v61 = vmul.f32 %v6938_v18, %v6924_v0  ;;  %6608 = vmatmul.mubr.msk.bf16.vlgmr.msra.gmra.mxu0 %vm1264_vm12, %v4745_v27 }
0x1428   :  { %v4740_v31 = vmul.f32 %v6940_v29, %v6922_v51  ;;  %6618 = vmatpush3.bf16.msra.mxu0 %v4409_v24  ;;  %6619 = vmatprep.mubr.msk.bf16.mxu0 %vm6987_vm0, %v6986_v2 }
0x1429   :  { %6629 = vmatprep.subr.bf16.mxu0 %v6986_v2 }
0x142a   :  { %v6942_v23 = vpop.eup %6941  ;;  %v4746_v33 = vpack.c.bf16 %v4740_v31, %v4739_v61 }
0x142b   :  { %v6944_v28 = vpop.eup %6943  ;;  %v4741_v35 = vmul.f32 %v6942_v23, %v6926_v8 }
0x142c   :  { %v4742_v26 = vmul.f32 %v6944_v28, %v6928_v62  ;;  %6614 = vmatmul.mubr.msk.bf16.vlgmr.msra.gmra.mxu1 %vm1264_vm12, %v4746_v33 }
0x142d   :  { %6624 = vmatpush3.bf16.msra.mxu1 %v4468_v43  ;;  %6625 = vmatprep.mubr.msk.bf16.mxu1 %vm6987_vm0, %v6986_v2  ;;  %v5839_v43 = vld [vmem:[%s8349_s18 + $0x14] sm:$0xf] }
0x142e   :  { %v6946_v22 = vpop.eup %6945  ;;  %v4747_v41 = vpack.c.bf16 %v4742_v26, %v4741_v35  ;;  %6635 = vmatprep.subr.bf16.mxu1 %v6986_v2  ;;  %v4935_v32 = vsel %vm1539_vm13, %v5839_v43, 0 }
0x142f   :  { %v6948_v24 = vpop.eup %6947  ;;  %v4743_v36 = vmul.f32 %v6946_v22, %v6930_v15 }
0x1430   :  { %v4744_v10 = vmul.f32 %v6948_v24, %v6932_v63  ;;  %6620 = vmatmul.mubr.msk.bf16.vlgmr.msra.gmra.mxu0 %vm1264_vm12, %v4747_v41  ;;  %v6823_v24 = vld [vmem:[%s8351_s20 + $0x18] sm:$0xff]  }
0x1431   :  { %6631 = vmatprep.mubr.msk.bf16.mxu0 %vm6987_vm0, %v6986_v2  ;;  %6630 = vmatpush3.bf16.msra.mxu0 %v4935_v32 }
0x1432   :  { %v4748_v39 = vpack.c.bf16 %v4744_v10, %v4743_v36  ;;  %6641 = vmatprep.subr.bf16.mxu0 %v6986_v2  ;;  %v6824_v36 = vld [vmem:[%s8351_s20 + $0x10] sm:$0xff]  }
0x1434   :  { %6626 = vmatmul.mubr.msk.bf16.vlgmr.msra.gmra.mxu1 %vm1264_vm12, %v4748_v39 }
0x1435   :  { %6637 = vmatprep.mubr.msk.bf16.mxu1 %vm6987_vm0, %v6986_v2  ;;  %6636 = vmatpush3.bf16.msra.mxu1 %v4982_v42 }
0x1436   :  { %6647 = vmatprep.subr.bf16.mxu1 %v6986_v2 }
0x14e7   :  { %v4786_v38 = vpop.f32.mrf.mxu0 }
0x14e9   :  { %v6609_v17 = vpop.f32.mrf.mxu0 }
0x14eb   :  { %v4789_v58 = vpop.f32.mrf.mxu0 }
0x14ec   :  { %v4830_v60 = vpop.f32.mrf.mxu1  ;;  %v4925_v44 = vpack.c.bf16 %v4789_v58, %v4786_v38  ;;  %v5846_v58 = vld [vmem:[%s8368_s28 + $0xb] ss:$0 sm:$0xff] }
0x14ed   :  { %v6610_v46 = vpop.f32.mrf.mxu0 }
0x14ee   :  { %v6615_v34 = vpop.f32.mrf.mxu1  ;;  %6638 = vmatmul.mubr.msk.bf16.vlgmr.msra.gmra.mxu1 %vm1059_vm5, %v4925_v44 }
0x14ef   :  { %6648 = vmatpush3.bf16.msra.mxu1 %v5084_v30  ;;  %6649 = vmatprep.mubr.msk.bf16.mxu1 %vm6987_vm0, %v6986_v2  ;;  %v6825_v34 = vld [vmem:[%s8351_s20 + $0x8] sm:$0xff]  }
0x14f0   :  { %v4833_v50 = vpop.f32.mrf.mxu1  ;;  %v4874_v56 = vpop.f32.mrf.mxu0  ;;  %6661 = vmatprep.subr.bf16.mxu1 %v6986_v2 }
0x14f1   :  { %v4928_v57 = vpack.c.bf16 %v4833_v50, %v4830_v60 }
0x14f2   :  { %v6616_v59 = vpop.f32.mrf.mxu1  ;;  %v6621_v47 = vpop.f32.mrf.mxu0 }
0x14f3   :  { %6632 = vmatmul.mubr.msk.bf16.vlgmr.msra.gmra.mxu0 %vm1059_vm5, %v4928_v57 }
0x14f4   :  { %v4877_v51 = vpop.f32.mrf.mxu0  ;;  %v4918_v0 = vpop.f32.mrf.mxu1  ;;  %6642 = vmatpush3.bf16.msra.mxu0 %v5032_v37  ;;  %6643 = vmatprep.mubr.msk.bf16.mxu0 %vm6987_vm0, %v6986_v2 }
0x14f5   :  { %6653 = vmatprep.subr.bf16.mxu0 %v6986_v2  ;;  %v5025_v62 = vpack.c.bf16 %v4877_v51, %v4874_v56 }
0x14f6   :  { %v6622_v40 = vpop.f32.mrf.mxu0  ;;  %v6627_v4 = vpop.f32.mrf.mxu1 }
0x14f7   :  { %v6968_v4 = vld [vmem:[%s8347_s16 + $0x30] sm:$0xff]  }
0x14f8   :  { %v4921_v8 = vpop.f32.mrf.mxu1 }
0x14f9   :  { %v5077_v1 = vpack.c.bf16 %v4921_v8, %v4918_v0  ;;  %v6967_v0 = vld [vmem:[%s8347_s16 + $0x38] sm:$0xff]   ;;  %v5344_v8 = vsel %vm187_vm4, %v6968_v4, 0 }
0x14fa   :  { %v6628_v13 = vpop.f32.mrf.mxu1  ;;  %v5347_v40 = vsel %vm187_vm4, %v6967_v0, 0 }
0x14fb   :  { %6644 = vmatmul.mubr.msk.bf16.vlgmr.msra.gmra.mxu0 %vm1059_vm5, %v5025_v62  ;;  %6650 = vmatmul.mubr.msk.bf16.vlgmr.msra.gmra.mxu1 %vm1059_vm5, %v5077_v1  ;;  %v6969_v62 = vld [vmem:[%s8347_s16 + $0x28] sm:$0xff]   ;;  %v6970_v13 = vld [vmem:[%s8347_s16 + $0x20] sm:$0xff]  }
0x14fc   :  { %6657 = vmatprep.mubr.msk.bf16.mxu0 %vm6987_vm0, %v6986_v2  ;;  %6669 = vmatprep.mubr.msk.bf16.mxu1 %vm6987_vm0, %v6986_v2  ;;  %v5341_v1 = vsel %vm187_vm4, %v6969_v62, 0 }
0x14fd   :  { %6662 = vmatpush3.bf16.msra.mxu1 %v6823_v24 }
0x14fe   :  { %6663 = vmatprep.subr.bf16.mxu1 %v6986_v2 }
0x1501   :  { %6664 = vmatpush3.bf16.msra.mxu1 %v6824_v36 }
0x1502   :  { %6665 = vmatprep.subr.bf16.mxu1 %v6986_v2 }
0x1505   :  { %6666 = vmatpush3.bf16.msra.mxu1 %v6825_v34 }
0x1506   :  { %6667 = vmatprep.subr.bf16.mxu1 %v6986_v2 }
0x1509   :  { %6668 = vmatpush3.bf16.msra.mxu1 %v6826_v48 }
0x15ae   :  { %v5018_v15 = vpop.f32.mrf.mxu1 }
0x15b0   :  { %v6639_v63 = vpop.f32.mrf.mxu1 }
0x15b1   :  { %v6971_v63 = vld [vmem:[%s8347_s16 + $0x18] sm:$0xff]  }
0x15b2   :  { %v5021_v55 = vpop.f32.mrf.mxu1 }
0x15b3   :  { %v4971_v5 = vpop.f32.mrf.mxu0 }
0x15b4   :  { %v6640_v54 = vpop.f32.mrf.mxu1  ;;  %v5019_v3 = vadd.f32 %v5018_v15, %v4971_v5  ;;  %v5338_v15 = vsel %vm187_vm4, %v6970_v13, 0  ;;  %v5335_v5 = vsel %vm187_vm4, %v6971_v63, 0 }
0x15b5   :  { %v6633_v20 = vpop.f32.mrf.mxu0 }
0x15b7   :  { %v4974_v14 = vpop.f32.mrf.mxu0 }
0x15b8   :  { %v5022_v19 = vadd.f32 %v5021_v55, %v4974_v14 }
0x15b9   :  { %v6634_v6 = vpop.f32.mrf.mxu0 }
0x15bb   :  { %v5068_v9 = vpop.f32.mrf.mxu0  ;;  %v5120_v49 = vpop.f32.mrf.mxu1 }
0x15bc   :  { %v5075_v52 = vadd.f32 %v5068_v9, %v5019_v3 }
0x15bd   :  { %v6645_v53 = vpop.f32.mrf.mxu0  ;;  %v6651_v12 = vpop.f32.mrf.mxu1 }
0x15be   :  { %v5127_v25 = vadd.f32 %v5120_v49, %v5075_v52  ;;  %v6972_v12 = vld [vmem:[%s8347_s16 + $0x10] sm:$0xff]  }
0x15bf   :  { %v5071_v18 = vpop.f32.mrf.mxu0  ;;  %v5123_v27 = vpop.f32.mrf.mxu1 }
0x15c0   :  { %v8217_v29 = vadd.f32 %v5127_v25, %v7937_v7  ;;  %v5076_v61 = vadd.f32 %v5071_v18, %v5022_v19  ;;  %v6821_v7 = vld [vmem:[%s8350_s19 + $0x8] sm:$0xff]   ;;  %v5332_v19 = vsel %vm187_vm4, %v6972_v12, 0 }
0x15c1   :  { %v6646_v31 = vpop.f32.mrf.mxu0  ;;  %v6652_v23 = vpop.f32.mrf.mxu1  ;;  %6654 = vmatpush3.bf16.msra.mxu0 %v6821_v7  ;;  %v6973_v25 = vld [vmem:[%s8347_s16 + $0x8] sm:$0xff]  }
0x15c2   :  { %v5128_v33 = vadd.f32 %v5123_v27, %v5076_v61  ;;  %v5132_v28 = vmul.f32 %v8217_v29, %v8217_v29  ;;  %6655 = vmatprep.subr.bf16.mxu0 %v6986_v2  ;;  %v5329_v18 = vsel %vm187_vm4, %v6973_v25, 0  ;;  %v6974_v27 = vld [vmem:[%s8347_s16] sm:$0xff]  }
0x15c4   :  { %v8222_v35 = vadd.f32 %v5128_v33, %v7943_v16  ;;  %v5134_v26 = vsel %vm187_vm4, %v5132_v28, 0.0  ;;  %v6822_v16 = vld [vmem:[%s8350_s19] sm:$0xff]  }
0x15c5   :  { %5135 = vadd.xlane.f32.xlu0 %v5134_v26  ;;  %6656 = vmatpush3.bf16.msra.mxu0 %v6822_v16 }
0x15c6   :  { %v5133_v22 = vmul.f32 %v8222_v35, %v8222_v35  ;;  %6673 = vmatprep.subr.bf16.mxu0 %v6986_v2 }
0x15c8   :  { %v5137_v41 = vsel %vm187_vm4, %v5133_v22, 0.0 }
0x15c9   :  { %5138 = vadd.xlane.f32.xlu1 %v5137_v41  ;;  %v5855_v41 = vld [vmem:[%s8368_s28 + $0xc] ss:$0 sm:$0xff] }
0x164e   :  { %v5136_v10 = vpop.xlane.xlu0 %5135 }
0x164f   :  { %v5140_v39 = vmul.f32 0.03125, %v5136_v10 }
0x1651   :  { %v5142_v21 = vadd.f32 1e-06, %v5140_v39 }
0x1652   :  { %v5139_v42 = vpop.xlane.xlu1 %5138 }
0x1653   :  { %6949 = vrsqrt.f32 %v5142_v21  ;;  %v5141_v43 = vmul.f32 0.03125, %v5139_v42 }
0x1655   :  { %v5143_v32 = vadd.f32 1e-06, %v5141_v43 }
0x1657   :  { %6951 = vrsqrt.f32 %v5143_v32 }
0x1660   :  { %v6950_v38 = vpop.eup %6949 }
0x1661   :  { %v5146_v17 = vmul.f32 %v6950_v38, %v8217_v29 }
0x1663   :  { %v5152_v44 = vmul.f32 %v5846_v58, %v5146_v17 }
0x1664   :  { %v6952_v45 = vpop.eup %6951 }
0x1665   :  { %v5147_v60 = vmul.f32 %v6952_v45, %v8222_v35 }
0x1667   :  { %v5153_v30 = vmul.f32 %v5846_v58, %v5147_v60  ;;  %v5858_v58 = vld [vmem:[%s8374_s11 + $0x18] sm:$0xff]  ;;  %v5857_v60 = vld [vmem:[%s8374_s11 + $0x10] sm:$0xff]  ;;  %s6993_s11 = smov [#allocation2]  }
0x1668   :  { %vm5433_vm12 = vcmp.ne.s32.totalorder %v5858_v58, 4294967196  ;;  %vm5432_vm13 = vcmp.ne.s32.totalorder %v5857_v60, 4294967196 }
0x1669   :  { %v5154_v46 = vpack.c.bf16 %v5153_v30, %v5152_v44  ;;  %v5860_v0 = vsel %vm5433_vm12, 1.0, %v6986_v2 }
0x166b   :  { %6658 = vmatmul.mubr.msk.bf16.vlgmr.msra.gmra.mxu0 %vm187_vm4, %v5154_v46 }
0x166c   :  { %6689 = vmatprep.mubr.msk.bf16.mxu0 %vm6987_vm0, %v6986_v2  ;;  %6674 = vmatpush3.bf16.xpose.msra.mxu0 %v5347_v40  ;;  %vm5395_vm0 = vcmp.lt.s32.totalorder %v7148_v11, 64  ;;  %v5859_v40 = vsel %vm5432_vm13, 1.0, %v6986_v2 }
0x166d   :  { %6675 = vmatprep.subr.bf16.mxu0 %v6986_v2 }
0x1674   :  { %6676 = vmatpush3.bf16.xpose.msra.mxu0 %v5344_v8 }
0x1675   :  { %6677 = vmatprep.subr.bf16.mxu0 %v6986_v2 }
0x167c   :  { %6678 = vmatpush3.bf16.xpose.msra.mxu0 %v5341_v1 }
0x167d   :  { %6679 = vmatprep.subr.bf16.mxu0 %v6986_v2 }
0x1684   :  { %6680 = vmatpush3.bf16.xpose.msra.mxu0 %v5338_v15 }
0x1685   :  { %6681 = vmatprep.subr.bf16.mxu0 %v6986_v2 }
0x168c   :  { %6682 = vmatpush3.bf16.xpose.msra.mxu0 %v5335_v5 }
0x168d   :  { %6683 = vmatprep.subr.bf16.mxu0 %v6986_v2 }
0x1694   :  { %6684 = vmatpush3.bf16.xpose.msra.mxu0 %v5332_v19 }
0x1695   :  { %6685 = vmatprep.subr.bf16.mxu0 %v6986_v2 }
0x169c   :  { %6686 = vmatpush3.bf16.xpose.msra.mxu0 %v5329_v18 }
0x169d   :  { %6687 = vmatprep.subr.bf16.mxu0 %v6986_v2 }
0x172b   :  { %v5208_v50 = vpop.f32.mrf.mxu0 }
0x172c   :  { %v5215_v37 = vmax.f32 %v5208_v50, 0.0 }
0x172d   :  { %v6659_v56 = vpop.f32.mrf.mxu0 }
0x172f   :  { %v5211_v57 = vpop.f32.mrf.mxu0 }
0x1730   :  { %v5216_v59 = vmax.f32 %v5211_v57, 0.0 }
0x1731   :  { %v6660_v47 = vpop.f32.mrf.mxu0 }
0x1732   :  { %v5217_v51 = vpack.c.bf16 %v5216_v59, %v5215_v37 }
0x1734   :  { %6670 = vmatmul.mubr.msk.bf16.vlgmr.msra.gmra.mxu1 %vm1907_vm14, %v5217_v51  ;;  %vm5442_vm14 = vcmask 7168  }
0x1735   :  { %v5453_v4 = vsel %vm5442_vm14, %v5860_v0, 0.0  ;;  %v5452_v8 = vsel %vm5442_vm14, %v5859_v40, 0.0 }
0x1736   :  { %v5454_v62 = vadd.f32 %v5453_v4, %v5452_v8 }
0x1738   :  { %v5455_v1 = vrot.slane %v5454_v62, 4 }
0x17f4   :  { %v5287_v55 = vpop.f32.mrf.mxu1 }
0x17f5   :  { %v5294_v20 = vadd.f32 %v5287_v55, %v8217_v29  ;;  %v5326_v29 = vsel %vm187_vm4, %v6974_v27, 0 }
0x17f6   :  { %v6671_v54 = vpop.f32.mrf.mxu1  ;;  %6688 = vmatpush3.bf16.xpose.msra.mxu0 %v5326_v29 }
0x17f7   :  { %v5297_v14 = vmul.f32 %v5294_v20, %v5294_v20 }
0x17f8   :  { %v5290_v6 = vpop.f32.mrf.mxu1 }
0x17f9   :  { %v5295_v3 = vadd.f32 %v5290_v6, %v8222_v35  ;;  %v5299_v9 = vsel %vm187_vm4, %v5297_v14, 0.0 }
0x17fa   :  { %5300 = vadd.xlane.f32.xlu0 %v5299_v9  ;;  %v6672_v49 = vpop.f32.mrf.mxu1 }
0x17fb   :  { %v5298_v52 = vmul.f32 %v5295_v3, %v5295_v3 }
0x17fd   :  { %v5302_v53 = vsel %vm187_vm4, %v5298_v52, 0.0 }
0x17fe   :  { %5303 = vadd.xlane.f32.xlu1 %v5302_v53 }
0x1883   :  { %v5301_v61 = vpop.xlane.xlu0 %5300 }
0x1884   :  { %v5305_v31 = vmul.f32 0.03125, %v5301_v61 }
0x1886   :  { %v5307_v23 = vadd.f32 1e-06, %v5305_v31 }
0x1887   :  { %v5304_v33 = vpop.xlane.xlu1 %5303 }
0x1888   :  { %6953 = vrsqrt.f32 %v5307_v23  ;;  %v5306_v28 = vmul.f32 0.03125, %v5304_v33 }
0x188a   :  { %v5308_v35 = vadd.f32 1e-06, %v5306_v28 }
0x188c   :  { %6955 = vrsqrt.f32 %v5308_v35 }
0x1895   :  { %v6954_v26 = vpop.eup %6953 }
0x1896   :  { %v5311_v22 = vmul.f32 %v6954_v26, %v5294_v20 }
0x1898   :  { %v5317_v16 = vmul.f32 %v5855_v41, %v5311_v22 }
0x1899   :  { %v6956_v7 = vpop.eup %6955 }
0x189a   :  { %v5312_v24 = vmul.f32 %v6956_v7, %v5295_v3  ;;  %v5319_v10 = vmul.f32 0.17677669, %v5317_v16 }
0x189c   :  { %v5318_v36 = vmul.f32 %v5855_v41, %v5312_v24 }
0x189e   :  { %v5320_v39 = vmul.f32 0.17677669, %v5318_v36 }
0x18a0   :  { %v5321_v21 = vpack.c.bf16 %v5320_v39, %v5319_v10 }
0x18a2   :  { %6690 = vmatmul.mubr.msk.bf16.vlgmr.msra.gmra.mxu0 %vm187_vm4, %v5321_v21 }
0x1962   :  { %v5383_v42 = vpop.f32.mrf.mxu0 }
0x1963   :  { %5390 = vst [vmem:[%s8353_s22] sm:$0xff] %v5383_v42  ;;  %v5396_v43 = vsel %vm5395_vm0, %v5383_v42, -1e+30 }
0x1964   :  { %5398 = vmax.xlane.f32.xlu0 %v5396_v43  ;;  %v6691_v32 = vpop.f32.mrf.mxu0 }
0x1966   :  { %v5386_v38 = vpop.f32.mrf.mxu0 }
0x1967   :  { %5391 = vst [vmem:[%s8353_s22 + $0x8] sm:$0xff] %v5386_v38  ;;  %v5397_v17 = vsel %vm5395_vm0, %v5386_v38, -1e+30 }
0x1968   :  { %5400 = vmax.xlane.f32.xlu1 %v5397_v17  ;;  %v6692_v45 = vpop.f32.mrf.mxu0 }
0x1979   :  { %5422 = vperm.xlu1 %6705, %v5858_v58  }
0x197a   :  { %5419 = vperm.xlu0 %6704, %v5857_v60  }
0x19ed   :  { %v5399_v44 = vpop.xlane.xlu0 %5398 }
0x19ee   :  { %v5402_v30 = vsub.f32 %v5396_v43, %v5399_v44 }
0x19f0   :  { %v5404_v46 = vmul.f32 1.442695, %v5402_v30 }
0x19f1   :  { %v5401_v34 = vpop.xlane.xlu1 %5400 }
0x19f2   :  { %6957 = vpow2.f32 %v5404_v46  ;;  %v5403_v48 = vsub.f32 %v5397_v17, %v5401_v34 }
0x19f4   :  { %v5406_v50 = vmul.f32 1.442695, %v5403_v48 }
0x19f5   :  { %v5423_v56 = vpop.permute.xlu1 %5422  ;;  %v5420_v37 = vpop.permute.xlu0 %5419 }
0x19f6   :  { %6959 = vpow2.f32 %v5406_v50  ;;  %vm5425_vm4 = vcmp.eq.s32.totalorder %v7148_v11, %v5423_v56  ;;  %vm5424_vm5 = vcmp.eq.s32.totalorder %v7148_v11, %v5420_v37  ;;  %v5456_v11 = vadd.f32 %v5455_v1, %v5454_v62 }
0x19f7   :  { %v5427_v47 = vsel %vm5425_vm4, %v5386_v38, 0.0  ;;  %v5426_v51 = vsel %vm5424_vm5, %v5383_v42, 0.0 }
0x19f8   :  { %v5457_v63 = vrot.slane %v5456_v11, 2 }
0x19fa   :  { %v5458_v5 = vadd.f32 %v5457_v63, %v5456_v11 }
0x19fc   :  { %v5459_v20 = vrot.slane %v5458_v5, 1 }
0x19fe   :  { %v5460_v3 = vadd.f32 %v5459_v20, %v5458_v5 }
0x19ff   :  { %v6958_v57 = vpop.eup %6957 }
0x1a00   :  { %5408 = vadd.xlane.f32.xlu1 %v6958_v57  ;;  %v5461_v12 = vmax.f32 %v5460_v3, 1.0 }
0x1a03   :  { %v6960_v59 = vpop.eup %6959 }
0x1a04   :  { %5410 = vadd.xlane.f32.xlu0 %v6960_v59  ;;  %5430 = vadd.xlane.f32.xlu1 %v5427_v47 }
0x1a08   :  { %5428 = vadd.xlane.f32.xlu0 %v5426_v51 }
0x1a89   :  { %v5409_v13 = vpop.xlane.xlu1 %5408 }
0x1a8a   :  { %6961 = vlog2.f32 %v5409_v13 }
0x1a8d   :  { %v5411_v15 = vpop.xlane.xlu0 %5410  ;;  %v5431_v53 = vpop.xlane.xlu1 %5430 }
0x1a8e   :  { %6963 = vlog2.f32 %v5411_v15 }
0x1a8f   :  { %6965 = vrcp.f32 %v5461_v12 }
0x1a91   :  { %v5429_v2 = vpop.xlane.xlu0 %5428 }
0x1a97   :  { %v6962_v55 = vpop.eup %6961 }
0x1a98   :  { %v5413_v54 = vmul.f32 0.6931472, %v6962_v55 }
0x1a9a   :  { %v5416_v14 = vadd.f32 %v5413_v54, %v5399_v44 }
0x1a9b   :  { %v6964_v6 = vpop.eup %6963 }
0x1a9c   :  { %v5415_v9 = vmul.f32 0.6931472, %v6964_v6  ;;  %v5438_v49 = vsub.f32 %v5416_v14, %v5429_v2  ;;  %v6966_v26 = vpop.eup %6965 }
0x1a9e   :  { %v5417_v52 = vadd.f32 %v5415_v9, %v5401_v34  ;;  %v5440_v25 = vmul.f32 %v5859_v40, %v5438_v49 }
0x1aa0   :  { %v5439_v19 = vsub.f32 %v5417_v52, %v5431_v53  ;;  %v5443_v29 = vsel %vm5442_vm14, %v5440_v25, 0.0 }
0x1aa2   :  { %v5441_v18 = vmul.f32 %v5860_v0, %v5439_v19 }
0x1aa4   :  { %v5444_v27 = vsel %vm5442_vm14, %v5441_v18, 0.0 }
0x1aa5   :  { %v5445_v61 = vadd.f32 %v5444_v27, %v5443_v29 }
0x1aa7   :  { %v5446_v31 = vrot.slane %v5445_v61, 4 }
0x1aa9   :  { %v5447_v23 = vadd.f32 %v5446_v31, %v5445_v61 }
0x1aab   :  { %v5448_v33 = vrot.slane %v5447_v23, 2 }
0x1aad   :  { %v5449_v28 = vadd.f32 %v5448_v33, %v5447_v23 }
0x1aaf   :  { %v5450_v35 = vrot.slane %v5449_v28, 1 }
0x1ab1   :  { %v5451_v22 = vadd.f32 %v5450_v35, %v5449_v28 }
0x1ab3   :  { %v5463_v41 = vmul.f32 %v6966_v26, %v5451_v22 }
0x1ab5   :  { %6693 = vpush %v5463_v41 }
0x1ae6   :  { %s6694_s22 = spop %6693 }
0x1ae7   :  { %5466 = sst [smem:[#allocation2]] %s6694_s22 }
0x1ae8   :  { %5474 = dma.smem_to_hbm %s6993_s11, 16, %s8352_s21, [#allocation3]  }
0x1ae9   :  { %6983 = dma.done.wait [#allocation3], 16  }
0x1aea   :  { %6984 = vsyncadd [#allocation3], 4294967280 }
0x1aeb   :  { %5482 = sfence }
0x1aec   :  { %5483 = vsyncpa [#allocation3], 1 }

</bundles_post_ra>
